<compile_context>
chip_gen: v6e
topology: v6e:2x2x1
jax: 0.10.0
libtpu: 0.0.40
codegen_flags: <defaults>
</compile_context>

<pallas_src>
import functools

import jax
import jax.numpy as jnp
from jax.experimental import pallas as pl
from jax.experimental.pallas import tpu as pltpu

NEG_SLOPE = 0.01            # PyTorch nn.LeakyReLU default
MXU_DTYPE = jnp.bfloat16    # MXU operand dtype (accumulation stays f32)


def _leaky_relu(v):
    return jnp.where(v > 0, v, NEG_SLOPE * v)


def _im2col(xp, H, W, C):
    """xp: (C, H+2, W+2) padded image -> patch matrix (9*C, H*W).

    Row order is (kh, kw, c), matching the weight matrix layout built in the
    wrapper.  H*W stays the last (lane) axis so the following matmul output is
    lane-dense.
    """
    HW = H * W
    rows = [
        xp[:, kh:kh + H, kw:kw + W].reshape(C, HW)
        for kh in range(3)
        for kw in range(3)
    ]
    return jnp.concatenate(rows, axis=0)  # (9*C, H*W)


def _conv_block_kernel(x_ref, w1_ref, w2_ref, o_ref, xpad_ref, ypad_ref, *,
                       H, W, Cin, Cout):
    """One image per grid step; both layers fused.

    x_ref   : (1, Cin, H, W)     input image (direct NCHW block, no transpose)
    w1_ref  : (Cout, 9*Cin)      conv1 weight, rows ordered (kh, kw, cin), bf16
    w2_ref  : (Cout, 9*Cout)     conv2 weight, bf16
    o_ref   : (1, Cout, H*W)     output (lane-dense last dim = H*W)
    xpad_ref: (Cin, H+2, W+2)    VMEM scratch: zero-padded input
    ypad_ref: (Cout, H+2, W+2)   VMEM scratch: zero-padded conv1 activation
    """
    # Zero-fill the (tiny) padded scratch buffers; interiors are overwritten
    # below, halos stay zero.  Done every step so it is safe under megacore
    # partitioning of the "parallel" batch axis.
    xpad_ref[...] = jnp.zeros_like(xpad_ref)
    ypad_ref[...] = jnp.zeros_like(ypad_ref)

    # ---- layer 1: conv3x3 -> Dropout(eval: identity) -> LeakyReLU ----------
    xpad_ref[:, 1:H + 1, 1:W + 1] = x_ref[0]
    p1 = _im2col(xpad_ref[...], H, W, Cin).astype(MXU_DTYPE)      # (9*Cin, H*W)
    y1 = jnp.dot(w1_ref[...], p1, preferred_element_type=jnp.float32)
    y1 = _leaky_relu(y1)                                          # (Cout, H*W)

    # ---- layer 2: intermediate stays in VMEM --------------------------------
    ypad_ref[:, 1:H + 1, 1:W + 1] = y1.reshape(Cout, H, W)
    p2 = _im2col(ypad_ref[...], H, W, Cout).astype(MXU_DTYPE)     # (9*Cout, H*W)
    y2 = jnp.dot(w2_ref[...], p2, preferred_element_type=jnp.float32)
    y2 = _leaky_relu(y2)

    o_ref[0] = y2.astype(o_ref.dtype)


def conv_block_forward(x_nchw, w1_oihw, w2_oihw):
    """Reproduces Conv_Block.forward (inference mode).

    x_nchw : (N, Cin, H, W)  float32
    w1_oihw: (Cout, Cin, 3, 3)
    w2_oihw: (Cout, Cout, 3, 3)
    returns: (N, Cout, H, W) float32
    """
    N, Cin, H, W = x_nchw.shape
    Cout = w1_oihw.shape[0]

    # OIHW -> (Cout, 3*3*C) with rows ordered (kh, kw, c) to match _im2col.
    # Weights are tiny; this one-time host-side reshape is negligible and the
    # activations themselves are never transposed or padded outside the kernel.
    w1_mat = jnp.transpose(w1_oihw, (0, 2, 3, 1)).reshape(Cout, 9 * Cin)
    w2_mat = jnp.transpose(w2_oihw, (0, 2, 3, 1)).reshape(Cout, 9 * Cout)
    w1_mat = w1_mat.astype(MXU_DTYPE)
    w2_mat = w2_mat.astype(MXU_DTYPE)

    kernel = functools.partial(_conv_block_kernel, H=H, W=W, Cin=Cin, Cout=Cout)

    out = pl.pallas_call(
        kernel,
        out_shape=jax.ShapeDtypeStruct((N, Cout, H * W), jnp.float32),
        grid_spec=pltpu.PrefetchScalarGridSpec(
            num_scalar_prefetch=0,
            grid=(N,),
            in_specs=[
                pl.BlockSpec((1, Cin, H, W), lambda n: (n, 0, 0, 0)),
                pl.BlockSpec((Cout, 9 * Cin), lambda n: (0, 0)),
                pl.BlockSpec((Cout, 9 * Cout), lambda n: (0, 0)),
            ],
            out_specs=pl.BlockSpec((1, Cout, H * W), lambda n: (n, 0, 0)),
            scratch_shapes=[
                pltpu.VMEM((Cin, H + 2, W + 2), jnp.float32),
                pltpu.VMEM((Cout, H + 2, W + 2), jnp.float32),
            ],
        ),
        compiler_params=pltpu.CompilerParams(
            dimension_semantics=("parallel",),
            vmem_limit_bytes=32 * 1024 * 1024,
        ),
    )(x_nchw.astype(jnp.float32), w1_mat, w2_mat)

    # (N, Cout, H*W) -> (N, Cout, H, W): trailing-dim reshape, effectively free.
    return out.reshape(N, Cout, H, W)


def _reference_forward(x_nchw, w1_oihw, w2_oihw):
    """Pure-JAX f32 reference (lax conv) for a correctness check."""
    dn = jax.lax.conv_dimension_numbers(
        x_nchw.shape, w1_oihw.shape, ("NCHW", "OIHW", "NCHW"))
    y = jax.lax.conv_general_dilated(
        x_nchw, w1_oihw, (1, 1), ((1, 1), (1, 1)), dimension_numbers=dn)
    y = _leaky_relu(y)
    y = jax.lax.conv_general_dilated(
        y, w2_oihw, (1, 1), ((1, 1), (1, 1)), dimension_numbers=dn)
    return _leaky_relu(y)


if __name__ == "__main__":
    # Small deterministic setup consistent with the module:
    # in_channel=4, out_channel=8, batch=2, spatial=16x16.
    N, Cin, Cout, H, W = 2, 4, 8, 16, 16

    key = jax.random.PRNGKey(0)
    kx, k1, k2 = jax.random.split(key, 3)

    x = jax.random.normal(kx, (N, Cin, H, W), dtype=jnp.float32)
    # Deterministic "kaiming-ish" init for the two conv weights (bias=False).
    w1 = jax.random.normal(k1, (Cout, Cin, 3, 3), dtype=jnp.float32) * (
        1.0 / (Cin * 9) ** 0.5
    )
    w2 = jax.random.normal(k2, (Cout, Cout, 3, 3), dtype=jnp.float32) * (
        1.0 / (Cout * 9) ** 0.5
    )

    out = conv_block_forward(x, w1, w2)
    out = jax.block_until_ready(out)

    ref = jax.block_until_ready(_reference_forward(x, w1, w2))
    assert out.shape == (N, Cout, H, W)
    # Tolerance reflects bf16 MXU operands (f32 accumulation) vs f32 reference.
    assert jnp.allclose(out, ref, atol=5e-2, rtol=5e-2), "mismatch vs reference"

    print("KERNEL_OK")
</pallas_src>

<mosaic_0001>
module attributes {stable_mosaic.version = 11 : i64} {
  func.func @_conv_block_kernel(%arg0: i32, %arg1: memref<1x4x16x16xf32, #tpu.memory_space<vmem>>, %arg2: memref<8x36xbf16, #tpu.memory_space<vmem>>, %arg3: memref<8x72xbf16, #tpu.memory_space<vmem>>, %arg4: memref<1x8x256xf32, #tpu.memory_space<vmem>>, %arg5: memref<4x18x18xf32, #tpu.memory_space<vmem>>, %arg6: memref<8x18x18xf32, #tpu.memory_space<vmem>>) attributes {dimension_semantics = [#tpu.dimension_semantics<parallel>], iteration_bounds = array<i64: 2>, scalar_prefetch = 0 : i64, scratch_operands = 2 : i64, tpu.core_type = #tpu.core_type<tc>, window_params = [{transform_indices = @transform_0, window_bounds = array<i64: 1, 4, 16, 16>}, {pipeline_mode = #tpu.pipeline_mode<synchronous>, transform_indices = @transform_1, window_bounds = array<i64: 8, 36>}, {pipeline_mode = #tpu.pipeline_mode<synchronous>, transform_indices = @transform_2, window_bounds = array<i64: 8, 72>}, {transform_indices = @transform_3, window_bounds = array<i64: 1, 8, 256>}]} {
    %cst = arith.constant 0.000000e+00 : f32
    %0 = vector.broadcast %cst : f32 to vector<4x18x18xf32>
    %c0 = arith.constant 0 : index
    %c0_0 = arith.constant 0 : index
    %c0_1 = arith.constant 0 : index
    %1 = vector.load %arg5[%c0, %c0_0, %c0_1] : memref<4x18x18xf32, #tpu.memory_space<vmem>>, vector<4x18x18xf32>
    tpu.vector_store %arg5[%c0, %c0_0, %c0_1], %0 {strides = array<i32>} : memref<4x18x18xf32, #tpu.memory_space<vmem>>, vector<4x18x18xf32>,
    %cst_2 = arith.constant 0.000000e+00 : f32
    %2 = vector.broadcast %cst_2 : f32 to vector<8x18x18xf32>
    %c0_3 = arith.constant 0 : index
    %c0_4 = arith.constant 0 : index
    %c0_5 = arith.constant 0 : index
    %3 = vector.load %arg6[%c0_3, %c0_4, %c0_5] : memref<8x18x18xf32, #tpu.memory_space<vmem>>, vector<8x18x18xf32>
    tpu.vector_store %arg6[%c0_3, %c0_4, %c0_5], %2 {strides = array<i32>} : memref<8x18x18xf32, #tpu.memory_space<vmem>>, vector<8x18x18xf32>,
    %c0_6 = arith.constant 0 : index
    %c0_7 = arith.constant 0 : index
    %c0_8 = arith.constant 0 : index
    %c0_9 = arith.constant 0 : index
    %4 = vector.load %arg1[%c0_6, %c0_7, %c0_8, %c0_9] : memref<1x4x16x16xf32, #tpu.memory_space<vmem>>, vector<1x4x16x16xf32>
    %5 = vector.shape_cast %4 : vector<1x4x16x16xf32> to vector<4x16x16xf32>
    %c0_10 = arith.constant 0 : index
    %c1 = arith.constant 1 : index
    %c1_11 = arith.constant 1 : index
    %6 = vector.load %arg5[%c0_10, %c1, %c1_11] : memref<4x18x18xf32, #tpu.memory_space<vmem>>, vector<4x16x16xf32>
    tpu.vector_store %arg5[%c0_10, %c1, %c1_11], %5 {strides = array<i32>} : memref<4x18x18xf32, #tpu.memory_space<vmem>>, vector<4x16x16xf32>,
    %c0_12 = arith.constant 0 : index
    %c0_13 = arith.constant 0 : index
    %c0_14 = arith.constant 0 : index
    %7 = vector.load %arg5[%c0_12, %c0_13, %c0_14] : memref<4x18x18xf32, #tpu.memory_space<vmem>>, vector<4x18x18xf32>
    %8 = vector.extract_strided_slice %7 {offsets = [0, 0, 0], sizes = [4, 16, 16], strides = [1, 1, 1]} : vector<4x18x18xf32> to vector<4x16x16xf32>
    %9 = vector.shape_cast %8 : vector<4x16x16xf32> to vector<4x256xf32>
    %10 = vector.extract_strided_slice %7 {offsets = [0, 0, 1], sizes = [4, 16, 16], strides = [1, 1, 1]} : vector<4x18x18xf32> to vector<4x16x16xf32>
    %11 = vector.shape_cast %10 : vector<4x16x16xf32> to vector<4x256xf32>
    %12 = vector.extract_strided_slice %7 {offsets = [0, 0, 2], sizes = [4, 16, 16], strides = [1, 1, 1]} : vector<4x18x18xf32> to vector<4x16x16xf32>
    %13 = vector.shape_cast %12 : vector<4x16x16xf32> to vector<4x256xf32>
    %14 = vector.extract_strided_slice %7 {offsets = [0, 1, 0], sizes = [4, 16, 16], strides = [1, 1, 1]} : vector<4x18x18xf32> to vector<4x16x16xf32>
    %15 = vector.shape_cast %14 : vector<4x16x16xf32> to vector<4x256xf32>
    %16 = vector.extract_strided_slice %7 {offsets = [0, 1, 1], sizes = [4, 16, 16], strides = [1, 1, 1]} : vector<4x18x18xf32> to vector<4x16x16xf32>
    %17 = vector.shape_cast %16 : vector<4x16x16xf32> to vector<4x256xf32>
    %18 = vector.extract_strided_slice %7 {offsets = [0, 1, 2], sizes = [4, 16, 16], strides = [1, 1, 1]} : vector<4x18x18xf32> to vector<4x16x16xf32>
    %19 = vector.shape_cast %18 : vector<4x16x16xf32> to vector<4x256xf32>
    %20 = vector.extract_strided_slice %7 {offsets = [0, 2, 0], sizes = [4, 16, 16], strides = [1, 1, 1]} : vector<4x18x18xf32> to vector<4x16x16xf32>
    %21 = vector.shape_cast %20 : vector<4x16x16xf32> to vector<4x256xf32>
    %22 = vector.extract_strided_slice %7 {offsets = [0, 2, 1], sizes = [4, 16, 16], strides = [1, 1, 1]} : vector<4x18x18xf32> to vector<4x16x16xf32>
    %23 = vector.shape_cast %22 : vector<4x16x16xf32> to vector<4x256xf32>
    %24 = vector.extract_strided_slice %7 {offsets = [0, 2, 2], sizes = [4, 16, 16], strides = [1, 1, 1]} : vector<4x18x18xf32> to vector<4x16x16xf32>
    %25 = vector.shape_cast %24 : vector<4x16x16xf32> to vector<4x256xf32>
    %26 = tpu.concatenate %9, %11, %13, %15, %17, %19, %21, %23, %25 in 0 : vector<4x256xf32>, vector<4x256xf32>, vector<4x256xf32>, vector<4x256xf32>, vector<4x256xf32>, vector<4x256xf32>, vector<4x256xf32>, vector<4x256xf32>, vector<4x256xf32> -> vector<36x256xf32>
    %27 = arith.truncf %26 : vector<36x256xf32> to vector<36x256xbf16>
    %c0_15 = arith.constant 0 : index
    %c0_16 = arith.constant 0 : index
    %28 = vector.load %arg2[%c0_15, %c0_16] : memref<8x36xbf16, #tpu.memory_space<vmem>>, vector<8x36xbf16>
    %cst_17 = arith.constant dense<0.000000e+00> : vector<8x256xf32>
    %29 = tpu.matmul %28, %27, %cst_17 {dimension_numbers = #tpu.dot_dimension_numbers<[1], [0], [0], [1], [0, 0, 1, 1], [], []>} : vector<8x36xbf16>, vector<36x256xbf16>, vector<8x256xf32> -> vector<8x256xf32>
    %cst_18 = arith.constant 0.000000e+00 : f32
    %30 = vector.broadcast %cst_18 : f32 to vector<8x256xf32>
    %31 = arith.cmpf ogt, %29, %30 : vector<8x256xf32>
    %cst_19 = arith.constant 0.00999999977 : f32
    %32 = vector.broadcast %cst_19 : f32 to vector<8x256xf32>
    %33 = arith.mulf %32, %29 : vector<8x256xf32>
    %34 = arith.select %31, %29, %33 : vector<8x256xi1>, vector<8x256xf32>
    %35 = vector.shape_cast %34 : vector<8x256xf32> to vector<8x16x16xf32>
    %c0_20 = arith.constant 0 : index
    %c1_21 = arith.constant 1 : index
    %c1_22 = arith.constant 1 : index
    %36 = vector.load %arg6[%c0_20, %c1_21, %c1_22] : memref<8x18x18xf32, #tpu.memory_space<vmem>>, vector<8x16x16xf32>
    tpu.vector_store %arg6[%c0_20, %c1_21, %c1_22], %35 {strides = array<i32>} : memref<8x18x18xf32, #tpu.memory_space<vmem>>, vector<8x16x16xf32>,
    %c0_23 = arith.constant 0 : index
    %c0_24 = arith.constant 0 : index
    %c0_25 = arith.constant 0 : index
    %37 = vector.load %arg6[%c0_23, %c0_24, %c0_25] : memref<8x18x18xf32, #tpu.memory_space<vmem>>, vector<8x18x18xf32>
    %38 = vector.extract_strided_slice %37 {offsets = [0, 0, 0], sizes = [8, 16, 16], strides = [1, 1, 1]} : vector<8x18x18xf32> to vector<8x16x16xf32>
    %39 = vector.shape_cast %38 : vector<8x16x16xf32> to vector<8x256xf32>
    %40 = vector.extract_strided_slice %37 {offsets = [0, 0, 1], sizes = [8, 16, 16], strides = [1, 1, 1]} : vector<8x18x18xf32> to vector<8x16x16xf32>
    %41 = vector.shape_cast %40 : vector<8x16x16xf32> to vector<8x256xf32>
    %42 = vector.extract_strided_slice %37 {offsets = [0, 0, 2], sizes = [8, 16, 16], strides = [1, 1, 1]} : vector<8x18x18xf32> to vector<8x16x16xf32>
    %43 = vector.shape_cast %42 : vector<8x16x16xf32> to vector<8x256xf32>
    %44 = vector.extract_strided_slice %37 {offsets = [0, 1, 0], sizes = [8, 16, 16], strides = [1, 1, 1]} : vector<8x18x18xf32> to vector<8x16x16xf32>
    %45 = vector.shape_cast %44 : vector<8x16x16xf32> to vector<8x256xf32>
    %46 = vector.extract_strided_slice %37 {offsets = [0, 1, 1], sizes = [8, 16, 16], strides = [1, 1, 1]} : vector<8x18x18xf32> to vector<8x16x16xf32>
    %47 = vector.shape_cast %46 : vector<8x16x16xf32> to vector<8x256xf32>
    %48 = vector.extract_strided_slice %37 {offsets = [0, 1, 2], sizes = [8, 16, 16], strides = [1, 1, 1]} : vector<8x18x18xf32> to vector<8x16x16xf32>
    %49 = vector.shape_cast %48 : vector<8x16x16xf32> to vector<8x256xf32>
    %50 = vector.extract_strided_slice %37 {offsets = [0, 2, 0], sizes = [8, 16, 16], strides = [1, 1, 1]} : vector<8x18x18xf32> to vector<8x16x16xf32>
    %51 = vector.shape_cast %50 : vector<8x16x16xf32> to vector<8x256xf32>
    %52 = vector.extract_strided_slice %37 {offsets = [0, 2, 1], sizes = [8, 16, 16], strides = [1, 1, 1]} : vector<8x18x18xf32> to vector<8x16x16xf32>
    %53 = vector.shape_cast %52 : vector<8x16x16xf32> to vector<8x256xf32>
    %54 = vector.extract_strided_slice %37 {offsets = [0, 2, 2], sizes = [8, 16, 16], strides = [1, 1, 1]} : vector<8x18x18xf32> to vector<8x16x16xf32>
    %55 = vector.shape_cast %54 : vector<8x16x16xf32> to vector<8x256xf32>
    %56 = tpu.concatenate %39, %41, %43, %45, %47, %49, %51, %53, %55 in 0 : vector<8x256xf32>, vector<8x256xf32>, vector<8x256xf32>, vector<8x256xf32>, vector<8x256xf32>, vector<8x256xf32>, vector<8x256xf32>, vector<8x256xf32>, vector<8x256xf32> -> vector<72x256xf32>
    %57 = arith.truncf %56 : vector<72x256xf32> to vector<72x256xbf16>
    %c0_26 = arith.constant 0 : index
    %c0_27 = arith.constant 0 : index
    %58 = vector.load %arg3[%c0_26, %c0_27] : memref<8x72xbf16, #tpu.memory_space<vmem>>, vector<8x72xbf16>
    %cst_28 = arith.constant dense<0.000000e+00> : vector<8x256xf32>
    %59 = tpu.matmul %58, %57, %cst_28 {dimension_numbers = #tpu.dot_dimension_numbers<[1], [0], [0], [1], [0, 0, 1, 1], [], []>} : vector<8x72xbf16>, vector<72x256xbf16>, vector<8x256xf32> -> vector<8x256xf32>
    %cst_29 = arith.constant 0.000000e+00 : f32
    %60 = vector.broadcast %cst_29 : f32 to vector<8x256xf32>
    %61 = arith.cmpf ogt, %59, %60 : vector<8x256xf32>
    %cst_30 = arith.constant 0.00999999977 : f32
    %62 = vector.broadcast %cst_30 : f32 to vector<8x256xf32>
    %63 = arith.mulf %62, %59 : vector<8x256xf32>
    %64 = arith.select %61, %59, %63 : vector<8x256xi1>, vector<8x256xf32>
    %c0_31 = arith.constant 0 : index
    %c0_32 = arith.constant 0 : index
    %c0_33 = arith.constant 0 : index
    %65 = vector.load %arg4[%c0_31, %c0_32, %c0_33] : memref<1x8x256xf32, #tpu.memory_space<vmem>>, vector<1x8x256xf32>
    %66 = vector.shape_cast %65 : vector<1x8x256xf32> to vector<8x256xf32>
    %67 = vector.shape_cast %64 : vector<8x256xf32> to vector<1x8x256xf32>
    tpu.vector_store %arg4[%c0_31, %c0_32, %c0_33], %67 {strides = array<i32>} : memref<1x8x256xf32, #tpu.memory_space<vmem>>, vector<1x8x256xf32>,
    return
  }
  func.func @transform_0(%arg0: i32) -> (i32, i32, i32, i32) {
    %c0_i32 = arith.constant 0 : i32
    %c0_i32_0 = arith.constant 0 : i32
    %c0_i32_1 = arith.constant 0 : i32
    %c0_i32_2 = arith.constant 0 : i32
    return %arg0, %c0_i32, %c0_i32_0, %c0_i32_1 : i32, i32, i32, i32
  }
  func.func @transform_1(%arg0: i32) -> (i32, i32) {
    %c0_i32 = arith.constant 0 : i32
    %c0_i32_0 = arith.constant 0 : i32
    %c0_i32_1 = arith.constant 0 : i32
    return %c0_i32, %c0_i32_0 : i32, i32
  }
  func.func @transform_2(%arg0: i32) -> (i32, i32) {
    %c0_i32 = arith.constant 0 : i32
    %c0_i32_0 = arith.constant 0 : i32
    %c0_i32_1 = arith.constant 0 : i32
    return %c0_i32, %c0_i32_0 : i32, i32
  }
  func.func @transform_3(%arg0: i32) -> (i32, i32, i32) {
    %c0_i32 = arith.constant 0 : i32
    %c0_i32_0 = arith.constant 0 : i32
    %c0_i32_1 = arith.constant 0 : i32
    return %arg0, %c0_i32, %c0_i32_0 : i32, i32, i32
  }
}

</mosaic_0001>

<bundles_post_ra>
// kernel: tpu_custom_call.1
= control target key start
LH: loop header
LB: loop body
LE: loop exit
PB: predicated region body
PF: predicated region fallthrough
CT: control target
= control target key end

     0   :  { %8 = vsyncpa [#allocation5], 0  ;;  %s11855_s0 = inlined_call_operand.hbm [shape: f32[2,4,16,16], index: 0, kind: input, shape index: {}]   ;;  %s11856_s1 = inlined_call_operand.hbm [shape: bf16[8,36], index: 1, kind: input, shape index: {}]   ;;  %s11857_s2 = inlined_call_operand.hbm [shape: bf16[8,72], index: 2, kind: input, shape index: {}]   ;;  %s11858_s3 = inlined_call_operand.hbm [shape: f32[2,8,256], index: 3, kind: output, shape index: {}]  }
   0x1   :  { %10 = vsyncpa [#allocation5 + $0x1], 0 }
   0x2   :  { %11 = vsyncpa [#allocation8], 0 }
   0x3   :  { %12 = vsyncpa [#allocation6], 0 }
   0x4   :  { %14 = vsyncpa [#allocation6 + $0x1], 0  ;;  %s7494_s12 = smov 0   ;;  %s7496_s13 = smov 0  }
   0x5   :  { %s7498_s14 = smov 0   ;;  %s7500_s15 = smov 0  }
   0x6 LB: > { %s7515_s16 = sadd.s32 4294967295, %s7452_s15   ;;  %s6583_s17 = sadd.s32 4294967294, %s7452_s15   ;;  %s7452_s15 = sphi %s7500_s15, %s12415_s15   ;;  %s7448_s14 = sphi %s7498_s14, %s12414_s14   ;;  %s7444_s13 = sphi %s7496_s13, %s12413_s13   ;;  %s7440_s12 = sphi %s7494_s12, %s12412_s12  }
   0x7   : > { %s7519_s18 = sadd.s32 1, %s7452_s15   ;;  %s27_s19 = sadd.s32 1, %s7448_s14 }
   0x8   : > { %s24_s20 = ssub.s32 %s7452_s15, %s7519_s18  ;;  %p34_p0 = scmp.ne.s32.totalorder %s7448_s14, %s7444_s13 }
   0x9   : > { %p25_p1 = scmp.eq.s32.totalorder %s24_s20, 0  ;;  %p35_p2 = scmp.eq.s32.totalorder %s7452_s15, 0 }
   0xa   : > { %p40_p3 = scmp.ne.s32.totalorder %s7444_s13, %s7440_s12  ;;  %p11859_p4 = scmp.eq.s32.totalorder %s7515_s16, 0 }
   0xb   : > { %s7531_s21 = scalar_select %p25_p1, %s7448_s14, %s27_s19  }
   0xc   : > { %p7533_p5 = por %p35_p2, %p34_p0  ;;  %p7539_p6 = por %p11859_p4, %p40_p3 }
   0xd   : > { %p106_p7 = scmp.eq.s32.totalorder %s7515_s16, 1  ;;  %p112_p8 = scmp.eq.s32.totalorder %s6583_s17, 1 }
   0xe   : > { %s12031_s23 = scalar_select %p7539_p6, 1, 0 }
   0xf   : > { %p6584_p9 = scmp.ge.s32.totalorder %s7452_s15, 1  ;;  %p119_p10 = scmp.lt.s32.totalorder %s7452_s15, 3 }
  0x10   : > { %p7546_p11 = por %p106_p7, %p34_p0  ;;  %p7550_p12 = por %p112_p8, %p40_p3 }
  0x11   : > { %p7554_p13 = pnand %p6584_p9, %p119_p10  ;;  %s7454_s27 = smov [#allocation7]  }
  0x12   : > { %s12032_s24 = scalar_select %p7546_p11, 1, 0 }
  0x13   : > { %s12033_s25 = scalar_select %p7550_p12, 1, 0 }
  0x14   : > { %s12034_s26 = scalar_select %p7554_p13, 1, 0 }
  0x15   : > { %p6619_p2 = pneg %p7554_p13  ;;  %s132_s28 = sshll.u32 %s7454_s27, 4  ;;  %s133_s28 = int_to_ptr.vmem [resolvable:$true] %s132_s28 }
  0x16   : > { %p6636_p4 = scmp.lt.s32.totalorder %s7452_s15, 2  ;;  %p12035_p0 = scmp.eq.s32.totalorder %s7515_s16, 0 }
  0x17   : > { %s7455_s4 = smov [#allocation9]   ;;  %s7315_s6 = scalar_lea.vmem %s133_s28, 64 }
  0x18   : > { %p7564_p7 = pnand %p6619_p2, %p12035_p0  ;;  %p7570_p3 = pnand %p6636_p4, %p7533_p5 }
  0x19   : > { %s143_s5 = sshll.u32 %s7455_s4, 4  ;;  %p7316_p9 = scmp.ne.s32.totalorder %s133_s28, %s7315_s6  ;;  %s144_s5 = int_to_ptr.vmem [resolvable:$true] %s143_s5 }
  0x1a   : > { %p7306_p8 = pneg %p7564_p7  ;;  %p7323_p0 = scmp.lt.s32.totalorder %s133_s28, %s133_s28 }
  0x1b   : > { %p7324_p1 = scmp.lt.s32.totalorder %s7315_s6, %s7315_s6 }
  0x1c   : > { %p7318_p10 = pnand %p7316_p9, %p7306_p8 }
  0x1d   : > { %p7325_p12 = por %p7324_p1, %p7323_p0 }
  0x1e   : > { %p7319_p2 = pneg %p7318_p10 }
  0x20   : > { %p7326_p11 = pnand %p7325_p12, %p7319_p2 }
  0x22   : > { %7329 = shalt.err (!%p7326_p11)
}
  0x23   : > { %6622 = dma.hbm_to_vmem [thread:$0]  (!%p7564_p7), %s11856_s1, 64, %s133_s28, [#allocation8]  }
  0x24   : > { %s154_s9 = sand.u32 1, %s7448_s14   ;;  %s7341_s10 = scalar_lea.vmem %s144_s5, 64 }
  0x25   : > { %p7342_p4 = scmp.ne.s32.totalorder %s144_s5, %s7341_s10  ;;  %p7349_p10 = scmp.lt.s32.totalorder %s144_s5, %s144_s5 }
  0x26   : > { %p7350_p6 = scmp.lt.s32.totalorder %s7341_s10, %s7341_s10 }
  0x27   : > { %p7344_p5 = pnand %p7342_p4, %p7306_p8 }
  0x28   : > { %p7351_p1 = por %p7350_p6, %p7349_p10 }
  0x29   : > { %p7345_p9 = pneg %p7344_p5 }
  0x2b   : > { %p7352_p12 = pnand %p7351_p1, %p7345_p9 }
  0x2d   : > { %7355 = shalt.err (!%p7352_p12)
}
  0x2e   : > { %6625 = dma.hbm_to_vmem [thread:$0]  (!%p7564_p7), %s11857_s2, 64, %s144_s5, [#allocation8]  }
  0x2f   : > { %s6588_s19 = sshll.u32 %s154_s9, 6  ;;  %s6605_s20 = sshll.u32 %s7452_s15, 10 }
  0x30   : > { %s7597_s28 = scalar_lea.hbm %s11855_s0, %s6605_s20  ;;  %s158_s4 = scalar_lea.vmem [#allocation4], %s6588_s19 }
  0x31   : > { %s165_s6 = sshll.u32 %s158_s4, 4  ;;  %s7601_s29 = scalar_lea.sflag [#allocation5], %s154_s9  ;;  %s7599_s6 = int_to_ptr.vmem [resolvable:$true] %s165_s6 }
  0x32   : > { %s7356_s7 = scalar_lea.hbm %s7597_s28, 1024  ;;  %p7358_p11 = pneg %p7570_p3 }
  0x33   : > { %p7357_p6 = scmp.ne.s32.totalorder %s7597_s28, %s7356_s7  ;;  %s7361_s10 = scalar_lea.hbm %s11855_s0, 2048 }
  0x34   : > { %p7362_p2 = scmp.lt.s32.totalorder %s7597_s28, %s11855_s0  ;;  %p7363_p0 = scmp.lt.s32.totalorder %s7361_s10, %s7356_s7 }
  0x35   : > { %p7359_p7 = pnand %p7358_p11, %p7357_p6 }
  0x36   : > { %p7364_p4 = por %p7363_p0, %p7362_p2 }
  0x37   : > { %p7360_p8 = pneg %p7359_p7 }
  0x39   : > { %p7365_p5 = pnand %p7364_p4, %p7360_p8 }
  0x3b   : > { %7368 = shalt.err (!%p7365_p5)
}
  0x3c   : > { %s7369_s9 = scalar_lea.vmem %s7599_s6, 1024  ;;  %s7456_s19 = smov [#allocation4]  }
  0x3d   : > { %p7370_p9 = scmp.ne.s32.totalorder %s7599_s6, %s7369_s9  ;;  %s7374_s20 = sshll.u32 %s7456_s19, 4  ;;  %s7375_s20 = int_to_ptr.vmem [resolvable:$false] %s7374_s20 }
  0x3e   : > { %s7376_s22 = scalar_lea.vmem %s7375_s20, 2048  ;;  %p7377_p12 = scmp.lt.s32.totalorder %s7599_s6, %s7375_s20 }
  0x3f   : > { %p7372_p10 = pnand %p7370_p9, %p7358_p11  ;;  %p7378_p6 = scmp.lt.s32.totalorder %s7376_s22, %s7369_s9 }
  0x41   : > { %p7373_p1 = pneg %p7372_p10  ;;  %p7379_p7 = por %p7378_p6, %p7377_p12 }
  0x43   : > { %p7380_p13 = pnand %p7379_p7, %p7373_p1 }
  0x45   : > { %7383 = shalt.err (!%p7380_p13)
}
  0x46   : > { %s7457_s27 = smov 128   ;;  %s7458_s4 = smov 8  }
  0x47   : > { %6629 = dma.hbm_to_vmem [thread:$0]  (!%p7570_p3), %s7597_s28, 1024, %s7599_s6, %s7601_s29, %s7457_s27, %s7457_s27, %s7458_s4  }
  0x48   : > { %p12038_p11 = scmp.ne.s32.totalorder %s12034_s26, 0 }
  0x4a   : > { %177 = sbr.rel (%p12038_p11) target bundleno = 1790 (0x6fe), region = 32 }
  0x4f   : > { %s7625_s7 = sand.u32 1, %s7444_s13   ;;  %p12039_p13 = scmp.ne.s32.totalorder %s12031_s23, 0 }
  0x50   : > { %s6592_s5 = sshll.u32 %s7625_s7, 6  ;;  %s180_s8 = scalar_lea.sflag [#allocation5], %s7625_s7 }
  0x51   : > { %s7629_s10 = scalar_lea.vmem [#allocation4], %s6592_s5 }
  0x52   : > { %7427 = dma.done.wait (%p12039_p13), %s180_s8, 1024  }
  0x53   : > { %7429 = vsyncadd (%p12039_p13), %s180_s8, 4294966272  ;;  %p12040_p3 = scmp.eq.s32.totalorder %s7515_s16, 0 }
  0x55   : > { %7431 = dma.done.wait (%p12040_p3), [#allocation8], 128   ;;  %p12041_p8 = pmov %p12040_p3 }
  0x56   : > { %vm215_vm0 = vcmask 146432   ;;  %v11868_v0 = vmov 0.0   ;;  %vm218_vm1 = vcmask 140288   ;;  %v255_v1 = vld [vmem:[%s7629_s10 + $0x10] sm:$0xff]  ;;  %v253_v2 = vld [vmem:[%s7629_s10] sm:$0xff]  ;;  %s7460_s23 = smov 1   ;;  %v319_v27 = vlaneseq }
  0x57   : > { %7433 = vsyncadd (%p12041_p8), [#allocation8], 4294967168  ;;  %220 = vst.msk [vmem:[#allocation2 + $0x18] sm:$0xff] %vm215_vm0, %v11868_v0  ;;  %273 = vrot.lane.b32.xlu1 %v255_v1, %s7460_s23  ;;  %269 = vrot.lane.b32.xlu0 %v253_v2, %s7460_s23  ;;  %v256_v3 = vld [vmem:[%s7629_s10 + $0x18] sm:$0xff]  ;;  %v254_v4 = vld [vmem:[%s7629_s10 + $0x8] sm:$0xff]  ;;  %vm293_vm2 = vcmask 138248  }
  0x58   : > { %221 = vst.msk [vmem:[#allocation2 + $0x20] sm:$0xff] %vm215_vm0, %v11868_v0  ;;  %216 = vst.msk [vmem:[#allocation2] sm:$0xff] %vm215_vm0, %v11868_v0  ;;  %v258_v5 = vld [vmem:[%s7629_s10 + $0x28] sm:$0xff]  ;;  %v257_v6 = vld [vmem:[%s7629_s10 + $0x20] sm:$0xff]  ;;  %s7461_s26 = smov 127   ;;  %vm1694_vm3 = vcmask 1045504  }
  0x59   : > { %217 = vst.msk [vmem:[#allocation2 + $0x8] sm:$0xff] %vm215_vm0, %v11868_v0  ;;  %223 = vst.msk [vmem:[#allocation2 + $0x30] sm:$0xff] %vm215_vm0, %v11868_v0  ;;  %v260_v7 = vld [vmem:[%s7629_s10 + $0x38] sm:$0xff]  ;;  %v259_v8 = vld [vmem:[%s7629_s10 + $0x30] sm:$0xff]  ;;  %v7462_v25 = vmov 1983009808  }
  0x5a   : > { %224 = vst.msk [vmem:[#allocation2 + $0x38] sm:$0xff] %vm215_vm0, %v11868_v0  ;;  %226 = vst.msk [vmem:[#allocation2 + $0x48] sm:$0xff] %vm215_vm0, %v11868_v0  ;;  %v317_v26 = vunpack.c.l.s4 %v7462_v25  ;;  %v7771_v42 = vshrl.u32 %v319_v27, 7  ;;  %s7463_s30 = smov 126   ;;  %vm999_vm4 = vcmask 1046528   ;;  %s7465_s28 = smov 32  }
  0x5b   : > { %227 = vst.msk [vmem:[#allocation2 + $0x50] sm:$0xff] %vm215_vm0, %v11868_v0  ;;  %229 = vst.msk [vmem:[#allocation3] sm:$0xff] %vm215_vm0, %v11868_v0  ;;  %275 = vrot.lane.b32.xlu1 %v256_v3, %s7460_s23  ;;  %271 = vrot.lane.b32.xlu0 %v254_v4, %s7460_s23  ;;  %s7466_s6 = smov 64   ;;  %s7467_s29 = smov 16   ;;  %vm506_vm5 = vcmask 130048   ;;  %vm508_vm6 = vcmask 261120  }
  0x5c   : > { %230 = vst.msk [vmem:[#allocation3 + $0x8] sm:$0xff] %vm215_vm0, %v11868_v0  ;;  %232 = vst.msk [vmem:[#allocation3 + $0x18] sm:$0xff] %vm215_vm0, %v11868_v0  ;;  %v318_v41 = vunpack.c.0.s8 %v317_v26  ;;  %s7468_s11 = smov 96   ;;  %s7469_s17 = smov 48   ;;  %vm510_vm7 = vcmask 392192   ;;  %vm512_vm8 = vcmask 523264  }
  0x5d   : > { %233 = vst.msk [vmem:[#allocation3 + $0x20] sm:$0xff] %vm215_vm0, %v11868_v0  ;;  %235 = vst.msk [vmem:[#allocation3 + $0x30] sm:$0xff] %vm215_vm0, %v11868_v0  ;;  %s7470_s9 = smov 80   ;;  %s7471_s19 = smov 112   ;;  %vm514_vm9 = vcmask 654336   ;;  %vm516_vm10 = vcmask 785408  }
  0x5e   : > { %236 = vst.msk [vmem:[#allocation3 + $0x38] sm:$0xff] %vm215_vm0, %v11868_v0  ;;  %238 = vst.msk [vmem:[#allocation3 + $0x48] sm:$0xff] %vm215_vm0, %v11868_v0  ;;  %v7796_v51 = vsub.s32 %v318_v41, %v7771_v42  ;;  %vm518_vm11 = vcmask 916480   ;;  %vm2433_vm12 = vcmask 1041408   ;;  %vm2413_vm13 = vcmask 1043456   ;;  %s6595_s20 = sshll.u32 %s7625_s7, 4 }
  0x5f   : > { %239 = vst.msk [vmem:[#allocation3 + $0x50] sm:$0xff] %vm215_vm0, %v11868_v0  ;;  %241 = vst.msk [vmem:[#allocation3 + $0x60] sm:$0xff] %vm215_vm0, %v11868_v0  ;;  %279 = vrot.lane.b32.xlu1 %v258_v5, %s7460_s23  ;;  %277 = vrot.lane.b32.xlu0 %v257_v6, %s7460_s23  ;;  %vm2429_vm14 = vcmask 293888   ;;  %s6606_s22 = sshll.u32 %s7515_s16, 8  ;;  %s213_s27 = scalar_lea.vmem [#allocation10], %s6595_s20 }
  0x60   : > { %242 = vst.msk [vmem:[#allocation3 + $0x68] sm:$0xff] %vm215_vm0, %v11868_v0  ;;  %244 = vst.msk [vmem:[#allocation3 + $0x78] sm:$0xff] %vm215_vm0, %v11868_v0  ;;  %s6494_s4 = sshll.u32 %s213_s27, 4  ;;  %s11812_s10 = scalar_lea.hbm %s11858_s3, %s6606_s22  ;;  %s11814_s4 = int_to_ptr.vmem [resolvable:$true] %s6494_s4 }
  0x61   : > { %245 = vst.msk [vmem:[#allocation3 + $0x80] sm:$0xff] %vm215_vm0, %v11868_v0  ;;  %247 = vst.msk [vmem:[#allocation3 + $0x90] sm:$0xff] %vm215_vm0, %v11868_v0  ;;  %s6480_s16 = scalar_lea.sflag [#allocation6], %s7625_s7  ;;  %p12409_p0 = scmp.ne.s32.totalorder %s12032_s24, 0 }
  0x62   : > { %248 = vst.msk [vmem:[#allocation3 + $0x98] sm:$0xff] %vm215_vm0, %v11868_v0  ;;  %250 = vst.msk [vmem:[#allocation3 + $0xa8] sm:$0xff] %vm215_vm0, %v11868_v0 }
  0x63   : > { %251 = vst.msk [vmem:[#allocation3 + $0xb0] sm:$0xff] %vm215_vm0, %v11868_v0  ;;  %283 = vrot.lane.b32.xlu1 %v260_v7, %s7460_s23  ;;  %281 = vrot.lane.b32.xlu0 %v259_v8, %s7460_s23  ;;  %12042 = vst [vmem:[#allocation14_spill] sm:$0xff] %v7796_v51 }
  0x64   : > { %222 = vst.msk [vmem:[#allocation2 + $0x28] sm:$0x3] %vm218_vm1, %v11868_v0  ;;  %219 = vst.msk [vmem:[#allocation2 + $0x10] sm:$0x3] %vm218_vm1, %v11868_v0 }
  0x65   : > { %225 = vst.msk [vmem:[#allocation2 + $0x40] sm:$0x3] %vm218_vm1, %v11868_v0  ;;  %228 = vst.msk [vmem:[#allocation2 + $0x58] sm:$0x3] %vm218_vm1, %v11868_v0 }
  0x66   : > { %231 = vst.msk [vmem:[#allocation3 + $0x10] sm:$0x3] %vm218_vm1, %v11868_v0  ;;  %234 = vst.msk [vmem:[#allocation3 + $0x28] sm:$0x3] %vm218_vm1, %v11868_v0 }
  0x67   : > { %237 = vst.msk [vmem:[#allocation3 + $0x40] sm:$0x3] %vm218_vm1, %v11868_v0  ;;  %240 = vst.msk [vmem:[#allocation3 + $0x58] sm:$0x3] %vm218_vm1, %v11868_v0 }
  0x68   : > { %243 = vst.msk [vmem:[#allocation3 + $0x70] sm:$0x3] %vm218_vm1, %v11868_v0  ;;  %246 = vst.msk [vmem:[#allocation3 + $0x88] sm:$0x3] %vm218_vm1, %v11868_v0 }
  0x69   : > { %249 = vst.msk [vmem:[#allocation3 + $0xa0] sm:$0x3] %vm218_vm1, %v11868_v0  ;;  %252 = vst.msk [vmem:[#allocation3 + $0xb8] sm:$0x3] %vm218_vm1, %v11868_v0  ;;  %vm6420_vm1 = vcmask 588800  }
  0xc9   : > { %v274_v9 = vpop.permute.xlu1 %273  ;;  %v270_v10 = vpop.permute.xlu0 %269 }
  0xca   : > { %296 = vst.msk [vmem:[#allocation2 + $0x19] sm:$0xff] %vm293_vm2, %v274_v9  ;;  %294 = vst.msk [vmem:[#allocation2 + $0x1] sm:$0xff] %vm293_vm2, %v270_v10 }
  0xcd   : > { %v276_v11 = vpop.permute.xlu1 %275  ;;  %v272_v12 = vpop.permute.xlu0 %271 }
  0xce   : > { %297 = vst.msk [vmem:[#allocation2 + $0x21] sm:$0xff] %vm293_vm2, %v276_v11  ;;  %295 = vst.msk [vmem:[#allocation2 + $0x9] sm:$0xff] %vm293_vm2, %v272_v12 }
  0xd1   : > { %v280_v13 = vpop.permute.xlu1 %279  ;;  %v278_v14 = vpop.permute.xlu0 %277  ;;  %v7745_v29 = vld [vmem:[#allocation2] sm:$0xff]  ;;  %v7793_v50 = vld [vmem:[#allocation2 + $0x18] sm:$0xff] }
  0xd2   : > { %299 = vst.msk [vmem:[#allocation2 + $0x39] sm:$0xff] %vm293_vm2, %v280_v13  ;;  %298 = vst.msk [vmem:[#allocation2 + $0x31] sm:$0xff] %vm293_vm2, %v278_v14  ;;  %v1695_v11 = vrot.slane %v7745_v29, 2  ;;  %v1700_v25 = vrot.slane %v7793_v50, 2 }
  0xd5   : > { %v284_v15 = vpop.permute.xlu1 %283  ;;  %v282_v16 = vpop.permute.xlu0 %281  ;;  %v7721_v17 = vld [vmem:[#allocation2 + $0x20] sm:$0xff]  ;;  %v7723_v18 = vld [vmem:[#allocation2 + $0x8] sm:$0xff]  ;;  %v7725_v19 = vld [vmem:[#allocation2 + $0x10] sm:$0x3] }
  0xd6   : > { %301 = vst.msk [vmem:[#allocation2 + $0x51] sm:$0xff] %vm293_vm2, %v284_v15  ;;  %300 = vst.msk [vmem:[#allocation2 + $0x49] sm:$0xff] %vm293_vm2, %v282_v16  ;;  %541 = vrot.lane.b32.xlu0 %v7721_v17, %s7461_s26  ;;  %537 = vrot.lane.b32.xlu1 %v7723_v18, %s7461_s26  ;;  %v1696_v20 = vrot.slane %v7723_v18, 2  ;;  %v1698_v21 = vrot.slane %v7725_v19, 2  ;;  %v7735_v22 = vld [vmem:[#allocation2 + $0x28] sm:$0x3] }
  0xd7   : > { %v1701_v32 = vrot.slane %v7721_v17, 2  ;;  %v1703_v33 = vrot.slane %v7735_v22, 2  ;;  %v1003_v41 = vrot.slane %v7725_v19, 1 }
  0xd8   : > { %v7758_v36 = vsel %vm1694_vm3, %v1696_v20, %v1698_v21  ;;  %v7880_v14 = vsel %vm1694_vm3, %v1695_v11, %v1696_v20 }
  0xd9   : > { %v7737_v23 = vld [vmem:[#allocation2 + $0x38] sm:$0xff]  ;;  %v7739_v24 = vld [vmem:[#allocation2 + $0x30] sm:$0xff]  ;;  %v7741_v28 = vld [vmem:[#allocation2 + $0x40] sm:$0x3]  ;;  %v7788_v48 = vsel %vm1694_vm3, %v1701_v32, %v1703_v33  ;;  %v7902_v27 = vsel %vm1694_vm3, %v1700_v25, %v1701_v32 }
  0xda   : > { %545 = vrot.lane.b32.xlu1 %v7737_v23, %s7461_s26  ;;  %v1706_v30 = vrot.slane %v7737_v23, 2  ;;  %v1708_v31 = vrot.slane %v7741_v28, 2  ;;  %v314_v34 = vcombine.low %v7745_v29, %v7739_v24  ;;  %v315_v35 = vcombine.high %v7745_v29, %v7739_v24 }
  0xdb   : > { %v382_v38 = vcombine.low %v7723_v18, %v7737_v23  ;;  %v383_v39 = vcombine.high %v7723_v18, %v7737_v23 }
  0xdc   : > { %v7763_v37 = vsel %vm1694_vm3, %v1706_v30, %v1708_v31  ;;  %v7829_v60 = vrot.slane %v314_v34, %v7796_v51  ;;  %v7837_v63 = vrot.slane %v315_v35, %v7796_v51  ;;  %v1705_v31 = vrot.slane %v7739_v24, 2 }
  0xdd   : > { %v7769_v40 = vld [vmem:[#allocation2 + $0x50] sm:$0xff]  ;;  %v1791_v43 = vcombine.low %v7758_v36, %v7763_v37  ;;  %v1792_v44 = vcombine.high %v7758_v36, %v7763_v37  ;;  %v7777_v45 = vld [vmem:[#allocation2 + $0x58] sm:$0x3]  ;;  %v7812_v56 = vld [vmem:[#allocation2 + $0x48] sm:$0xff]  ;;  %v7847_v4 = vrot.slane %v382_v38, %v7796_v51  ;;  %v7872_v12 = vrot.slane %v383_v39, %v7796_v51 }
  0xde   : > { %549 = vrot.lane.b32.xlu0 %v7769_v40, %s7461_s26  ;;  %535 = vrot.lane.b32.xlu1 %v7745_v29, %s7461_s26  ;;  %v1711_v46 = vrot.slane %v7769_v40, 2  ;;  %v1713_v47 = vrot.slane %v7777_v45, 2  ;;  %v330_v58 = vcombine.low %v7793_v50, %v7812_v56  ;;  %v331_v59 = vcombine.high %v7793_v50, %v7812_v56 }
  0xdf   : > { %v7807_v54 = vrot.slane %v1791_v43, %v7796_v51  ;;  %v398_v62 = vcombine.low %v7721_v17, %v7769_v40  ;;  %v399_v10 = vcombine.high %v7721_v17, %v7769_v40  ;;  %v7895_v20 = vrot.slane %v1792_v44, %v7796_v51 }
  0xe0   : > { %v7791_v49 = vsel %vm1694_vm3, %v1711_v46, %v1713_v47  ;;  %v7832_v61 = vrot.slane %v330_v58, %v7796_v51  ;;  %v7840_v1 = vrot.slane %v331_v59, %v7796_v51  ;;  %v7916_v35 = vsel %vm1694_vm3, %v1705_v31, %v1706_v30 }
  0xe1   : > { %v1807_v52 = vcombine.low %v7788_v48, %v7791_v49  ;;  %v1808_v53 = vcombine.high %v7788_v48, %v7791_v49  ;;  %v7850_v5 = vrot.slane %v398_v62, %v7796_v51  ;;  %v7875_v13 = vrot.slane %v399_v10, %v7796_v51 }
  0xe2   : > { %539 = vrot.lane.b32.xlu0 %v7793_v50, %s7461_s26  ;;  %543 = vrot.lane.b32.xlu1 %v7739_v24, %s7461_s26  ;;  %v347_v2 = vcombine.high %v7829_v60, %v7832_v61  ;;  %v346_v3 = vcombine.low %v7829_v60, %v7832_v61  ;;  %v362_v6 = vcombine.low %v7837_v63, %v7840_v1  ;;  %v1710_v32 = vrot.slane %v7812_v56, 2 }
  0xe3   : > { %v7810_v55 = vrot.slane %v1807_v52, %v7796_v51  ;;  %v363_v7 = vcombine.high %v7837_v63, %v7840_v1  ;;  %v414_v8 = vcombine.low %v7847_v4, %v7850_v5  ;;  %v415_v9 = vcombine.high %v7847_v4, %v7850_v5 }
  0xe4   : > { %v7883_v15 = vrot.slane %v1808_v53, %v7796_v51  ;;  %v430_v16 = vcombine.low %v7872_v12, %v7875_v13  ;;  %v431_v21 = vcombine.high %v7872_v12, %v7875_v13  ;;  %v7924_v38 = vsel %vm1694_vm3, %v1710_v32, %v1711_v46 }
  0xe5   : > { %v1001_v39 = vrot.slane %v7723_v18, 1  ;;  %v1006_v30 = vrot.slane %v7721_v17, 1  ;;  %v1008_v44 = vrot.slane %v7735_v22, 1  ;;  %v1011_v46 = vrot.slane %v7737_v23, 1 }
  0xe6   : > { %547 = vrot.lane.b32.xlu0 %v7812_v56, %s7461_s26  ;;  %767 = vrot.lane.b32.xlu1 %v7723_v18, %s7463_s30  ;;  %v1013_v18 = vrot.slane %v7741_v28, 1  ;;  %v1016_v47 = vrot.slane %v7769_v40, 1  ;;  %v1018_v22 = vrot.slane %v7777_v45, 1  ;;  %v1000_v28 = vrot.slane %v7745_v29, 1 }
  0xe7   : > { %v7934_v43 = vsel %vm999_vm4, %v1001_v39, %v1003_v41  ;;  %v7944_v19 = vsel %vm999_vm4, %v1006_v30, %v1008_v44  ;;  %v1010_v45 = vrot.slane %v7739_v24, 1 }
  0xea   : > { %771 = vrot.lane.b32.xlu0 %v7721_v17, %s7463_s30  ;;  %775 = vrot.lane.b32.xlu1 %v7737_v23, %s7463_s30  ;;  %v7947_v17 = vsel %vm999_vm4, %v1011_v46, %v1013_v18  ;;  %v7956_v23 = vsel %vm999_vm4, %v1016_v47, %v1018_v22 }
  0xeb   : > { %v1112_v1 = vcombine.low %v7944_v19, %v7956_v23  ;;  %v1096_v11 = vcombine.low %v7934_v43, %v7947_v17 }
  0xed   : > { %v8062_v25 = vrot.slane %v1112_v1, %v7796_v51  ;;  %v8065_v41 = vrot.slane %v1096_v11, %v7796_v51 }
  0xee   : > { %779 = vrot.lane.b32.xlu0 %v7769_v40, %s7463_s30  ;;  %765 = vrot.lane.b32.xlu1 %v7745_v29, %s7463_s30  ;;  %v7968_v40 = vsel %vm999_vm4, %v1000_v28, %v1001_v39  ;;  %v1015_v29 = vrot.slane %v7812_v56, 1 }
  0xf2   : > { %769 = vrot.lane.b32.xlu0 %v7793_v50, %s7463_s30  ;;  %773 = vrot.lane.b32.xlu1 %v7739_v24, %s7463_s30  ;;  %v7988_v24 = vsel %vm999_vm4, %v1015_v29, %v1016_v47  ;;  %v1129_v47 = vcombine.high %v8065_v41, %v8062_v25 }
  0xf6   : > { %777 = vrot.lane.b32.xlu0 %v7812_v56, %s7463_s30  ;;  %2159 = vrot.lane.b32.xlu1 %v7880_v14, %s7463_s30 }
  0xfa   : > { %2161 = vrot.lane.b32.xlu0 %v7758_v36, %s7463_s30  ;;  %2163 = vrot.lane.b32.xlu1 %v7902_v27, %s7463_s30 }
  0xfe   : > { %2165 = vrot.lane.b32.xlu0 %v7788_v48, %s7463_s30  ;;  %2167 = vrot.lane.b32.xlu1 %v7916_v35, %s7463_s30 }
 0x102   : > { %2169 = vrot.lane.b32.xlu0 %v7763_v37, %s7463_s30  ;;  %2171 = vrot.lane.b32.xlu1 %v7924_v38, %s7463_s30 }
 0x106   : > { %2173 = vrot.lane.b32.xlu0 %v7791_v49, %s7463_s30  ;;  %1466 = vrot.lane.b32.xlu1 %v7934_v43, %s7463_s30 }
 0x10a   : > { %1470 = vrot.lane.b32.xlu0 %v7944_v19, %s7463_s30  ;;  %1474 = vrot.lane.b32.xlu1 %v7947_v17, %s7463_s30 }
 0x10e   : > { %1478 = vrot.lane.b32.xlu0 %v7956_v23, %s7463_s30  ;;  %1931 = vrot.lane.b32.xlu1 %v7758_v36, %s7461_s26  ;;  %v1005_v36 = vrot.slane %v7793_v50, 1 }
 0x112   : > { %1935 = vrot.lane.b32.xlu0 %v7788_v48, %s7461_s26  ;;  %1939 = vrot.lane.b32.xlu1 %v7763_v37, %s7461_s26  ;;  %v7977_v48 = vsel %vm999_vm4, %v1005_v36, %v1006_v30  ;;  %v7980_v37 = vsel %vm999_vm4, %v1010_v45, %v1011_v46 }
 0x113   : > { %v1044_v44 = vcombine.low %v7977_v48, %v7988_v24  ;;  %v1028_v22 = vcombine.low %v7968_v40, %v7980_v37  ;;  %v1045_v29 = vcombine.high %v7977_v48, %v7988_v24 }
 0x116   : > { %1943 = vrot.lane.b32.xlu0 %v7791_v49, %s7461_s26  ;;  %1464 = vrot.lane.b32.xlu1 %v7968_v40, %s7463_s30  ;;  %v7464_v49 = vmov 1934713408  }
 0x117   : > { %v349_v50 = vunpack.c.l.s4 %v7464_v49  ;;  %v8084_v49 = vrot.slane %v1044_v44, %v7796_v51 }
 0x119   : > { %v350_v52 = vunpack.c.0.s8 %v349_v50 }
 0x11a   : > { %1468 = vrot.lane.b32.xlu0 %v7977_v48, %s7463_s30  ;;  %1472 = vrot.lane.b32.xlu1 %v7980_v37, %s7463_s30 }
 0x11b   : > { %v8007_v53 = vsub.s32 %v350_v52, %v7771_v42 }
 0x11d   : > { %12043 = vst [vmem:[#allocation15_spill] sm:$0xff] %v8007_v53  ;;  %v8017_v56 = vrot.slane %v346_v3, %v8007_v53  ;;  %v8023_v58 = vrot.slane %v414_v8, %v8007_v53  ;;  %v361_v42 = vrot.slane %v347_v2, %v8007_v53  ;;  %v370_v3 = vrot.slane %v362_v6, %v8007_v53 }
 0x11e   : > { %1476 = vrot.lane.b32.xlu0 %v7988_v24, %s7463_s30  ;;  %1929 = vrot.lane.b32.xlu1 %v7880_v14, %s7461_s26  ;;  %v377_v60 = vrot.slane %v363_v7, %v8007_v53 }
 0x11f   : > { %12044 = vst [vmem:[#allocation16_spill] sm:$0xff] %v8017_v56  ;;  %12045 = vst [vmem:[#allocation17_spill] sm:$0xff] %v8023_v58  ;;  %v378_v59 = vcombine.high %v8017_v56, %v11868_v0  ;;  %v446_v62 = vcombine.high %v8023_v58, %v11868_v0  ;;  %v379_v61 = vcombine.high %v361_v42, %v11868_v0 }
 0x120   : > { %v380_v2 = vcombine.high %v370_v3, %v11868_v0  ;;  %v381_v6 = vcombine.high %v377_v60, %v11868_v0  ;;  %v1724_v58 = vcombine.high %v7880_v14, %v7916_v35 }
 0x121   : > { %v6690_v8 = vpack.i.bf16 %v446_v62, %v378_v59  ;;  %v8090_v59 = vrot.slane %v1129_v47, %v8007_v53  ;;  %v8093_v62 = vrot.slane %v1028_v22, %v7796_v51 }
 0x122   : > { %1933 = vrot.lane.b32.xlu0 %v7902_v27, %s7461_s26  ;;  %1937 = vrot.lane.b32.xlu1 %v7916_v35, %s7461_s26 }
 0x126   : > { %1941 = vrot.lane.b32.xlu0 %v7924_v38, %s7461_s26  ;;  %1236 = vrot.lane.b32.xlu1 %v7934_v43, %s7461_s26 }
 0x12a   : > { %1240 = vrot.lane.b32.xlu0 %v7944_v19, %s7461_s26  ;;  %1244 = vrot.lane.b32.xlu1 %v7947_v17, %s7461_s26 }
 0x12e   : > { %1248 = vrot.lane.b32.xlu0 %v7956_v23, %s7461_s26  ;;  %1234 = vrot.lane.b32.xlu1 %v7968_v40, %s7461_s26 }
 0x132   : > { %1238 = vrot.lane.b32.xlu0 %v7977_v48, %s7461_s26  ;;  %1242 = vrot.lane.b32.xlu1 %v7980_v37, %s7461_s26 }
 0x136   : > { %1246 = vrot.lane.b32.xlu0 %v7988_v24, %s7461_s26  ;;  %455 = vrot.lane.b32.xlu1 %v361_v42, %s7465_s28 }
 0x13a   : > { %463 = vrot.lane.b32.xlu1 %v370_v3, %s7466_s6  ;;  %6691 = vrot.lane.b32.xlu0 %v6690_v8, %s7467_s29 }
 0x13e   : > { %471 = vrot.lane.b32.xlu1 %v377_v60, %s7468_s11  ;;  %459 = vrot.lane.b32.xlu0 %v379_v61, %s7469_s17  ;;  %v1029_v60 = vcombine.high %v7968_v40, %v7980_v37 }
 0x140   : > { %v8118_v44 = vrot.slane %v1029_v60, %v7796_v51 }
 0x142   : > { %467 = vrot.lane.b32.xlu0 %v380_v2, %s7470_s9  ;;  %v8100_v2 = vrot.slane %v1045_v29, %v7796_v51 }
 0x146   : > { %475 = vrot.lane.b32.xlu0 %v381_v6, %s7471_s19  ;;  %v1061_v6 = vcombine.high %v8093_v62, %v8084_v49 }
 0x148   : > { %v538_v63 = vpop.permute.xlu1 %537  ;;  %v542_v7 = vpop.permute.xlu0 %541 }
 0x14c   : > { %v546_v10 = vpop.permute.xlu1 %545 }
 0x14d   : > { %v627_v31 = vcombine.low %v538_v63, %v546_v10 }
 0x14f   : > { %v8070_v46 = vrot.slane %v627_v31, %v7796_v51 }
 0x150   : > { %v550_v32 = vpop.permute.xlu0 %549  ;;  %v536_v39 = vpop.permute.xlu1 %535 }
 0x151   : > { %v643_v30 = vcombine.low %v542_v7, %v550_v32  ;;  %v644_v37 = vcombine.high %v542_v7, %v550_v32  ;;  %v8130_v7 = vrot.slane %v1061_v6, %v8007_v53  ;;  %v1076_v32 = vcombine.low %v8118_v44, %v8100_v2 }
 0x153   : > { %v8073_v18 = vrot.slane %v643_v30, %v7796_v51  ;;  %v8150_v6 = vrot.slane %v1076_v32, %v8007_v53 }
 0x154   : > { %v540_v28 = vpop.permute.xlu0 %539  ;;  %v544_v45 = vpop.permute.xlu1 %543 }
 0x155   : > { %v660_v36 = vcombine.high %v8070_v46, %v8073_v18  ;;  %v559_v50 = vcombine.low %v536_v39, %v544_v45  ;;  %v560_v52 = vcombine.high %v536_v39, %v544_v45  ;;  %v628_v45 = vcombine.high %v538_v63, %v546_v10 }
 0x157   : > { %v8087_v42 = vrot.slane %v660_v36, %v8007_v53  ;;  %v8105_v1 = vrot.slane %v559_v50, %v7796_v51  ;;  %v8108_v11 = vrot.slane %v560_v52, %v7796_v51  ;;  %v1097_v50 = vcombine.high %v7934_v43, %v7947_v17 }
 0x158   : > { %v548_v3 = vpop.permute.xlu0 %547  ;;  %v768_v8 = vpop.permute.xlu1 %767  ;;  %v8137_v52 = vrot.slane %v644_v37, %v7796_v51 }
 0x159   : > { %v575_v48 = vcombine.low %v540_v28, %v548_v3  ;;  %v576_v24 = vcombine.high %v540_v28, %v548_v3  ;;  %v6695_v61 = vpack.i.bf16 %v8090_v59, %v8087_v42  ;;  %v1113_v28 = vcombine.high %v7944_v19, %v7956_v23 }
 0x15a   : > { %v1111_v37 = vrot.slane %v1097_v50, %v7796_v51 }
 0x15b   : > { %v8111_v31 = vrot.slane %v575_v48, %v7796_v51  ;;  %v8114_v40 = vrot.slane %v576_v24, %v7796_v51  ;;  %6696 = vrot.lane.b32.xlu1 %v6695_v61, %s7465_s28  ;;  %v1127_v48 = vrot.slane %v1113_v28, %v7796_v51  ;;  %v642_v24 = vrot.slane %v628_v45, %v7796_v51 }
 0x15c   : > { %v772_v39 = vpop.permute.xlu0 %771  ;;  %v776_v30 = vpop.permute.xlu1 %775 }
 0x15d   : > { %v592_v47 = vcombine.high %v8105_v1, %v8111_v31  ;;  %v607_v22 = vcombine.low %v8108_v11, %v8114_v40  ;;  %v857_v36 = vcombine.low %v768_v8, %v776_v30  ;;  %v858_v61 = vcombine.high %v768_v8, %v776_v30 }
 0x15e   : > { %v8161_v30 = vrot.slane %v415_v9, %v8007_v53  ;;  %v1144_v45 = vcombine.low %v1111_v37, %v1127_v48 }
 0x15f   : > { %v8127_v29 = vrot.slane %v592_v47, %v8007_v53  ;;  %v8142_v10 = vrot.slane %v607_v22, %v8007_v53  ;;  %v865_v43 = vrot.slane %v857_v36, %v7796_v51  ;;  %v872_v36 = vrot.slane %v858_v61, %v7796_v51 }
 0x160   : > { %v780_v3 = vpop.permute.xlu0 %779  ;;  %v766_v60 = vpop.permute.xlu1 %765 }
 0x161   : > { %v873_v19 = vcombine.low %v772_v39, %v780_v3  ;;  %v874_v23 = vcombine.high %v772_v39, %v780_v3  ;;  %v6700_v63 = vpack.i.bf16 %v8130_v7, %v8127_v29  ;;  %v675_v39 = vcombine.low %v642_v24, %v8137_v52 }
 0x162   : > { %v6715_v8 = vpack.i.bf16 %v8150_v6, %v8142_v10 }
 0x163   : > { %v881_v17 = vrot.slane %v873_v19, %v7796_v51  ;;  %6701 = vrot.lane.b32.xlu1 %v6700_v63, %s7465_s28  ;;  %v888_v28 = vrot.slane %v874_v23, %v7796_v51  ;;  %v8171_v57 = vrot.slane %v675_v39, %v8007_v53 }
 0x164   : > { %v770_v47 = vpop.permute.xlu0 %769  ;;  %v774_v22 = vpop.permute.xlu1 %773 }
 0x165   : > { %v890_v3 = vcombine.high %v865_v43, %v881_v17  ;;  %v789_v32 = vcombine.low %v766_v60, %v774_v22  ;;  %v790_v50 = vcombine.high %v766_v60, %v774_v22  ;;  %v905_v34 = vcombine.low %v872_v36, %v888_v28 }
 0x166   : > { %v906_v61 = vcombine.high %v872_v36, %v888_v28  ;;  %v8176_v60 = vrot.slane %v1144_v45, %v8007_v53 }
 0x167   : > { %6716 = vrot.lane.b32.xlu1 %v6715_v8, %s7466_s6  ;;  %v8166_v19 = vrot.slane %v890_v3, %v8007_v53  ;;  %v797_v22 = vrot.slane %v789_v32, %v7796_v51  ;;  %v8180_v3 = vrot.slane %v790_v50, %v7796_v51 }
 0x168   : > { %v778_v23 = vpop.permute.xlu0 %777  ;;  %v8168_v63 = vpop.permute.xlu1 %2159  ;;  %v6710_v45 = vpack.i.bf16 %v8176_v60, %v8171_v57 }
 0x169   : > { %v805_v4 = vcombine.low %v770_v47, %v778_v23  ;;  %v806_v5 = vcombine.high %v770_v47, %v778_v23  ;;  %v6705_v9 = vpack.i.bf16 %v8166_v19, %v8161_v30  ;;  %12046 = vst [vmem:[#allocation18_spill] sm:$0xff] %v8180_v3  ;;  %v676_v47 = vcombine.high %v642_v24, %v8137_v52 }
 0x16a   : > { %v889_v23 = vcombine.low %v865_v43, %v881_v17  ;;  %v8205_v24 = vrot.slane %v430_v16, %v8007_v53  ;;  %v8208_v43 = vrot.slane %v906_v61, %v8007_v53  ;;  %v608_v16 = vcombine.high %v8108_v11, %v8114_v40 }
 0x16b   : > { %v813_v8 = vrot.slane %v805_v4, %v7796_v51  ;;  %v8184_v39 = vrot.slane %v806_v5, %v7796_v51  ;;  %6706 = vrot.lane.b32.xlu0 %v6705_v9, %s7465_s28  ;;  %v8197_v4 = vrot.slane %v905_v34, %v8007_v53  ;;  %v1145_v5 = vcombine.high %v1111_v37, %v1127_v48 }
 0x16c   : > { %v8188_v33 = vpop.permute.xlu0 %2161  ;;  %v8190_v28 = vpop.permute.xlu1 %2163  ;;  %v8221_v48 = vrot.slane %v431_v21, %v8007_v53  ;;  %v690_v61 = vrot.slane %v676_v47, %v8007_v53  ;;  %v1077_v11 = vcombine.high %v8118_v44, %v8100_v2  ;;  %v659_v47 = vcombine.low %v8070_v46, %v8073_v18 }
 0x16d   : > { %12047 = vst [vmem:[#allocation19_spill] sm:$0xff] %v8184_v39  ;;  %v821_v36 = vcombine.low %v797_v22, %v813_v8  ;;  %v822_v50 = vcombine.high %v797_v22, %v813_v8  ;;  %v6720_v37 = vpack.i.bf16 %v8197_v4, %v8205_v24  ;;  %v8230_v22 = vrot.slane %v889_v23, %v8007_v53 }
 0x16e   : > { %v6735_v12 = vpack.i.bf16 %v8208_v43, %v8221_v48  ;;  %v8236_v13 = vrot.slane %v1145_v5, %v8007_v53  ;;  %v8257_v44 = vrot.slane %v1077_v11, %v8007_v53  ;;  %v1128_v46 = vcombine.low %v8065_v41, %v8062_v25 }
 0x16f   : > { %6711 = vrot.lane.b32.xlu0 %v6710_v45, %s7466_s6  ;;  %v836_v52 = vrot.slane %v822_v50, %v8007_v53  ;;  %v8211_v17 = vrot.slane %v821_v36, %v8007_v53  ;;  %12049 = vst [vmem:[#allocation21_spill] sm:$0xff] %v8230_v22  ;;  %v921_v45 = vcombine.high %v8230_v22, %v11868_v0 }
 0x170   : > { %v8213_v9 = vpop.permute.xlu0 %2165  ;;  %v8215_v34 = vpop.permute.xlu1 %2167  ;;  %v6725_v23 = vpack.i.bf16 %v8236_v13, %v690_v61  ;;  %v8253_v36 = vrot.slane %v608_v16, %v8007_v53  ;;  %v624_v50 = vcombine.high %v8127_v29, %v11868_v0  ;;  %v1093_v16 = vcombine.high %v8130_v7, %v11868_v0 }
 0x171   : > { %12048 = vst [vmem:[#allocation20_spill] sm:$0xff] %v8211_v17  ;;  %930 = vrot.lane.b32.xlu1 %v836_v52, %s7465_s28  ;;  %v853_v21 = vcombine.high %v8211_v17, %v11868_v0  ;;  %v837_v29 = vcombine.low %v8180_v3, %v8184_v39  ;;  %v8277_v25 = vrot.slane %v659_v47, %v8007_v53 }
 0x172   : > { %v6760_v41 = vpack.i.bf16 %v1093_v16, %v624_v50  ;;  %v625_v7 = vcombine.high %v8142_v10, %v11868_v0  ;;  %v2183_v32 = vcombine.low %v8168_v63, %v8215_v34 }
 0x173   : > { %6721 = vrot.lane.b32.xlu0 %v6720_v37, %s7466_s6  ;;  %v6755_v2 = vpack.i.bf16 %v853_v21, %v921_v45  ;;  %v591_v37 = vcombine.low %v8105_v1, %v8111_v31  ;;  %12050 = vst [vmem:[#allocation22_spill] sm:$0xff] %v8277_v25  ;;  %v8283_v21 = vrot.slane %v1128_v46, %v8007_v53 }
 0x174   : > { %v8242_v40 = vpop.permute.xlu0 %2169  ;;  %v8244_v8 = vpop.permute.xlu1 %2171  ;;  %v1060_v1 = vcombine.low %v8093_v62, %v8084_v49  ;;  %v845_v47 = vrot.slane %v837_v29, %v8007_v53  ;;  %v691_v10 = vcombine.high %v8277_v25, %v11868_v0  ;;  %v449_v25 = vcombine.high %v8221_v48, %v11868_v0 }
 0x175   : > { %6736 = vrot.lane.b32.xlu1 %v6735_v12, %s7468_s11  ;;  %v6730_v12 = vpack.i.bf16 %v8257_v44, %v8253_v36  ;;  %12051 = vst [vmem:[#allocation23_spill] sm:$0xff] %v8283_v21  ;;  %v8298_v45 = vrot.slane %v591_v37, %v8007_v53  ;;  %v1160_v62 = vcombine.high %v8283_v21, %v11868_v0 }
 0x176   : > { %v2184_v48 = vcombine.high %v8168_v63, %v8215_v34  ;;  %v1740_v21 = vcombine.high %v7902_v27, %v7924_v38 }
 0x177   : > { %6726 = vrot.lane.b32.xlu0 %v6725_v23, %s7468_s11  ;;  %v1094_v23 = vcombine.high %v8150_v6, %v11868_v0  ;;  %12052 = vst [vmem:[#allocation24_spill] sm:$0xff] %v8298_v45  ;;  %v6740_v6 = vpack.i.bf16 %v1160_v62, %v691_v10  ;;  %v623_v16 = vcombine.high %v8298_v45, %v11868_v0 }
 0x178   : > { %v8263_v18 = vpop.permute.xlu0 %2173  ;;  %v8265_v5 = vpop.permute.xlu1 %1466  ;;  %v692_v10 = vcombine.high %v8087_v42, %v11868_v0  ;;  %v448_v62 = vcombine.high %v8205_v24, %v11868_v0 }
 0x179   : > { %6756 = vrot.lane.b32.xlu1 %v6755_v2, %s7467_s29  ;;  %v6775_v49 = vpack.i.bf16 %v1094_v23, %v625_v7  ;;  %v8304_v2 = vrot.slane %v1060_v1, %v8007_v53  ;;  %v2267_v37 = vcombine.low %v8213_v9, %v8263_v18  ;;  %v2251_v7 = vcombine.low %v8188_v33, %v8242_v40 }
 0x17b   : > { %6731 = vrot.lane.b32.xlu0 %v6730_v12, %s7468_s11  ;;  %12053 = vst [vmem:[#allocation25_spill] sm:$0xff] %v8304_v2  ;;  %v854_v12 = vcombine.high %v836_v52, %v11868_v0  ;;  %v1092_v29 = vcombine.high %v8304_v2, %v11868_v0  ;;  %v8340_v26 = vrot.slane %v2267_v37, %v7796_v51 }
 0x17c   : > { %v8287_v31 = vpop.permute.xlu0 %1470  ;;  %v8289_v11 = vpop.permute.xlu1 %1474 }
 0x17d   : > { %6761 = vrot.lane.b32.xlu1 %v6760_v41, %s7469_s17  ;;  %v923_v41 = vcombine.high %v8197_v4, %v11868_v0  ;;  %v6745_v52 = vpack.i.bf16 %v1092_v29, %v623_v16  ;;  %v1161_v4 = vcombine.high %v8090_v59, %v11868_v0  ;;  %v1163_v59 = vcombine.high %v8236_v13, %v11868_v0 }
 0x17e   : > { %v447_v13 = vcombine.high %v8161_v30, %v11868_v0  ;;  %v693_v30 = vcombine.high %v8171_v57, %v11868_v0 }
 0x17f   : > { %938 = vrot.lane.b32.xlu0 %v845_v47, %s7466_s6  ;;  %v6780_v42 = vpack.i.bf16 %v923_v41, %v448_v62  ;;  %v6750_v29 = vpack.i.bf16 %v1161_v4, %v692_v10  ;;  %v1556_v62 = vcombine.low %v8265_v5, %v8289_v11 }
 0x180   : > { %v8306_v50 = vpop.permute.xlu0 %1478  ;;  %v8308_v46 = vpop.permute.xlu1 %1931 }
 0x181   : > { %6776 = vrot.lane.b32.xlu1 %v6775_v49, %s7470_s9  ;;  %v2199_v49 = vcombine.low %v8190_v28, %v8244_v8  ;;  %v1572_v41 = vcombine.low %v8287_v31, %v8306_v50  ;;  %v8395_v22 = vrot.slane %v1556_v62, %v7796_v51  ;;  %v626_v62 = vcombine.high %v8253_v36, %v11868_v0 }
 0x182   : > { %v924_v36 = vcombine.high %v8208_v43, %v11868_v0  ;;  %v2200_v43 = vcombine.high %v8190_v28, %v8244_v8 }
 0x183   : > { %6741 = vrot.lane.b32.xlu0 %v6740_v6, %s7467_s29  ;;  %v694_v6 = vcombine.high %v690_v61, %v11868_v0  ;;  %v922_v61 = vcombine.high %v8166_v19, %v11868_v0  ;;  %v8355_v37 = vrot.slane %v2199_v49, %v7796_v51  ;;  %v8367_v19 = vrot.slane %v2183_v32, %v7796_v51 }
 0x184   : > { %v8323_v1 = vpop.permute.xlu0 %1935  ;;  %v8325_v23 = vpop.permute.xlu1 %1939 }
 0x185   : > { %934 = vrot.lane.b32.xlu1 %v854_v12, %s7469_s17  ;;  %v8344_v12 = vrot.slane %v2251_v7, %v7796_v51  ;;  %v2021_v7 = vcombine.low %v8308_v46, %v8325_v23  ;;  %v6785_v10 = vpack.i.bf16 %v1163_v59, %v694_v6  ;;  %v2216_v32 = vcombine.high %v8367_v19, %v8355_v37 }
 0x187   : > { %6746 = vrot.lane.b32.xlu0 %v6745_v52, %s7467_s29  ;;  %v2284_v49 = vcombine.high %v8344_v12, %v8340_v26  ;;  %v8389_v59 = vrot.slane %v2021_v7, %v7796_v51 }
 0x188   : > { %v8346_v16 = vpop.permute.xlu0 %1943  ;;  %v8348_v24 = vpop.permute.xlu1 %1464 }
 0x189   : > { %v2037_v52 = vcombine.low %v8323_v1, %v8346_v16  ;;  %6781 = vrot.lane.b32.xlu1 %v6780_v42, %s7470_s9  ;;  %v8386_v42 = vrot.slane %v1572_v41, %v7796_v51  ;;  %v855_v41 = vcombine.high %v845_v47, %v11868_v0  ;;  %v8402_v45 = vrot.slane %v2284_v49, %v8007_v53 }
 0x18b   : > { %v8374_v4 = vrot.slane %v2037_v52, %v7796_v51  ;;  %6751 = vrot.lane.b32.xlu0 %v6750_v29, %s7469_s17  ;;  %v6765_v52 = vpack.i.bf16 %v922_v61, %v447_v13  ;;  %v1162_v29 = vcombine.high %v8176_v60, %v11868_v0  ;;  %v1589_v60 = vcombine.high %v8395_v22, %v8386_v42 }
 0x18c   : > { %v8377_v17 = vpop.permute.xlu0 %1468  ;;  %v8379_v6 = vpop.permute.xlu1 %1472  ;;  %v8412_v13 = vrot.slane %v2216_v32, %v8007_v53 }
 0x18d   : > { %6786 = vrot.lane.b32.xlu1 %v6785_v10, %s7471_s19  ;;  %v2054_v57 = vcombine.high %v8389_v59, %v8374_v4  ;;  %v6770_v61 = vpack.i.bf16 %v1162_v29, %v693_v30  ;;  %v2268_v29 = vcombine.high %v8213_v9, %v8263_v18 }
 0x18e   : > { %v6800_v49 = vpack.i.bf16 %v8402_v45, %v8412_v13 }
 0x18f   : > { %6766 = vrot.lane.b32.xlu0 %v6765_v52, %s7469_s17  ;;  %v1095_v52 = vcombine.high %v8257_v44, %v11868_v0  ;;  %v8438_v44 = vrot.slane %v1589_v60, %v8007_v53  ;;  %v8461_v28 = vrot.slane %v2268_v29, %v7796_v51 }
 0x190   : > { %v8404_v7 = vpop.permute.xlu0 %1476  ;;  %v8406_v10 = vpop.permute.xlu1 %1929 }
 0x191   : > { %942 = vrot.lane.b32.xlu1 %v855_v41, %s7470_s9  ;;  %v1504_v47 = vcombine.low %v8377_v17, %v8404_v7  ;;  %v8424_v41 = vrot.slane %v2054_v57, %v8007_v53  ;;  %v6790_v2 = vpack.i.bf16 %v1095_v52, %v626_v62  ;;  %v2252_v57 = vcombine.high %v8188_v33, %v8242_v40 }
 0x192   : > { %v6795_v40 = vpack.i.bf16 %v924_v36, %v449_v25  ;;  %v2038_v52 = vcombine.high %v8323_v1, %v8346_v16  ;;  %v1573_v1 = vcombine.high %v8287_v31, %v8306_v50  ;;  %v2022_v16 = vcombine.high %v8308_v46, %v8325_v23 }
 0x193   : > { %6771 = vrot.lane.b32.xlu0 %v6770_v61, %s7470_s9  ;;  %v1488_v61 = vcombine.low %v8348_v24, %v8379_v6  ;;  %v8447_v9 = vrot.slane %v1504_v47, %v7796_v51  ;;  %v6805_v60 = vpack.i.bf16 %v8424_v41, %v8438_v44  ;;  %v8470_v47 = vrot.slane %v2252_v57, %v7796_v51 }
 0x194   : > { %v8426_v30 = vpop.permute.xlu0 %1933  ;;  %v8428_v32 = vpop.permute.xlu1 %1937  ;;  %v1557_v31 = vcombine.high %v8265_v5, %v8289_v11  ;;  %v8520_v50 = vrot.slane %v2038_v52, %v7796_v51  ;;  %v8537_v5 = vrot.slane %v2022_v16, %v7796_v51 }
 0x195   : > { %6801 = vrot.lane.b32.xlu1 %v6800_v49, %s7465_s28  ;;  %v1953_v18 = vcombine.low %v8406_v10, %v8428_v32  ;;  %v8464_v8 = vrot.slane %v1488_v61, %v7796_v51  ;;  %v8473_v49 = vrot.slane %v2200_v43, %v7796_v51  ;;  %v8491_v61 = vrot.slane %v2184_v48, %v7796_v51 }
 0x196   : > { %v2299_v57 = vcombine.low %v8470_v47, %v8461_v28 }
 0x197   : > { %6791 = vrot.lane.b32.xlu0 %v6790_v2, %s7471_s19  ;;  %v1521_v63 = vcombine.high %v8464_v8, %v8447_v9  ;;  %v8478_v34 = vrot.slane %v1953_v18, %v7796_v51  ;;  %v1723_v18 = vcombine.low %v7880_v14, %v7916_v35 }
 0x198   : > { %v8454_v62 = vpop.permute.xlu0 %1941  ;;  %v8456_v33 = vpop.permute.xlu1 %1236  ;;  %v8528_v56 = vrot.slane %v2299_v57, %v8007_v53  ;;  %v8553_v57 = vrot.slane %v1740_v21, %v7796_v51 }
 0x199   : > { %v1969_v2 = vcombine.low %v8426_v30, %v8454_v62  ;;  %6806 = vrot.lane.b32.xlu1 %v6805_v60, %s7465_s28  ;;  %v1739_v60 = vcombine.low %v7902_v27, %v7924_v38  ;;  %v8534_v38 = vrot.slane %v1573_v1, %v7796_v51  ;;  %v8540_v11 = vrot.slane %v1723_v18, %v7796_v51 }
 0x19a   : > { %12056 = vst [vmem:[#allocation28_spill] sm:$0xff] %v8528_v56  ;;  %v2069_v18 = vcombine.low %v8537_v5, %v8520_v50  ;;  %v1970_v1 = vcombine.high %v8426_v30, %v8454_v62  ;;  %v1954_v30 = vcombine.high %v8406_v10, %v8428_v32 }
 0x19b   : > { %v8481_v25 = vrot.slane %v1969_v2, %v7796_v51  ;;  %6796 = vrot.lane.b32.xlu0 %v6795_v40, %s7471_s19  ;;  %v2231_v40 = vcombine.low %v8491_v61, %v8473_v49  ;;  %v8510_v2 = vrot.slane %v1521_v63, %v8007_v53  ;;  %v8531_v27 = vrot.slane %v1739_v60, %v7796_v51 }
 0x19c   : > { %v8486_v36 = vpop.permute.xlu0 %1240  ;;  %v8488_v29 = vpop.permute.xlu1 %1244  ;;  %v8556_v60 = vrot.slane %v1557_v31, %v7796_v51  ;;  %v8591_v32 = vrot.slane %v2069_v18, %v8007_v53 }
 0x19d   : > { %v1986_v43 = vcombine.high %v8478_v34, %v8481_v25  ;;  %v1326_v48 = vcombine.low %v8456_v33, %v8488_v29  ;;  %12054 = vst [vmem:[#allocation26_spill] sm:$0xff] %v8510_v2  ;;  %v8550_v52 = vrot.slane %v2231_v40, %v8007_v53  ;;  %v1756_v62 = vcombine.high %v8540_v11, %v8531_v27 }
 0x19e   : > { %v1604_v31 = vcombine.low %v8556_v60, %v8534_v38 }
 0x19f   : > { %v8513_v0 = vrot.slane %v1986_v43, %v8007_v53  ;;  %v8543_v14 = vrot.slane %v1326_v48, %v7796_v51  ;;  %12057 = vst [vmem:[#allocation29_spill] sm:$0xff] %v8550_v52  ;;  %v6815_v21 = vpack.i.bf16 %v8528_v56, %v8550_v52  ;;  %v12058_v52 = vcombine.high %v7807_v54, %v7810_v55 }
 0x1a0   : > { %v1249_v46 = vpop.permute.xlu0 %1248  ;;  %v1235_v23 = vpop.permute.xlu1 %1234  ;;  %v8603_v18 = vrot.slane %v1604_v31, %v8007_v53 }
 0x1a1   : > { %12055 = vst [vmem:[#allocation27_spill] sm:$0xff] %v8513_v0  ;;  %v1342_v63 = vcombine.low %v8486_v36, %v1249_v46  ;;  %v6810_v43 = vpack.i.bf16 %v8513_v0, %v8510_v2  ;;  %v8585_v56 = vrot.slane %v12058_v52, %v8007_v53 }
 0x1a3   : > { %v8546_v35 = vrot.slane %v1342_v63, %v7796_v51  ;;  %6811 = vrot.lane.b32.xlu0 %v6810_v43, %s7465_s28  ;;  %v8563_v63 = vrot.slane %v1724_v58, %v7796_v51  ;;  %v1505_v43 = vcombine.high %v8377_v17, %v8404_v7  ;;  %v1489_v17 = vcombine.high %v8348_v24, %v8379_v6 }
 0x1a4   : > { %v1239_v16 = vpop.permute.xlu0 %1238  ;;  %v1243_v48 = vpop.permute.xlu1 %1242  ;;  %v1984_v7 = vrot.slane %v1970_v1, %v7796_v51  ;;  %v1968_v24 = vrot.slane %v1954_v30, %v7796_v51  ;;  %v1327_v6 = vcombine.high %v8456_v33, %v8488_v29  ;;  %v6825_v33 = vpack.i.bf16 %v8591_v32, %v8603_v18 }
 0x1a5   : > { %v1359_v40 = vcombine.high %v8543_v14, %v8546_v35  ;;  %v1258_v58 = vcombine.low %v1235_v23, %v1243_v48  ;;  %v1259_v39 = vcombine.high %v1235_v23, %v1243_v48  ;;  %v1771_v23 = vcombine.low %v8563_v63, %v8553_v57 }
 0x1a6   : > { %v1343_v48 = vcombine.high %v8486_v36, %v1249_v46  ;;  %v1519_v2 = vrot.slane %v1505_v43, %v7796_v51  ;;  %v1503_v43 = vrot.slane %v1489_v17, %v7796_v51  ;;  %v2001_v30 = vcombine.low %v1968_v24, %v1984_v7 }
 0x1a7   : > { %6816 = vrot.lane.b32.xlu0 %v6815_v21, %s7466_s6  ;;  %v8579_v3 = vrot.slane %v1359_v40, %v8007_v53  ;;  %v8606_v1 = vrot.slane %v1258_v58, %v7796_v51  ;;  %v1273_v36 = vrot.slane %v1259_v39, %v7796_v51  ;;  %v2002_v29 = vcombine.high %v1968_v24, %v1984_v7 }
 0x1a8   : > { %v1247_v10 = vpop.permute.xlu0 %1246  ;;  %v1357_v31 = vrot.slane %v1343_v48, %v7796_v51  ;;  %v1341_v17 = vrot.slane %v1327_v6, %v7796_v51  ;;  %v2300_v24 = vcombine.high %v8470_v47, %v8461_v28  ;;  %v2053_v47 = vcombine.low %v8389_v59, %v8374_v4 }
 0x1a9   : > { %v1274_v40 = vcombine.low %v1239_v16, %v1247_v10  ;;  %v1275_v21 = vcombine.high %v1239_v16, %v1247_v10  ;;  %v6820_v52 = vpack.i.bf16 %v8585_v56, %v8579_v3  ;;  %v1536_v10 = vcombine.low %v1503_v43, %v1519_v2 }
 0x1aa   : > { %v1375_v0 = vcombine.high %v1341_v17, %v1357_v31  ;;  %v8644_v6 = vrot.slane %v2002_v29, %v8007_v53  ;;  %v8661_v29 = vrot.slane %v2300_v24, %v8007_v53  ;;  %v1772_v4 = vcombine.high %v8563_v63, %v8553_v57 }
 0x1ab   : > { %v8610_v46 = vrot.slane %v1274_v40, %v7796_v51  ;;  %v1289_v16 = vrot.slane %v1275_v21, %v7796_v51  ;;  %6821 = vrot.lane.b32.xlu0 %v6820_v52, %s7465_s28  ;;  %v8621_v40 = vrot.slane %v1756_v62, %v8007_v53  ;;  %v8624_v21 = vrot.slane %v1771_v23, %v8007_v53  ;;  %v12081_v51 = vld [vmem:[#allocation23_spill] sm:$0xff] }
 0x1ac   : > { %v1537_v52 = vcombine.high %v1503_v43, %v1519_v2  ;;  %v8637_v62 = vrot.slane %v2001_v30, %v8007_v53  ;;  %v2232_v43 = vcombine.high %v8491_v61, %v8473_v49  ;;  %v1374_v49 = vcombine.low %v1341_v17, %v1357_v31 }
 0x1ad   : > { %v1291_v58 = vcombine.high %v8606_v1, %v8610_v46  ;;  %v1306_v39 = vcombine.low %v1273_v36, %v1289_v16  ;;  %v1307_v61 = vcombine.high %v1273_v36, %v1289_v16  ;;  %v1588_v59 = vcombine.low %v8395_v22, %v8386_v42 }
 0x1ae   : > { %v8654_v28 = vrot.slane %v1537_v52, %v8007_v53  ;;  %v12059_v36 = vcombine.high %v7895_v20, %v7883_v15  ;;  %v8686_v31 = vrot.slane %v2053_v47, %v8007_v53  ;;  %v2070_v57 = vcombine.high %v8537_v5, %v8520_v50 }
 0x1af   : > { %6826 = vrot.lane.b32.xlu0 %v6825_v33, %s7466_s6  ;;  %v8629_v7 = vrot.slane %v1291_v58, %v8007_v53  ;;  %v8632_v48 = vrot.slane %v1306_v39, %v8007_v53  ;;  %v8649_v33 = vrot.slane %v1536_v10, %v8007_v53  ;;  %v8666_v39 = vrot.slane %v1375_v0, %v8007_v53 }
 0x1b0   : > { %v6860_v58 = vpack.i.bf16 %v8644_v6, %v8654_v28  ;;  %v8669_v10 = vrot.slane %v2232_v43, %v8007_v53  ;;  %v8681_v16 = vrot.slane %v12059_v36, %v8007_v53  ;;  %v2283_v0 = vcombine.low %v8344_v12, %v8340_v26 }
 0x1b1   : > { %v6830_v2 = vpack.i.bf16 %v8621_v40, %v8629_v7  ;;  %v6855_v23 = vpack.i.bf16 %v8624_v21, %v8632_v48  ;;  %v6835_v30 = vpack.i.bf16 %v8637_v62, %v8649_v33  ;;  %v1985_v42 = vcombine.low %v8478_v34, %v8481_v25 }
 0x1b2   : > { %v6840_v22 = vpack.i.bf16 %v8661_v29, %v8669_v10  ;;  %v6865_v63 = vpack.i.bf16 %v8681_v16, %v8666_v39  ;;  %v8697_v52 = vrot.slane %v1374_v49, %v8007_v53  ;;  %v8700_v26 = vrot.slane %v1307_v61, %v8007_v53 }
 0x1b3   : > { %6831 = vrot.lane.b32.xlu1 %v6830_v2, %s7465_s28  ;;  %6856 = vrot.lane.b32.xlu0 %v6855_v23, %s7466_s6  ;;  %v2215_v12 = vcombine.low %v8367_v19, %v8355_v37  ;;  %v12060_v50 = vcombine.low %v7895_v20, %v7883_v15  ;;  %v8711_v34 = vrot.slane %v1772_v4, %v8007_v53  ;;  %v12061_v37 = vmov 0.0  }
 0x1b4   : > { %v8714_v25 = vrot.slane %v1588_v59, %v8007_v53  ;;  %v1605_v17 = vcombine.high %v8556_v60, %v8534_v38  ;;  %v1520_v24 = vcombine.low %v8464_v8, %v8447_v9  ;;  %v8723_v15 = vrot.slane %v2283_v0, %v8007_v53 }
 0x1b5   : > { %v8708_v5 = vrot.slane %v12060_v50, %v8007_v53  ;;  %v8726_v20 = vrot.slane %v2070_v57, %v8007_v53  ;;  %v2085_v19 = vcombine.high %v8686_v31, %v12061_v37  ;;  %v8731_v2 = vrot.slane %v1985_v42, %v8007_v53 }
 0x1b6   : > { %v1358_v38 = vcombine.low %v8543_v14, %v8546_v35  ;;  %v6870_v8 = vpack.i.bf16 %v8711_v34, %v8700_v26  ;;  %v8740_v60 = vrot.slane %v2215_v12, %v8007_v53  ;;  %v8743_v23 = vrot.slane %v1520_v24, %v8007_v53 }
 0x1b7   : > { %6836 = vrot.lane.b32.xlu1 %v6835_v30, %s7466_s6  ;;  %6861 = vrot.lane.b32.xlu0 %v6860_v58, %s7468_s11  ;;  %12062 = vst [vmem:[#allocation30_spill] sm:$0xff] %v8731_v2  ;;  %v6845_v9 = vpack.i.bf16 %v8708_v5, %v8697_v52  ;;  %v8748_v43 = vrot.slane %v1605_v17, %v8007_v53 }
 0x1b8   : > { %12063 = vst [vmem:[#allocation31_spill] sm:$0xff] %v8743_v23  ;;  %v1620_v14 = vcombine.high %v8714_v25, %v12061_v37  ;;  %v2315_v35 = vcombine.high %v8723_v15, %v12061_v37  ;;  %v8755_v47 = vrot.slane %v1358_v38, %v8007_v53  ;;  %v2017_v61 = vcombine.high %v8731_v2, %v12061_v37 }
 0x1b9   : > { %v6850_v30 = vpack.i.bf16 %v8726_v20, %v8748_v43  ;;  %v2247_v58 = vcombine.high %v8740_v60, %v12061_v37  ;;  %v1552_v4 = vcombine.high %v8743_v23, %v12061_v37  ;;  %v12065_v59 = vcombine.low %v7807_v54, %v7810_v55  ;;  %v8783_v54 = vpop.permute.xlu1 %455  ;;  %v8785_v55 = vpop.permute.xlu0 %6691 }
 0x1ba   : > { %12064 = vst [vmem:[#allocation32_spill] sm:$0xff] %v8755_v47  ;;  %v6880_v49 = vpack.i.bf16 %v2085_v19, %v1620_v14  ;;  %v2316_v0 = vcombine.high %v8402_v45, %v12061_v37  ;;  %v1290_v57 = vcombine.low %v8606_v1, %v8610_v46  ;;  %v2248_v12 = vcombine.high %v8412_v13, %v12061_v37 }
 0x1bb   : > { %6841 = vrot.lane.b32.xlu1 %v6840_v22, %s7468_s11  ;;  %6866 = vrot.lane.b32.xlu0 %v6865_v63, %s7468_s11  ;;  %v8771_v36 = vrot.slane %v12065_v59, %v8007_v53  ;;  %v6875_v22 = vpack.i.bf16 %v2315_v35, %v2247_v58  ;;  %v6885_v42 = vpack.i.bf16 %v2017_v61, %v1552_v4  ;;  %v12069_v35 = vld [vmem:[#allocation27_spill] sm:$0xff]  ;;  %v12070_v58 = vld [vmem:[#allocation26_spill] sm:$0xff] }
 0x1bc   : > { %v1390_v63 = vcombine.high %v8755_v47, %v12061_v37  ;;  %v1755_v50 = vcombine.low %v8540_v11, %v8531_v27  ;;  %v6890_v1 = vpack.i.bf16 %v2316_v0, %v2248_v12  ;;  %v2086_v46 = vcombine.high %v8424_v41, %v12061_v37  ;;  %v12073_v12 = vld [vmem:[#allocation29_spill] sm:$0xff] }
 0x1bd   : > { %12066 = vst [vmem:[#allocation33_spill] sm:$0xff] %v8771_v36  ;;  %v1855_v45 = vcombine.high %v8771_v36, %v12061_v37  ;;  %v8794_v13 = vrot.slane %v1290_v57, %v8007_v53  ;;  %v1391_v27 = vcombine.high %v8579_v3, %v12061_v37  ;;  %v1621_v17 = vcombine.high %v8438_v44, %v12061_v37  ;;  %v8807_v41 = vpop.permute.xlu1 %463  ;;  %v8811_v3 = vpop.permute.xlu0 %459  ;;  %v12072_v57 = vld [vmem:[#allocation28_spill] sm:$0xff] }
 0x1be   : > { %v1856_v24 = vcombine.high %v8585_v56, %v12061_v37  ;;  %v8805_v19 = vrot.slane %v1755_v50, %v8007_v53  ;;  %v2087_v38 = vcombine.high %v8591_v32, %v12061_v37  ;;  %v1622_v56 = vcombine.high %v8603_v18, %v12061_v37 }
 0x1bf   : > { %6846 = vrot.lane.b32.xlu1 %v6845_v9, %s7466_s6  ;;  %6871 = vrot.lane.b32.xlu0 %v6870_v8, %s7468_s11  ;;  %12067 = vst [vmem:[#allocation34_spill] sm:$0xff] %v8794_v13  ;;  %v6895_v11 = vpack.i.bf16 %v1855_v45, %v1390_v63  ;;  %v6900_v9 = vpack.i.bf16 %v2086_v46, %v1621_v17 }
 0x1c0   : > { %12068 = vst [vmem:[#allocation35_spill] sm:$0xff] %v8805_v19  ;;  %v6920_v8 = vpack.i.bf16 %v1856_v24, %v1391_v27  ;;  %v1322_v44 = vcombine.high %v8794_v13, %v12061_v37  ;;  %v1787_v14 = vcombine.high %v8805_v19, %v12061_v37  ;;  %v2018_v32 = vcombine.high %v12069_v35, %v12061_v37 }
 0x1c1   : > { %v6925_v61 = vpack.i.bf16 %v2087_v38, %v1622_v56  ;;  %v1553_v4 = vcombine.high %v12070_v58, %v12061_v37  ;;  %v8827_v59 = vpop.permute.xlu1 %471  ;;  %v1788_v18 = vcombine.high %v8621_v40, %v12061_v37  ;;  %v8831_v0 = vpop.permute.xlu0 %467  ;;  %v2249_v50 = vcombine.high %v12073_v12, %v12061_v37 }
 0x1c2   : > { %12071 = vst [vmem:[#allocation27_spill] sm:$0xff] %v8827_v59  ;;  %v1554_v40 = vcombine.high %v8649_v33, %v12061_v37  ;;  %v2318_v46 = vcombine.high %v8661_v29, %v12061_v37  ;;  %v2250_v17 = vcombine.high %v8669_v10, %v12061_v37  ;;  %v1857_v33 = vcombine.high %v8708_v5, %v12061_v37 }
 0x1c3   : > { %6851 = vrot.lane.b32.xlu1 %v6850_v30, %s7468_s11  ;;  %6881 = vrot.lane.b32.xlu0 %v6880_v49, %s7467_s29  ;;  %v1323_v30 = vcombine.high %v8629_v7, %v12061_v37  ;;  %v6905_v49 = vpack.i.bf16 %v1787_v14, %v1322_v44  ;;  %v2019_v7 = vcombine.high %v8637_v62, %v12061_v37  ;;  %v7472_v12 = vmov 0  }
 0x1c4   : > { %v1392_v62 = vcombine.high %v8697_v52, %v12061_v37  ;;  %v2088_v52 = vcombine.high %v8726_v20, %v12061_v37  ;;  %v1623_v10 = vcombine.high %v8748_v43, %v12061_v37  ;;  %v1790_v5 = vcombine.high %v8711_v34, %v12061_v37  ;;  %2472 = vmatprep.mubr.bf16.mxu0 %v7472_v12 }
 0x1c5   : > { %v6930_v63 = vpack.i.bf16 %v1788_v18, %v1323_v30  ;;  %v1324_v20 = vcombine.high %v8632_v48, %v12061_v37  ;;  %v1789_v34 = vcombine.high %v8624_v21, %v12061_v37  ;;  %v2020_v48 = vcombine.high %v8644_v6, %v12061_v37  ;;  %6462 = vmatprep.mubr.bf16.mxu1 %v7472_v12 }
 0x1c6   : > { %v6945_v29 = vpack.i.bf16 %v1857_v33, %v1392_v62  ;;  %v6950_v14 = vpack.i.bf16 %v2088_v52, %v1623_v10  ;;  %v1555_v18 = vcombine.high %v8654_v28, %v12061_v37  ;;  %v1858_v6 = vcombine.high %v8681_v16, %v12061_v37 }
 0x1c7   : > { %6876 = vrot.lane.b32.xlu1 %v6875_v22, %s7467_s29  ;;  %6886 = vrot.lane.b32.xlu0 %v6885_v42, %s7467_s29  ;;  %v2317_v22 = vcombine.high %v12072_v57, %v12061_v37  ;;  %v6910_v42 = vpack.i.bf16 %v2018_v32, %v1553_v4  ;;  %v12076_v32 = vld [vmem:[#allocation19_spill] sm:$0xff]  ;;  %v6955_v58 = vpack.i.bf16 %v1789_v34, %v1324_v20  ;;  %v12078_v20 = vld [vmem:[#allocation16_spill] sm:$0xff]  ;;  %v6694_v34 = vunpack.i.h.bf16 %v8785_v55 }
 0x1c8   : > { %v6960_v21 = vpack.i.bf16 %v2020_v48, %v1555_v18  ;;  %v12079_v18 = vld [vmem:[#allocation17_spill] sm:$0xff] }
 0x1c9   : > { %v6915_v27 = vpack.i.bf16 %v2317_v22, %v2249_v50  ;;  %v1393_v22 = vcombine.high %v8666_v39, %v12061_v37 }
 0x1cb   : > { %6896 = vrot.lane.b32.xlu1 %v6895_v11, %s7467_s29  ;;  %6891 = vrot.lane.b32.xlu0 %v6890_v1, %s7469_s17  ;;  %v8847_v1 = vpop.permute.xlu0 %475  ;;  %v6935_v11 = vpack.i.bf16 %v2019_v7, %v1554_v40 }
 0x1cc   : > { %12074 = vst [vmem:[#allocation26_spill] sm:$0xff] %v8847_v1 }
 0x1cd   : > { %v8843_v45 = vpop.permute.xlu1 %6696 }
 0x1cf   : > { %6901 = vrot.lane.b32.xlu1 %v6900_v9, %s7469_s17  ;;  %6921 = vrot.lane.b32.xlu0 %v6920_v8, %s7469_s17  ;;  %v6940_v9 = vpack.i.bf16 %v2318_v46, %v2250_v17  ;;  %v1325_v8 = vcombine.high %v8700_v26, %v12061_v37  ;;  %v12075_v26 = vld [vmem:[#allocation18_spill] sm:$0xff] }
 0x1d0   : > { %v12077_v30 = vcombine.high %v12075_v26, %v12076_v32 }
 0x1d1   : > { %v6970_v35 = vpack.i.bf16 %v1790_v5, %v1325_v8 }
 0x1d3   : > { %6906 = vrot.lane.b32.xlu1 %v6905_v49, %s7467_s29  ;;  %6926 = vrot.lane.b32.xlu0 %v6925_v61, %s7470_s9  ;;  %v852_v49 = vrot.slane %v12077_v30, %v8007_v53 }
 0x1d5   : > { %v8857_v24 = vpop.permute.xlu1 %6701  ;;  %v856_v4 = vcombine.high %v852_v49, %v12061_v37 }
 0x1d7   : > { %6911 = vrot.lane.b32.xlu1 %v6910_v42, %s7469_s17  ;;  %6931 = vrot.lane.b32.xlu0 %v6930_v63, %s7469_s17  ;;  %v6965_v63 = vpack.i.bf16 %v1858_v6, %v1393_v22 }
 0x1d9   : > { %v8873_v44 = vpop.permute.xlu1 %6716 }
 0x1db   : > { %6916 = vrot.lane.b32.xlu1 %v6915_v27, %s7470_s9  ;;  %6936 = vrot.lane.b32.xlu0 %v6935_v11, %s7470_s9 }
 0x1dd   : > { %v8861_v38 = vpop.permute.xlu0 %6706 }
 0x1de   : > { %v6708_v22 = vunpack.i.l.bf16 %v8861_v38  ;;  %v6709_v53 = vunpack.i.h.bf16 %v8861_v38 }
 0x1df   : > { %6946 = vrot.lane.b32.xlu1 %v6945_v29, %s7470_s9  ;;  %6941 = vrot.lane.b32.xlu0 %v6940_v9, %s7471_s19 }
 0x1e1   : > { %v8875_v56 = vpop.permute.xlu0 %6711 }
 0x1e2   : > { %v6713_v38 = vunpack.i.l.bf16 %v8875_v56 }
 0x1e3   : > { %6951 = vrot.lane.b32.xlu1 %v6950_v14, %s7471_s19  ;;  %6971 = vrot.lane.b32.xlu0 %v6970_v35, %s7471_s19  ;;  %v8887_v43 = vpop.permute.xlu1 %930  ;;  %v6693_v14 = vunpack.i.l.bf16 %v8785_v55 }
 0x1e5   : > { %v8889_v61 = vpop.permute.xlu0 %6721  ;;  %v507_v26 = vsel %vm506_vm5, %v12078_v20, %v6693_v14  ;;  %v6699_v20 = vunpack.i.h.bf16 %v8843_v45 }
 0x1e7   : > { %6956 = vrot.lane.b32.xlu1 %v6955_v58, %s7470_s9  ;;  %950 = vrot.lane.b32.xlu0 %v856_v4, %s7471_s19  ;;  %v8902_v7 = vpop.permute.xlu1 %6736 }
 0x1e9   : > { %v8898_v57 = vpop.permute.xlu0 %6726 }
 0x1eb   : > { %6961 = vrot.lane.b32.xlu1 %v6960_v21, %s7471_s19  ;;  %v8910_v28 = vpop.permute.xlu1 %6756  ;;  %v520_v21 = vsel %vm506_vm5, %v12079_v18, %v6694_v34  ;;  %v6704_v34 = vunpack.i.h.bf16 %v8857_v24  ;;  %v6718_v18 = vunpack.i.l.bf16 %v8873_v44 }
 0x1ed   : > { %v8907_v42 = vpop.permute.xlu0 %6731 }
 0x1ef   : > { %6966 = vrot.lane.b32.xlu1 %v6965_v63, %s7471_s19  ;;  %v8915_v40 = vpop.permute.xlu1 %6761 }
 0x1f1   : > { %v8912_v50 = vpop.permute.xlu0 %938 }
 0x1f3   : > { %946 = vrot.lane.b32.xlu1 %v852_v49, %s7468_s11  ;;  %v8917_v62 = vpop.permute.xlu1 %6776  ;;  %v509_v49 = vsel %vm508_vm6, %v507_v26, %v8783_v54  ;;  %v6698_v26 = vunpack.i.l.bf16 %v8843_v45 }
 0x1f4   : > { %v511_v48 = vsel %vm510_vm7, %v509_v49, %v8811_v3 }
 0x1f5   : > { %v6742_v39 = vpop.permute.xlu0 %6741  ;;  %v513_v6 = vsel %vm512_vm8, %v511_v48, %v8807_v41  ;;  %v6703_v41 = vunpack.i.l.bf16 %v8857_v24  ;;  %v6758_v48 = vunpack.i.l.bf16 %v8910_v28 }
 0x1f6   : > { %v6744_v54 = vunpack.i.h.bf16 %v6742_v39  ;;  %v6743_v63 = vunpack.i.l.bf16 %v6742_v39  ;;  %v8972_v3 = vsel %vm514_vm9, %v513_v6, %v8831_v0  ;;  %v6719_v39 = vunpack.i.h.bf16 %v8873_v44 }
 0x1f7   : > { %v8923_v27 = vpop.permute.xlu1 %934  ;;  %12080 = vst [vmem:[#allocation28_spill] sm:$0xff] %v8972_v3  ;;  %v521_v0 = vsel %vm508_vm6, %v520_v21, %v6708_v22  ;;  %v6714_v6 = vunpack.i.h.bf16 %v8875_v56  ;;  %v12083_v3 = vld [vmem:[#allocation25_spill] sm:$0xff]  ;;  %v6724_v21 = vunpack.i.h.bf16 %v8889_v61  ;;  %v12084_v22 = vld [vmem:[#allocation24_spill] sm:$0xff] }
 0x1f8   : > { %v1227_v45 = vsel %vm506_vm5, %v12081_v51, %v6744_v54  ;;  %v6723_v54 = vunpack.i.l.bf16 %v8889_v61 }
 0x1f9   : > { %v6747_v46 = vpop.permute.xlu0 %6746  ;;  %v1228_v36 = vsel %vm508_vm6, %v1227_v45, %v6699_v20 }
 0x1fa   : > { %v6749_v55 = vunpack.i.h.bf16 %v6747_v46  ;;  %v6748_v49 = vunpack.i.l.bf16 %v6747_v46  ;;  %v12082_v46 = vld [vmem:[#allocation22_spill] sm:$0xff] }
 0x1fb   : > { %v8927_v17 = vpop.permute.xlu1 %6781  ;;  %v758_v1 = vsel %vm506_vm5, %v12082_v46, %v6743_v63 }
 0x1fc   : > { %v1220_v24 = vsel %vm506_vm5, %v12083_v3, %v6749_v55  ;;  %v751_v19 = vsel %vm506_vm5, %v12084_v22, %v6748_v49  ;;  %v6759_v55 = vunpack.i.h.bf16 %v8910_v28  ;;  %v12085_v3 = vld [vmem:[#allocation21_spill] sm:$0xff]  ;;  %v759_v56 = vsel %vm508_vm6, %v758_v1, %v6698_v26 }
 0x1fd   : > { %v8919_v16 = vpop.permute.xlu0 %6751  ;;  %v988_v46 = vsel %vm506_vm5, %v12085_v3, %v6758_v48  ;;  %v1221_v47 = vsel %vm508_vm6, %v1220_v24, %v6704_v34  ;;  %v6764_v34 = vunpack.i.h.bf16 %v8915_v40  ;;  %v6763_v1 = vunpack.i.l.bf16 %v8915_v40 }
 0x1fe   : > { %v6753_v59 = vunpack.i.l.bf16 %v8919_v16  ;;  %v6754_v51 = vunpack.i.h.bf16 %v8919_v16  ;;  %v752_v16 = vsel %vm508_vm6, %v751_v19, %v6703_v41  ;;  %v6738_v19 = vunpack.i.l.bf16 %v8902_v7 }
 0x1ff   : > { %v8931_v29 = vpop.permute.xlu1 %6786  ;;  %v989_v48 = vsel %vm508_vm6, %v988_v46, %v6709_v53  ;;  %v1222_v45 = vsel %vm510_vm7, %v1221_v47, %v6764_v34  ;;  %v753_v24 = vsel %vm510_vm7, %v752_v16, %v6763_v1  ;;  %v6734_v53 = vunpack.i.h.bf16 %v8907_v42 }
 0x200   : > { %v760_v22 = vsel %vm510_vm7, %v759_v56, %v6753_v59  ;;  %v1229_v20 = vsel %vm510_vm7, %v1228_v36, %v6754_v51  ;;  %v6729_v59 = vunpack.i.h.bf16 %v8898_v57  ;;  %v6728_v36 = vunpack.i.l.bf16 %v8898_v57 }
 0x201   : > { %v8921_v37 = vpop.permute.xlu0 %6766  ;;  %v761_v40 = vsel %vm512_vm8, %v760_v22, %v6713_v38  ;;  %v1230_v56 = vsel %vm512_vm8, %v1229_v20, %v6714_v6  ;;  %v6733_v47 = vunpack.i.l.bf16 %v8907_v42  ;;  %v6779_v57 = vunpack.i.h.bf16 %v8917_v62 }
 0x202   : > { %v6768_v49 = vunpack.i.l.bf16 %v8921_v37  ;;  %v6769_v61 = vunpack.i.h.bf16 %v8921_v37  ;;  %v12086_v37 = vld [vmem:[#allocation20_spill] sm:$0xff]  ;;  %v1223_v6 = vsel %vm512_vm8, %v1222_v45, %v6719_v39  ;;  %v6783_v16 = vunpack.i.l.bf16 %v8927_v17 }
 0x203   : > { %v8935_v52 = vpop.permute.xlu1 %942  ;;  %v981_v41 = vsel %vm506_vm5, %v12086_v37, %v6759_v55  ;;  %v6788_v34 = vunpack.i.l.bf16 %v8931_v29 }
 0x204   : > { %v522_v3 = vsel %vm510_vm7, %v521_v0, %v6768_v49  ;;  %v982_v0 = vsel %vm508_vm6, %v981_v41, %v8887_v43  ;;  %v6778_v49 = vunpack.i.l.bf16 %v8917_v62  ;;  %v6789_v62 = vunpack.i.h.bf16 %v8931_v29 }
 0x205   : > { %v8925_v11 = vpop.permute.xlu0 %6771  ;;  %v523_v46 = vsel %vm512_vm8, %v522_v3, %v6723_v54  ;;  %v983_v43 = vsel %vm510_vm7, %v982_v0, %v8923_v27 }
 0x206   : > { %v6773_v63 = vunpack.i.l.bf16 %v8925_v11  ;;  %v6774_v26 = vunpack.i.h.bf16 %v8925_v11  ;;  %v990_v11 = vsel %vm510_vm7, %v989_v48, %v6769_v61  ;;  %v6784_v61 = vunpack.i.h.bf16 %v8927_v17 }
 0x207   : > { %v8941_v5 = vpop.permute.xlu1 %6801  ;;  %v991_v22 = vsel %vm512_vm8, %v990_v11, %v6724_v21  ;;  %v1224_v21 = vsel %vm514_vm9, %v1223_v6, %v6779_v57  ;;  %v524_v20 = vsel %vm514_vm9, %v523_v46, %v6783_v16  ;;  %v984_v37 = vsel %vm512_vm8, %v983_v43, %v8912_v50 }
 0x208   : > { %v762_v51 = vsel %vm514_vm9, %v761_v40, %v6773_v63  ;;  %v1231_v38 = vsel %vm514_vm9, %v1230_v56, %v6774_v26  ;;  %v754_v63 = vsel %vm512_vm8, %v753_v24, %v6718_v18  ;;  %v9079_v45 = vsel %vm514_vm9, %v984_v37, %v8935_v52 }
 0x209   : > { %v8929_v33 = vpop.permute.xlu0 %6791  ;;  %v763_v42 = vsel %vm516_vm10, %v762_v51, %v6728_v36  ;;  %v1232_v54 = vsel %vm516_vm10, %v1231_v38, %v6729_v59  ;;  %v755_v1 = vsel %vm514_vm9, %v754_v63, %v6778_v49  ;;  %v992_v59 = vsel %vm514_vm9, %v991_v22, %v6784_v61 }
 0x20a   : > { %v6794_v27 = vunpack.i.h.bf16 %v8929_v33  ;;  %v6793_v17 = vunpack.i.l.bf16 %v8929_v33  ;;  %v9067_v26 = vsel %vm518_vm11, %v763_v42, %v6788_v34  ;;  %v9075_v48 = vsel %vm518_vm11, %v1232_v54, %v6789_v62  ;;  %v12090_v34 = vld [vmem:[#allocation33_spill] sm:$0xff]  ;;  %v12091_v54 = vld [vmem:[#allocation32_spill] sm:$0xff] }
 0x20b   : > { %v8948_v32 = vpop.permute.xlu1 %6806  ;;  %v756_v33 = vsel %vm516_vm10, %v755_v1, %v6733_v47  ;;  %v1225_v24 = vsel %vm516_vm10, %v1224_v21, %v6734_v53  ;;  %v525_v50 = vsel %vm516_vm10, %v524_v20, %v6738_v19  ;;  %v6804_v36 = vunpack.i.h.bf16 %v8941_v5 }
 0x20c   : > { %v12087_v11 = vunpack.i.h.bf16 %v8902_v7  ;;  %v9095_v56 = vsel %vm518_vm11, %v756_v33, %v6793_v17  ;;  %v9098_v53 = vsel %vm518_vm11, %v1225_v24, %v6794_v27  ;;  %v6809_v47 = vunpack.i.h.bf16 %v8948_v32  ;;  %v12088_v27 = vld [vmem:[#allocation30_spill] sm:$0xff] }
 0x20d   : > { %v8933_v9 = vpop.permute.xlu0 %6796  ;;  %v6808_v0 = vunpack.i.l.bf16 %v8948_v32 }
 0x20e   : > { %v6799_v29 = vunpack.i.h.bf16 %v8933_v9  ;;  %v6798_v41 = vunpack.i.l.bf16 %v8933_v9  ;;  %v6803_v9 = vunpack.i.l.bf16 %v8941_v5  ;;  %v993_v51 = vsel %vm516_vm10, %v992_v59, %v12087_v11 }
 0x210   : > { %v9105_v7 = vsel %vm518_vm11, %v525_v50, %v6798_v41  ;;  %v9108_v38 = vsel %vm518_vm11, %v993_v51, %v6799_v29 }
 0x215   : > { %v8937_v8 = vpop.permute.xlu0 %6811 }
 0x216   : > { %v6814_v5 = vunpack.i.h.bf16 %v8937_v8  ;;  %v6813_v57 = vunpack.i.l.bf16 %v8937_v8 }
 0x219   : > { %v8939_v10 = vpop.permute.xlu0 %6816 }
 0x21a   : > { %v6819_v46 = vunpack.i.h.bf16 %v8939_v10  ;;  %v6818_v63 = vunpack.i.l.bf16 %v8939_v10 }
 0x21d   : > { %v8944_v35 = vpop.permute.xlu0 %6821 }
 0x21e   : > { %v6824_v6 = vunpack.i.h.bf16 %v8944_v35  ;;  %v6823_v22 = vunpack.i.l.bf16 %v8944_v35 }
 0x221   : > { %v8950_v30 = vpop.permute.xlu0 %6826 }
 0x222   : > { %v6829_v42 = vunpack.i.h.bf16 %v8950_v30  ;;  %v6828_v43 = vunpack.i.l.bf16 %v8950_v30 }
 0x225   : > { %v8955_v58 = vpop.permute.xlu1 %6831  ;;  %v8957_v4 = vpop.permute.xlu0 %6856 }
 0x229   : > { %v8966_v12 = vpop.permute.xlu1 %6836  ;;  %v8968_v14 = vpop.permute.xlu0 %6861 }
 0x22d   : > { %v8991_v13 = vpop.permute.xlu1 %6841  ;;  %v8993_v44 = vpop.permute.xlu0 %6866 }
 0x22e   : > { %v6844_v29 = vunpack.i.h.bf16 %v8991_v13  ;;  %v6843_v41 = vunpack.i.l.bf16 %v8991_v13 }
 0x231   : > { %v9013_v28 = vpop.permute.xlu1 %6846  ;;  %v9015_v23 = vpop.permute.xlu0 %6871 }
 0x235   : > { %v9034_v2 = vpop.permute.xlu1 %6851  ;;  %v9036_v55 = vpop.permute.xlu0 %6881 }
 0x236   : > { %v6883_v61 = vunpack.i.l.bf16 %v9036_v55  ;;  %v6884_v11 = vunpack.i.h.bf16 %v9036_v55 }
 0x238   : > { %v1687_v51 = vsel %vm506_vm5, %v8714_v25, %v6883_v61  ;;  %v12089_v61 = vld [vmem:[#allocation31_spill] sm:$0xff] }
 0x239   : > { %v9056_v18 = vpop.permute.xlu1 %6876  ;;  %v9058_v39 = vpop.permute.xlu0 %6886 }
 0x23a   : > { %v6879_v62 = vunpack.i.h.bf16 %v9056_v18  ;;  %v6878_v1 = vunpack.i.l.bf16 %v9056_v18  ;;  %v6889_v59 = vunpack.i.h.bf16 %v9058_v39  ;;  %v6888_v37 = vunpack.i.l.bf16 %v9058_v39 }
 0x23c   : > { %v2382_v19 = vsel %vm506_vm5, %v8723_v15, %v6879_v62  ;;  %v2375_v52 = vsel %vm506_vm5, %v8740_v60, %v6878_v1  ;;  %v2145_v25 = vsel %vm506_vm5, %v12088_v27, %v6889_v59  ;;  %v1680_v15 = vsel %vm506_vm5, %v12089_v61, %v6888_v37  ;;  %v12092_v61 = vld [vmem:[#allocation35_spill] sm:$0xff] }
 0x23d   : > { %v9083_v3 = vpop.permute.xlu1 %6896  ;;  %v9085_v40 = vpop.permute.xlu0 %6891  ;;  %v2376_v60 = vsel %vm508_vm6, %v2375_v52, %v6803_v9  ;;  %v2383_v17 = vsel %vm508_vm6, %v2382_v19, %v6804_v36 }
 0x23e   : > { %v6899_v21 = vunpack.i.h.bf16 %v9083_v3  ;;  %v6898_v18 = vunpack.i.l.bf16 %v9083_v3  ;;  %v6894_v50 = vunpack.i.h.bf16 %v9085_v40  ;;  %v6893_v55 = vunpack.i.l.bf16 %v9085_v40 }
 0x23f   : > { %v2152_v3 = vsel %vm506_vm5, %v8686_v31, %v6884_v11  ;;  %v1688_v40 = vsel %vm508_vm6, %v1687_v51, %v6808_v0 }
 0x240   : > { %v1922_v39 = vsel %vm506_vm5, %v12090_v34, %v6899_v21  ;;  %v1457_v20 = vsel %vm506_vm5, %v12091_v54, %v6898_v18  ;;  %v2384_v31 = vsel %vm510_vm7, %v2383_v17, %v6894_v50  ;;  %v2377_v0 = vsel %vm510_vm7, %v2376_v60, %v6893_v55  ;;  %v12093_v60 = vld [vmem:[#allocation34_spill] sm:$0xff] }
 0x241   : > { %v9114_v49 = vpop.permute.xlu1 %6901  ;;  %v9116_v16 = vpop.permute.xlu0 %6921  ;;  %v2153_v9 = vsel %vm508_vm6, %v2152_v3, %v6809_v47  ;;  %v1681_v34 = vsel %vm508_vm6, %v1680_v15, %v6813_v57  ;;  %v2146_v54 = vsel %vm508_vm6, %v2145_v25, %v6814_v5  ;;  %v1458_v37 = vsel %vm508_vm6, %v1457_v20, %v6823_v22 }
 0x242   : > { %v6904_v27 = vunpack.i.h.bf16 %v9114_v49  ;;  %v6903_v59 = vunpack.i.l.bf16 %v9114_v49  ;;  %v6923_v36 = vunpack.i.l.bf16 %v9116_v16  ;;  %v1923_v32 = vsel %vm508_vm6, %v1922_v39, %v6824_v6 }
 0x243   : > { %v2385_v47 = vsel %vm512_vm8, %v2384_v31, %v6819_v46  ;;  %v2378_v57 = vsel %vm512_vm8, %v2377_v0, %v6818_v63  ;;  %v6924_v20 = vunpack.i.h.bf16 %v9116_v16 }
 0x244   : > { %v1689_v35 = vsel %vm510_vm7, %v1688_v40, %v6903_v59  ;;  %v2154_v6 = vsel %vm510_vm7, %v2153_v9, %v6904_v27  ;;  %v1459_v46 = vsel %vm510_vm7, %v1458_v37, %v6923_v36  ;;  %v12096_v37 = vunpack.i.l.bf16 %v8966_v12 }
 0x245   : > { %v9134_v33 = vpop.permute.xlu1 %6906  ;;  %v9136_v24 = vpop.permute.xlu0 %6926  ;;  %v1924_v9 = vsel %vm510_vm7, %v1923_v32, %v6924_v20  ;;  %v1690_v36 = vsel %vm512_vm8, %v1689_v35, %v6828_v43 }
 0x246   : > { %v6909_v8 = vunpack.i.h.bf16 %v9134_v33  ;;  %v6908_v5 = vunpack.i.l.bf16 %v9134_v33  ;;  %v6929_v33 = vunpack.i.h.bf16 %v9136_v24  ;;  %v6928_v55 = vunpack.i.l.bf16 %v9136_v24 }
 0x248   : > { %v1915_v15 = vsel %vm506_vm5, %v12092_v61, %v6909_v8  ;;  %v12103_v61 = vunpack.i.h.bf16 %v9034_v2 }
 0x249   : > { %v6912_v62 = vpop.permute.xlu1 %6911  ;;  %v9157_v1 = vpop.permute.xlu0 %6931 }
 0x24a   : > { %v6914_v63 = vunpack.i.h.bf16 %v6912_v62  ;;  %v6913_v50 = vunpack.i.l.bf16 %v6912_v62  ;;  %v1450_v62 = vsel %vm506_vm5, %v12093_v60, %v6908_v5  ;;  %v6934_v24 = vunpack.i.h.bf16 %v9157_v1 }
 0x24b   : > { %v6933_v40 = vunpack.i.l.bf16 %v9157_v1 }
 0x24c   : > { %v1682_v13 = vsel %vm510_vm7, %v1681_v34, %v6913_v50  ;;  %v1691_v34 = vsel %vm514_vm9, %v1690_v36, %v6928_v55  ;;  %v12099_v50 = vunpack.i.h.bf16 %v9013_v28  ;;  %v12101_v55 = vunpack.i.h.bf16 %v8957_v4 }
 0x24d   : > { %v6917_v52 = vpop.permute.xlu1 %6916  ;;  %v6937_v19 = vpop.permute.xlu0 %6936  ;;  %v1683_v32 = vsel %vm512_vm8, %v1682_v13, %v12096_v37 }
 0x24e   : > { %v6919_v21 = vunpack.i.h.bf16 %v6917_v52  ;;  %v6918_v17 = vunpack.i.l.bf16 %v6917_v52  ;;  %v6939_v27 = vunpack.i.h.bf16 %v6937_v19  ;;  %v6938_v59 = vunpack.i.l.bf16 %v6937_v19 }
 0x24f   : > { %v2155_v52 = vsel %vm512_vm8, %v2154_v6, %v6829_v42  ;;  %v12094_v19 = vunpack.i.l.bf16 %v8955_v58 }
 0x250   : > { %v2386_v49 = vsel %vm514_vm9, %v2385_v47, %v6919_v21  ;;  %v2379_v22 = vsel %vm514_vm9, %v2378_v57, %v6918_v17  ;;  %v12095_v17 = vunpack.i.h.bf16 %v8955_v58  ;;  %v12097_v47 = vunpack.i.h.bf16 %v8966_v12 }
 0x251   : > { %v9204_v18 = vpop.permute.xlu1 %6946  ;;  %v6942_v10 = vpop.permute.xlu0 %6941  ;;  %v2387_v25 = vsel %vm516_vm10, %v2386_v49, %v6844_v29  ;;  %v2380_v16 = vsel %vm516_vm10, %v2379_v22, %v6843_v41  ;;  %v2147_v41 = vsel %vm510_vm7, %v2146_v54, %v6914_v63  ;;  %v2156_v54 = vsel %vm514_vm9, %v2155_v52, %v6929_v33 }
 0x252   : > { %v6944_v11 = vunpack.i.h.bf16 %v6942_v10  ;;  %v6943_v51 = vunpack.i.l.bf16 %v6942_v10  ;;  %v1451_v21 = vsel %vm508_vm6, %v1450_v62, %v12094_v19  ;;  %v1916_v43 = vsel %vm508_vm6, %v1915_v15, %v12095_v17 }
 0x253   : > { %v1917_v30 = vsel %vm510_vm7, %v1916_v43, %v6934_v24  ;;  %v1452_v42 = vsel %vm510_vm7, %v1451_v21, %v6933_v40  ;;  %v2148_v57 = vsel %vm512_vm8, %v2147_v41, %v12097_v47  ;;  %v1684_v5 = vsel %vm514_vm9, %v1683_v32, %v6938_v59 }
 0x254   : > { %v2388_v39 = vsel %vm518_vm11, %v2387_v25, %v6944_v11  ;;  %v2381_v3 = vsel %vm518_vm11, %v2380_v16, %v6943_v51  ;;  %v2149_v58 = vsel %vm514_vm9, %v2148_v57, %v6939_v27  ;;  %v6949_v35 = vunpack.i.h.bf16 %v9204_v18 }
 0x255   : > { %v6952_v31 = vpop.permute.xlu1 %6951  ;;  %v2427_v29 = vpack.c.bf16 %v2388_v39, %v2388_v39  ;;  %v2426_v0 = vpack.c.bf16 %v2381_v3, %v2381_v3  ;;  %v6948_v6 = vunpack.i.l.bf16 %v9204_v18  ;;  %v12098_v63 = vunpack.i.l.bf16 %v9013_v28  ;;  %v6972_v62 = vpop.permute.xlu0 %6971 }
 0x256   : > { %v6954_v20 = vunpack.i.h.bf16 %v6952_v31  ;;  %v6953_v10 = vunpack.i.l.bf16 %v6952_v31  ;;  %v1925_v11 = vsel %vm512_vm8, %v1924_v9, %v12099_v50  ;;  %v12100_v51 = vunpack.i.l.bf16 %v8957_v4 }
 0x257   : > { %6596 = vmatprep.subr.msk.bf16.mxu0 %vm2433_vm12, %v2427_v29  ;;  %v2435_v1 = vsel %vm2433_vm12, %v2426_v0, 0  ;;  %v1460_v12 = vsel %vm512_vm8, %v1459_v46, %v12098_v63  ;;  %v1918_v25 = vsel %vm512_vm8, %v1917_v30, %v12101_v55  ;;  %v12102_v18 = vunpack.i.l.bf16 %v9034_v2 }
 0x258   : > { %2451 = vmatpush1.bf16.msra.mxu0 %v2435_v1  ;;  %v1453_v33 = vsel %vm512_vm8, %v1452_v42, %v12100_v51  ;;  %v2157_v46 = vsel %vm516_vm10, %v2156_v54, %v12103_v61  ;;  %v12104_v4 = vunpack.i.l.bf16 %v8968_v14  ;;  %v12105_v40 = vunpack.i.h.bf16 %v8968_v14  ;;  %v2428_v61 = vld [vmem:[#allocation7] sm:$0xf] }
 0x259   : > { %v6957_v8 = vpop.permute.xlu1 %6956  ;;  %v1692_v16 = vsel %vm516_vm10, %v1691_v34, %v12102_v18  ;;  %v1461_v2 = vsel %vm514_vm9, %v1460_v12, %v6948_v6  ;;  %v1926_v29 = vsel %vm514_vm9, %v1925_v11, %v6949_v35  ;;  %v2158_v13 = vsel %vm518_vm11, %v2157_v46, %v6954_v20  ;;  %v951_v11 = vpop.permute.xlu0 %950  ;;  %v12113_v18 = vld [vmem:[#allocation28_spill] sm:$0xff] }
 0x25a   : > { %v6959_v49 = vunpack.i.h.bf16 %v6957_v8  ;;  %v6958_v22 = vunpack.i.l.bf16 %v6957_v8  ;;  %v1685_v24 = vsel %vm516_vm10, %v1684_v5, %v12104_v4  ;;  %v2150_v31 = vsel %vm516_vm10, %v2149_v58, %v12105_v40 }
 0x25b   : > { %v1693_v0 = vsel %vm518_vm11, %v1692_v16, %v6953_v10  ;;  %v12106_v59 = vunpack.i.l.bf16 %v9015_v23  ;;  %v12107_v14 = vunpack.i.h.bf16 %v9015_v23  ;;  %v6974_v52 = vunpack.i.h.bf16 %v6972_v62  ;;  %v12114_v16 = vld [vmem:[#allocation26_spill] sm:$0xff] }
 0x25c   : > { %v1454_v28 = vsel %vm514_vm9, %v1453_v33, %v6958_v22  ;;  %v1919_v15 = vsel %vm514_vm9, %v1918_v25, %v6959_v49  ;;  %v6973_v1 = vunpack.i.l.bf16 %v6972_v62  ;;  %v12108_v43 = vunpack.i.l.bf16 %v8993_v44  ;;  %v12112_v25 = vld [vmem:[#allocation27_spill] sm:$0xff] }
 0x25d   : > { %v6962_v60 = vpop.permute.xlu1 %6961  ;;  %v1455_v9 = vsel %vm516_vm10, %v1454_v28, %v12106_v59  ;;  %v1920_v36 = vsel %vm516_vm10, %v1919_v15, %v12107_v14  ;;  %v12109_v42 = vunpack.i.h.bf16 %v8993_v44  ;;  %v2404_v32 = vrot.slane %v1693_v0, 4 }
 0x25e   : > { %v6964_v39 = vunpack.i.h.bf16 %v6962_v60  ;;  %v6963_v3 = vunpack.i.l.bf16 %v6962_v60  ;;  %v1462_v30 = vsel %vm516_vm10, %v1461_v2, %v12108_v43  ;;  %v2410_v47 = vrot.slane %v2158_v13, 4 }
 0x25f   : > { %v1927_v37 = vsel %vm516_vm10, %v1926_v29, %v12109_v42  ;;  %v1456_v23 = vsel %vm518_vm11, %v1455_v9, %v6973_v1  ;;  %v1921_v57 = vsel %vm518_vm11, %v1920_v36, %v6974_v52  ;;  %v12110_v6 = vrot.slane %v9067_v26, 4 }
 0x260   : > { %v1686_v41 = vsel %vm518_vm11, %v1685_v24, %v6963_v3  ;;  %v2151_v27 = vsel %vm518_vm11, %v2150_v31, %v6964_v39  ;;  %v12111_v10 = vrot.slane %v9075_v48, 4  ;;  %v2391_v12 = vrot.slane %v9095_v56, 4 }
 0x261   : > { %v2403_v34 = vrot.slane %v1686_v41, 4  ;;  %v2409_v54 = vrot.slane %v2151_v27, 4  ;;  %v6967_v19 = vpop.permute.xlu1 %6966  ;;  %v2415_v20 = vsel %vm2413_vm13, %v9105_v7, %v12110_v6  ;;  %v2397_v50 = vrot.slane %v9098_v53, 4  ;;  %v12115_v27 = vld [vmem:[#allocation14_spill] sm:$0xff] }
 0x262   : > { %v6969_v21 = vunpack.i.h.bf16 %v6967_v19  ;;  %v6968_v17 = vunpack.i.l.bf16 %v6967_v19  ;;  %v2417_v63 = vsel %vm2413_vm13, %v9108_v38, %v12111_v10  ;;  %v517_v7 = vsel %vm516_vm10, %v12113_v18, %v12112_v25 }
 0x263   : > { %v2418_v58 = vsel %vm2413_vm13, %v1456_v23, %v2403_v34  ;;  %v2420_v49 = vsel %vm2413_vm13, %v1921_v57, %v2409_v54  ;;  %v2423_v48 = vpack.c.bf16 %v2417_v63, %v2415_v20  ;;  %v519_v56 = vsel %vm518_vm11, %v517_v7, %v12114_v16 }
 0x264   : > { %v1463_v8 = vsel %vm518_vm11, %v1462_v30, %v6968_v17  ;;  %v1928_v5 = vsel %vm518_vm11, %v1927_v37, %v6969_v21  ;;  %v2424_v26 = vpack.c.bf16 %v2420_v49, %v2418_v58  ;;  %v2414_v53 = vsel %vm2413_vm13, %v519_v56, %v2391_v12  ;;  %v12116_v37 = vld [vmem:[#allocation15_spill] sm:$0xff] }
 0x265   : > { %v947_v22 = vpop.permute.xlu1 %946  ;;  %v2419_v35 = vsel %vm2413_vm13, %v1463_v8, %v2404_v32  ;;  %v2421_v44 = vsel %vm2413_vm13, %v1928_v5, %v2410_v47 }
 0x266   : > { %v986_v51 = vsel %vm516_vm10, %v9079_v45, %v947_v22  ;;  %v2425_v33 = vpack.c.bf16 %v2421_v44, %v2419_v35 }
 0x267   : > { %v987_v55 = vsel %vm518_vm11, %v986_v51, %v951_v11 }
 0x268   : > { %2452 = vmatprep.subr.bf16.mxu0 %v2425_v33  ;;  %v2416_v38 = vsel %vm2413_vm13, %v987_v55, %v2397_v50 }
 0x269   : > { %2453 = vmatpush1.bf16.msra.mxu0 %v2424_v26  ;;  %v2422_v45 = vpack.c.bf16 %v2416_v38, %v2414_v53 }
 0x26a   : > { %2454 = vmatprep.subr.bf16.mxu0 %v2423_v48 }
 0x26d   : > { %2455 = vmatpush1.bf16.msra.mxu0 %v2422_v45 }
 0x270   : > { %6597 = vmatmul.mubr.msk.bf16.vlgmr.msra.gmra.mxu0 %vm2429_vm14, %v2428_v61 }
 0x330   : > { %v2474_v46 = vpop.f32.mrf.mxu0 }
 0x331   : > { %vm2481_vm15 = vcmp.gt.f32.partialorder %v2474_v46, 0.0  ;;  %v2483_v28 = vmul.f32 0.01, %v2474_v46 }
 0x332   : > { %v2476_v15 = vpop.f32.mrf.mxu0 }
 0x333   : > { %v9325_v60 = vsel %vm2481_vm15, %v2474_v46, %v2483_v28  ;;  %v2484_v3 = vmul.f32 0.01, %v2476_v15  ;;  %vm2482_vm0 = vcmp.gt.f32.partialorder %v2476_v15, 0.0 }
 0x334   : > { %2491 = vrot.lane.b32.xlu0 %v9325_v60, %s7468_s11  ;;  %2488 = vrot.lane.b32.xlu1 %v9325_v60, %s7471_s19  ;;  %v2478_v62 = vpop.f32.mrf.mxu0 }
 0x335   : > { %v9339_v4 = vsel %vm2482_vm0, %v2476_v15, %v2484_v3 }
 0x336   : > { %v2479_v39 = vpop.f32.mrf.mxu0 }
 0x338   : > { %2497 = vrot.lane.b32.xlu0 %v9325_v60, %s7466_s6  ;;  %2494 = vrot.lane.b32.xlu1 %v9325_v60, %s7470_s9 }
 0x33c   : > { %2503 = vrot.lane.b32.xlu0 %v9325_v60, %s7465_s28  ;;  %2500 = vrot.lane.b32.xlu1 %v9325_v60, %s7469_s17 }
 0x340   : > { %2506 = vrot.lane.b32.xlu1 %v9325_v60, %s7467_s29  ;;  %2510 = vrot.lane.b32.xlu0 %v9339_v4, %s7471_s19 }
 0x344   : > { %2513 = vrot.lane.b32.xlu1 %v9339_v4, %s7468_s11  ;;  %2516 = vrot.lane.b32.xlu0 %v9339_v4, %s7470_s9 }
 0x348   : > { %2519 = vrot.lane.b32.xlu1 %v9339_v4, %s7466_s6  ;;  %2522 = vrot.lane.b32.xlu0 %v9339_v4, %s7469_s17 }
 0x34c   : > { %2525 = vrot.lane.b32.xlu1 %v9339_v4, %s7465_s28  ;;  %2528 = vrot.lane.b32.xlu0 %v9339_v4, %s7467_s29 }
 0x3a6   : > { %v2492_v24 = vpop.permute.xlu0 %2491  ;;  %v2489_v40 = vpop.permute.xlu1 %2488 }
 0x3a7   : > { %v2531_v41 = vcombine.low %v9325_v60, %v2492_v24  ;;  %v2532_v20 = vcombine.high %v9325_v60, %v2492_v24 }
 0x3a9   : > { %v2539_v52 = vrot.slane %v2531_v41, %v12115_v27  ;;  %v2546_v38 = vrot.slane %v2532_v20, %v12115_v27 }
 0x3aa   : > { %v2498_v31 = vpop.permute.xlu0 %2497  ;;  %v2495_v2 = vpop.permute.xlu1 %2494 }
 0x3ab   : > { %v2547_v29 = vcombine.low %v2489_v40, %v2495_v2  ;;  %v2548_v49 = vcombine.high %v2489_v40, %v2495_v2 }
 0x3ad   : > { %v2555_v59 = vrot.slane %v2547_v29, %v12115_v27  ;;  %v2562_v55 = vrot.slane %v2548_v49, %v12115_v27 }
 0x3ae   : > { %v2504_v0 = vpop.permute.xlu0 %2503  ;;  %v2501_v13 = vpop.permute.xlu1 %2500 }
 0x3af   : > { %v2563_v9 = vcombine.low %v2498_v31, %v2504_v0  ;;  %v2595_v34 = vcombine.low %v2539_v52, %v2555_v59  ;;  %v2564_v22 = vcombine.high %v2498_v31, %v2504_v0  ;;  %v2596_v35 = vcombine.high %v2539_v52, %v2555_v59 }
 0x3b0   : > { %v2611_v45 = vcombine.low %v2546_v38, %v2562_v55 }
 0x3b1   : > { %v2571_v54 = vrot.slane %v2563_v9, %v12115_v27  ;;  %v2603_v32 = vrot.slane %v2595_v34, %v12116_v37  ;;  %v2578_v26 = vrot.slane %v2564_v22, %v12115_v27  ;;  %v2610_v48 = vrot.slane %v2596_v35, %v12116_v37 }
 0x3b2   : > { %v2507_v14 = vpop.permute.xlu1 %2506  ;;  %v9359_v36 = vpop.permute.xlu0 %2510  ;;  %v2619_v24 = vrot.slane %v2611_v45, %v12116_v37 }
 0x3b3   : > { %v2579_v1 = vcombine.low %v2501_v13, %v2507_v14  ;;  %v2580_v23 = vcombine.high %v2501_v13, %v2507_v14  ;;  %v2612_v14 = vcombine.high %v2546_v38, %v2562_v55 }
 0x3b5   : > { %v2587_v19 = vrot.slane %v2579_v1, %v12115_v27  ;;  %v2594_v10 = vrot.slane %v2580_v23, %v12115_v27 }
 0x3b6   : > { %v2514_v21 = vpop.permute.xlu1 %2513  ;;  %v2517_v17 = vpop.permute.xlu0 %2516 }
 0x3b7   : > { %v2627_v43 = vcombine.low %v2571_v54, %v2587_v19  ;;  %v2667_v30 = vcombine.low %v9339_v4, %v2514_v21  ;;  %v2683_v42 = vcombine.low %v9359_v36, %v2517_v17  ;;  %v2628_v5 = vcombine.high %v2571_v54, %v2587_v19 }
 0x3b8   : > { %v2643_v16 = vcombine.low %v2578_v26, %v2594_v10  ;;  %v2668_v40 = vcombine.high %v9339_v4, %v2514_v21  ;;  %v2684_v31 = vcombine.high %v9359_v36, %v2517_v17  ;;  %v2644_v29 = vcombine.high %v2578_v26, %v2594_v10 }
 0x3b9   : > { %v2635_v47 = vrot.slane %v2627_v43, %v12116_v37  ;;  %v2675_v44 = vrot.slane %v2667_v30, %v12115_v27  ;;  %v2691_v6 = vrot.slane %v2683_v42, %v12115_v27  ;;  %v2642_v33 = vrot.slane %v2628_v5, %v12116_v37 }
 0x3ba   : > { %v2520_v57 = vpop.permute.xlu1 %2519  ;;  %v2523_v8 = vpop.permute.xlu0 %2522  ;;  %v2651_v15 = vrot.slane %v2643_v16, %v12116_v37  ;;  %v2682_v52 = vrot.slane %v2668_v40, %v12115_v27  ;;  %v2698_v4 = vrot.slane %v2684_v31, %v12115_v27  ;;  %v2658_v19 = vrot.slane %v2644_v29, %v12116_v37 }
 0x3bb   : > { %v2659_v58 = vcombine.low %v2603_v32, %v2635_v47  ;;  %v2660_v51 = vcombine.high %v2603_v32, %v2635_v47  ;;  %v2731_v25 = vcombine.low %v2675_v44, %v2691_v6  ;;  %v2661_v53 = vcombine.low %v2610_v48, %v2642_v33 }
 0x3bc   : > { %v2662_v28 = vcombine.high %v2610_v48, %v2642_v33  ;;  %v2732_v2 = vcombine.high %v2675_v44, %v2691_v6  ;;  %v2663_v0 = vcombine.low %v2619_v24, %v2651_v15  ;;  %v2664_v34 = vcombine.high %v2619_v24, %v2651_v15 }
 0x3bd   : > { %2819 = vrot.lane.b32.xlu1 %v2659_v58, %s7460_s23  ;;  %v2739_v61 = vrot.slane %v2731_v25, %v12116_v37  ;;  %v2747_v21 = vcombine.low %v2682_v52, %v2698_v4  ;;  %v2626_v17 = vrot.slane %v2612_v14, %v12116_v37 }
 0x3be   : > { %v2526_v63 = vpop.permute.xlu1 %2525  ;;  %v2529_v12 = vpop.permute.xlu0 %2528  ;;  %v2746_v36 = vrot.slane %v2732_v2, %v12116_v37 }
 0x3bf   : > { %v2699_v50 = vcombine.low %v2520_v57, %v2526_v63  ;;  %v2715_v11 = vcombine.low %v2523_v8, %v2529_v12  ;;  %v2700_v60 = vcombine.high %v2520_v57, %v2526_v63  ;;  %v2716_v62 = vcombine.high %v2523_v8, %v2529_v12 }
 0x3c0   : > { %v2665_v43 = vcombine.low %v2626_v17, %v2658_v19  ;;  %v2755_v32 = vrot.slane %v2747_v21, %v12116_v37  ;;  %v2666_v23 = vcombine.high %v2626_v17, %v2658_v19  ;;  %v2748_v8 = vcombine.high %v2682_v52, %v2698_v4 }
 0x3c1   : > { %v2707_v18 = vrot.slane %v2699_v50, %v12115_v27  ;;  %v2723_v7 = vrot.slane %v2715_v11, %v12115_v27  ;;  %2823 = vrot.lane.b32.xlu1 %v2660_v51, %s7460_s23  ;;  %v2714_v13 = vrot.slane %v2700_v60, %v12115_v27  ;;  %v2730_v41 = vrot.slane %v2716_v62, %v12115_v27 }
 0x3c2   : > { %v2762_v49 = vrot.slane %v2748_v8, %v12116_v37 }
 0x3c3   : > { %v2763_v56 = vcombine.low %v2707_v18, %v2723_v7  ;;  %v2764_v39 = vcombine.high %v2707_v18, %v2723_v7  ;;  %v2779_v1 = vcombine.low %v2714_v13, %v2730_v41  ;;  %v2780_v47 = vcombine.high %v2714_v13, %v2730_v41 }
 0x3c5   : > { %2827 = vrot.lane.b32.xlu1 %v2661_v53, %s7460_s23  ;;  %v2771_v46 = vrot.slane %v2763_v56, %v12116_v37  ;;  %v2778_v9 = vrot.slane %v2764_v39, %v12116_v37  ;;  %v2787_v42 = vrot.slane %v2779_v1, %v12116_v37  ;;  %v2794_v58 = vrot.slane %v2780_v47, %v12116_v37 }
 0x3c7   : > { %v2795_v3 = vcombine.low %v2739_v61, %v2771_v46  ;;  %v2796_v59 = vcombine.high %v2739_v61, %v2771_v46  ;;  %v2797_v54 = vcombine.low %v2746_v36, %v2778_v9  ;;  %v2798_v30 = vcombine.high %v2746_v36, %v2778_v9 }
 0x3c8   : > { %v2799_v57 = vcombine.low %v2755_v32, %v2787_v42  ;;  %v2800_v5 = vcombine.high %v2755_v32, %v2787_v42  ;;  %v2801_v22 = vcombine.low %v2762_v49, %v2794_v58  ;;  %v2802_v35 = vcombine.high %v2762_v49, %v2794_v58 }
 0x3c9   : > { %2831 = vrot.lane.b32.xlu1 %v2662_v28, %s7460_s23  ;;  %2821 = vrot.lane.b32.xlu0 %v2795_v3, %s7460_s23 }
 0x3cd   : > { %2835 = vrot.lane.b32.xlu1 %v2663_v0, %s7460_s23  ;;  %2825 = vrot.lane.b32.xlu0 %v2796_v59, %s7460_s23 }
 0x3d1   : > { %2839 = vrot.lane.b32.xlu1 %v2664_v34, %s7460_s23  ;;  %2829 = vrot.lane.b32.xlu0 %v2797_v54, %s7460_s23 }
 0x3d5   : > { %2843 = vrot.lane.b32.xlu1 %v2665_v43, %s7460_s23  ;;  %2833 = vrot.lane.b32.xlu0 %v2798_v30, %s7460_s23 }
 0x3d9   : > { %2847 = vrot.lane.b32.xlu1 %v2666_v23, %s7460_s23  ;;  %2837 = vrot.lane.b32.xlu0 %v2799_v57, %s7460_s23 }
 0x3dd   : > { %2841 = vrot.lane.b32.xlu0 %v2800_v5, %s7460_s23 }
 0x3e1   : > { %2845 = vrot.lane.b32.xlu0 %v2801_v22, %s7460_s23 }
 0x3e5   : > { %2849 = vrot.lane.b32.xlu0 %v2802_v35, %s7460_s23  ;;  %s7384_s23 = scalar_lea.vmem %s11814_s4, 256 }
 0x3e6   : > { %p7385_p2 = scmp.ne.s32.totalorder %s11814_s4, %s7384_s23 }
 0x3e8   : > { %p7386_p4 = pnand %p7385_p2, %p12409_p0 }
 0x3ea   : > { %p7387_p5 = pneg %p7386_p4 }
 0x42f   : > { %v2820_v44 = vpop.permute.xlu1 %2819 }
 0x430   : > { %2867 = vst.msk [vmem:[#allocation3 + $0x1] sm:$0xff] %vm293_vm2, %v2820_v44 }
 0x433   : > { %v2824_v6 = vpop.permute.xlu1 %2823 }
 0x434   : > { %2869 = vst.msk [vmem:[#allocation3 + $0x19] sm:$0xff] %vm293_vm2, %v2824_v6 }
 0x437   : > { %v2828_v20 = vpop.permute.xlu1 %2827  ;;  %v9415_v10 = vld [vmem:[#allocation3] sm:$0xff] }
 0x438   : > { %2871 = vst.msk [vmem:[#allocation3 + $0x31] sm:$0xff] %vm293_vm2, %v2828_v20  ;;  %3655 = vrot.lane.b32.xlu1 %v9415_v10, %s7463_s30  ;;  %3265 = vrot.lane.b32.xlu0 %v9415_v10, %s7461_s26  ;;  %v4053_v16 = vrot.slane %v9415_v10, 1  ;;  %v5231_v21 = vrot.slane %v9415_v10, 2 }
 0x43b   : > { %v2832_v63 = vpop.permute.xlu1 %2831  ;;  %v2822_v12 = vpop.permute.xlu0 %2821  ;;  %v9422_v50 = vld [vmem:[#allocation3 + $0x18] sm:$0xff] }
 0x43c   : > { %2873 = vst.msk [vmem:[#allocation3 + $0x49] sm:$0xff] %vm293_vm2, %v2832_v63  ;;  %2868 = vst.msk [vmem:[#allocation3 + $0x9] sm:$0xff] %vm293_vm2, %v2822_v12  ;;  %3269 = vrot.lane.b32.xlu0 %v9422_v50, %s7461_s26  ;;  %v4058_v40 = vrot.slane %v9422_v50, 1  ;;  %v5236_v57 = vrot.slane %v9422_v50, 2 }
 0x43f   : > { %v2836_v11 = vpop.permute.xlu1 %2835  ;;  %v2826_v51 = vpop.permute.xlu0 %2825  ;;  %v2889_v33 = vld [vmem:[#allocation3 + $0x30] sm:$0xff] }
 0x440   : > { %2875 = vst.msk [vmem:[#allocation3 + $0x61] sm:$0xff] %vm293_vm2, %v2836_v11  ;;  %2870 = vst.msk [vmem:[#allocation3 + $0x21] sm:$0xff] %vm293_vm2, %v2826_v51  ;;  %3663 = vrot.lane.b32.xlu1 %v2889_v33, %s7463_s30  ;;  %3273 = vrot.lane.b32.xlu0 %v2889_v33, %s7461_s26  ;;  %v2907_v55 = vcombine.low %v9415_v10, %v2889_v33  ;;  %v2908_v26 = vcombine.high %v9415_v10, %v2889_v33  ;;  %v5241_v14 = vrot.slane %v2889_v33, 2 }
 0x441   : > { %v4063_v34 = vrot.slane %v2889_v33, 1 }
 0x442   : > { %v9458_v60 = vrot.slane %v2907_v55, %v12115_v27  ;;  %v9464_v39 = vrot.slane %v2908_v26, %v12115_v27 }
 0x443   : > { %v2840_v25 = vpop.permute.xlu1 %2839  ;;  %v2830_v18 = vpop.permute.xlu0 %2829  ;;  %v9434_v7 = vld [vmem:[#allocation3 + $0x48] sm:$0xff]  ;;  %v2885_v35 = vld [vmem:[#allocation3 + $0x10] sm:$0x3] }
 0x444   : > { %v9436_v48 = vld [vmem:[#allocation3 + $0x8] sm:$0xff]  ;;  %2877 = vst.msk [vmem:[#allocation3 + $0x79] sm:$0xff] %vm293_vm2, %v2840_v25  ;;  %2872 = vst.msk [vmem:[#allocation3 + $0x39] sm:$0xff] %vm293_vm2, %v2830_v18  ;;  %3277 = vrot.lane.b32.xlu0 %v9434_v7, %s7461_s26  ;;  %v2923_v56 = vcombine.low %v9422_v50, %v9434_v7  ;;  %v2924_v53 = vcombine.high %v9422_v50, %v9434_v7  ;;  %v5246_v8 = vrot.slane %v9434_v7, 2  ;;  %v5234_v11 = vrot.slane %v2885_v35, 2 }
 0x445   : > { %v4054_v38 = vrot.slane %v9436_v48, 1  ;;  %v5232_v4 = vrot.slane %v9436_v48, 2  ;;  %v4056_v33 = vrot.slane %v2885_v35, 1 }
 0x446   : > { %v9461_v62 = vrot.slane %v2923_v56, %v12115_v27  ;;  %v9467_v3 = vrot.slane %v2924_v53, %v12115_v27 }
 0x447   : > { %v9451_v45 = vsel %vm999_vm4, %v4053_v16, %v4054_v38  ;;  %v2844_v61 = vpop.permute.xlu1 %2843  ;;  %v2834_v46 = vpop.permute.xlu0 %2833  ;;  %v9453_v28 = vld [vmem:[#allocation3 + $0x60] sm:$0xff]  ;;  %v9527_v23 = vsel %vm1694_vm3, %v5231_v21, %v5232_v4  ;;  %v2888_v10 = vld [vmem:[#allocation3 + $0x28] sm:$0x3] }
 0x448   : > { %12117 = vst [vmem:[#allocation29_spill] sm:$0xff] %v9451_v45  ;;  %v9455_v15 = vld [vmem:[#allocation3 + $0x20] sm:$0xff]  ;;  %2879 = vst.msk [vmem:[#allocation3 + $0x91] sm:$0xff] %vm293_vm2, %v2844_v61  ;;  %3671 = vrot.lane.b32.xlu1 %v9453_v28, %s7463_s30  ;;  %3281 = vrot.lane.b32.xlu0 %v9453_v28, %s7461_s26  ;;  %v2972_v31 = vcombine.high %v9458_v60, %v9461_v62  ;;  %v2987_v2 = vcombine.low %v9464_v39, %v9467_v3  ;;  %v5239_v55 = vrot.slane %v2888_v10, 2 }
 0x449   : > { %2874 = vst.msk [vmem:[#allocation3 + $0x51] sm:$0xff] %vm293_vm2, %v2834_v46  ;;  %v4059_v24 = vrot.slane %v9455_v15, 1  ;;  %v2988_v0 = vcombine.high %v9464_v39, %v9467_v3  ;;  %v5237_v17 = vrot.slane %v9455_v15, 2  ;;  %12120 = vst [vmem:[#allocation16_spill] sm:$0xff] %v9527_v23  ;;  %v4061_v18 = vrot.slane %v2888_v10, 1 }
 0x44a   : > { %v9567_v61 = vsel %vm1694_vm3, %v5232_v4, %v5234_v11  ;;  %v9572_v46 = vsel %vm999_vm4, %v4054_v38, %v4056_v33  ;;  %v9612_v10 = vrot.slane %v2972_v31, %v12116_v37  ;;  %v9618_v11 = vrot.slane %v2987_v2, %v12116_v37 }
 0x44b   : > { %v9484_v29 = vsel %vm999_vm4, %v4058_v40, %v4059_v24  ;;  %v2848_v13 = vpop.permute.xlu1 %2847  ;;  %v2838_v41 = vpop.permute.xlu0 %2837  ;;  %v9488_v59 = vld [vmem:[#allocation3 + $0x78] sm:$0xff]  ;;  %v9535_v49 = vsel %vm1694_vm3, %v5236_v57, %v5237_v17  ;;  %v2891_v51 = vld [vmem:[#allocation3 + $0x40] sm:$0x3]  ;;  %v9588_v38 = vsel %vm999_vm4, %v4059_v24, %v4061_v18  ;;  %v9633_v31 = vrot.slane %v2988_v0, %v12116_v37 }
 0x44c   : > { %12118 = vst [vmem:[#allocation18_spill] sm:$0xff] %v9484_v29  ;;  %v9490_v9 = vld [vmem:[#allocation3 + $0x38] sm:$0xff]  ;;  %2881 = vst.msk [vmem:[#allocation3 + $0xa9] sm:$0xff] %vm293_vm2, %v2848_v13  ;;  %3285 = vrot.lane.b32.xlu0 %v9488_v59, %s7461_s26  ;;  %v4066_v56 = vrot.slane %v2891_v51, 1 }
 0x44d   : > { %2876 = vst.msk [vmem:[#allocation3 + $0x69] sm:$0xff] %vm293_vm2, %v2838_v41  ;;  %v5242_v36 = vrot.slane %v9490_v9, 2  ;;  %v4064_v1 = vrot.slane %v9490_v9, 1  ;;  %v9579_v41 = vsel %vm1694_vm3, %v5237_v17, %v5239_v55 }
 0x44f   : > { %v9510_v43 = vsel %vm1694_vm3, %v5241_v14, %v5242_v36  ;;  %v9515_v30 = vsel %vm999_vm4, %v4063_v34, %v4064_v1  ;;  %v2842_v42 = vpop.permute.xlu0 %2841  ;;  %v9517_v32 = vld [vmem:[#allocation3 + $0x90] sm:$0xff]  ;;  %v5244_v14 = vrot.slane %v2891_v51, 2  ;;  %v9604_v35 = vsel %vm999_vm4, %v4064_v1, %v4066_v56 }
 0x450   : > { %12119 = vst [vmem:[#allocation19_spill] sm:$0xff] %v9515_v30  ;;  %v9519_v47 = vld [vmem:[#allocation3 + $0x50] sm:$0xff]  ;;  %2878 = vst.msk [vmem:[#allocation3 + $0x81] sm:$0xff] %vm293_vm2, %v2842_v42  ;;  %3679 = vrot.lane.b32.xlu1 %v9517_v32, %s7463_s30  ;;  %3289 = vrot.lane.b32.xlu0 %v9517_v32, %s7461_s26  ;;  %v5288_v58 = vcombine.high %v9527_v23, %v9510_v43  ;;  %v9562_v16 = vld [vmem:[#allocation3 + $0x58] sm:$0x3] }
 0x451   : > { %v5247_v5 = vrot.slane %v9519_v47, 2  ;;  %v5249_v4 = vrot.slane %v9562_v16, 2  ;;  %v9623_v1 = vsel %vm1694_vm3, %v5242_v36, %v5244_v14  ;;  %v4069_v2 = vrot.slane %v9519_v47, 1 }
 0x452   : > { %v9550_v63 = vrot.slane %v5288_v58, %v12115_v27  ;;  %12123 = vst [vmem:[#allocation22_spill] sm:$0xff] %v9623_v1  ;;  %v4071_v54 = vrot.slane %v9562_v16, 1 }
 0x453   : > { %v9538_v22 = vsel %vm1694_vm3, %v5246_v8, %v5247_v5  ;;  %v2846_v44 = vpop.permute.xlu0 %2845  ;;  %v9540_v6 = vld [vmem:[#allocation3 + $0xa8] sm:$0xff]  ;;  %v5261_v8 = vrot.slane %v9517_v32, 2  ;;  %v9640_v36 = vsel %vm1694_vm3, %v5247_v5, %v5249_v4 }
 0x454   : > { %v5304_v20 = vcombine.high %v9535_v49, %v9538_v22  ;;  %2880 = vst.msk [vmem:[#allocation3 + $0x99] sm:$0xff] %vm293_vm2, %v2846_v44  ;;  %3293 = vrot.lane.b32.xlu0 %v9540_v6, %s7461_s26  ;;  %3267 = vrot.lane.b32.xlu1 %v9436_v48, %s7461_s26  ;;  %12121 = vst [vmem:[#allocation17_spill] sm:$0xff] %v9550_v63  ;;  %v9564_v53 = vld [vmem:[#allocation3 + $0x68] sm:$0xff]  ;;  %v2897_v24 = vld [vmem:[#allocation3 + $0x70] sm:$0x3]  ;;  %v5256_v44 = vrot.slane %v9488_v59, 2 }
 0x455   : > { %v5252_v17 = vrot.slane %v9564_v53, 2  ;;  %12125 = vst [vmem:[#allocation24_spill] sm:$0xff] %v9640_v36  ;;  %v5254_v18 = vrot.slane %v2897_v24, 2  ;;  %v5266_v3 = vrot.slane %v9540_v6, 2  ;;  %v4074_v5 = vrot.slane %v9564_v53, 1 }
 0x456   : > { %v9553_v12 = vrot.slane %v5304_v20, %v12115_v27 }
 0x457   : > { %v2850_v26 = vpop.permute.xlu0 %2849  ;;  %v9575_v13 = vld [vmem:[#allocation3 + $0x80] sm:$0xff]  ;;  %v2900_v33 = vld [vmem:[#allocation3 + $0x88] sm:$0x3] }
 0x458   : > { %12122 = vst [vmem:[#allocation23_spill] sm:$0xff] %v9553_v12  ;;  %2882 = vst.msk [vmem:[#allocation3 + $0xb1] sm:$0xff] %vm293_vm2, %v2850_v26  ;;  %3659 = vrot.lane.b32.xlu0 %v9422_v50, %s7463_s30  ;;  %3271 = vrot.lane.b32.xlu1 %v9455_v15, %s7461_s26  ;;  %v5251_v50 = vrot.slane %v9453_v28, 2  ;;  %v5257_v20 = vrot.slane %v9575_v13, 2  ;;  %v5259_v25 = vrot.slane %v2900_v33, 2  ;;  %v4079_v40 = vrot.slane %v9575_v13, 1 }
 0x459   : > { %v4081_v34 = vrot.slane %v2900_v33, 1  ;;  %v9682_v33 = vsel %vm1694_vm3, %v5252_v17, %v5254_v18  ;;  %v4083_v18 = vrot.slane %v9517_v32, 1 }
 0x45a   : > { %v9649_v39 = vsel %vm1694_vm3, %v5251_v50, %v5252_v17  ;;  %v9655_v4 = vsel %vm1694_vm3, %v5256_v44, %v5257_v20  ;;  %v4076_v44 = vrot.slane %v2897_v24, 1  ;;  %v9697_v42 = vsel %vm1694_vm3, %v5257_v20, %v5259_v25 }
 0x45b   : > { %v9582_v21 = vld [vmem:[#allocation3 + $0x98] sm:$0xff]  ;;  %v2903_v56 = vld [vmem:[#allocation3 + $0xa0] sm:$0x3] }
 0x45c   : > { %3667 = vrot.lane.b32.xlu0 %v9434_v7, %s7463_s30  ;;  %3275 = vrot.lane.b32.xlu1 %v9490_v9, %s7461_s26  ;;  %v5262_v58 = vrot.slane %v9582_v21, 2  ;;  %v4084_v52 = vrot.slane %v9582_v21, 1  ;;  %v4086_v19 = vrot.slane %v2903_v56, 1  ;;  %v5264_v16 = vrot.slane %v2903_v56, 2 }
 0x45d   : > { %v9700_v17 = vsel %vm999_vm4, %v4074_v5, %v4076_v44 }
 0x45e   : > { %v9626_v51 = vsel %vm1694_vm3, %v5261_v8, %v5262_v58  ;;  %v9688_v1 = vsel %vm999_vm4, %v4084_v52, %v4086_v19  ;;  %v12128_v19 = vcombine.low %v9451_v45, %v9515_v30 }
 0x45f   : > { %12124 = vst [vmem:[#allocation25_spill] sm:$0xff] %v9626_v51  ;;  %v9635_v26 = vld [vmem:[#allocation3 + $0xb0] sm:$0xff]  ;;  %v5320_v8 = vcombine.high %v9649_v39, %v9626_v51  ;;  %v2906_v50 = vld [vmem:[#allocation3 + $0xb8] sm:$0x3] }
 0x460   : > { %3675 = vrot.lane.b32.xlu0 %v9488_v59, %s7463_s30  ;;  %3279 = vrot.lane.b32.xlu1 %v9519_v47, %s7461_s26  ;;  %v5267_v0 = vrot.slane %v9635_v26, 2  ;;  %v5269_v63 = vrot.slane %v2906_v50, 2  ;;  %v4089_v56 = vrot.slane %v9635_v26, 1  ;;  %v4091_v57 = vrot.slane %v2906_v50, 1 }
 0x461   : > { %v9679_v24 = vrot.slane %v5320_v8, %v12115_v27  ;;  %v9716_v25 = vrot.slane %v12128_v19, %v12115_v27  ;;  %v2939_v50 = vcombine.low %v9453_v28, %v9517_v32 }
 0x462   : > { %v9661_v14 = vsel %vm1694_vm3, %v5266_v3, %v5267_v0  ;;  %v9691_v3 = vsel %vm999_vm4, %v4069_v2, %v4071_v54  ;;  %v9710_v54 = vsel %vm1694_vm3, %v5262_v58, %v5264_v16  ;;  %v9728_v58 = vsel %vm1694_vm3, %v5267_v0, %v5269_v63 }
 0x463   : > { %v5336_v55 = vcombine.high %v9655_v4, %v9661_v14  ;;  %12126 = vst [vmem:[#allocation21_spill] sm:$0xff] %v9679_v24  ;;  %v9735_v19 = vsel %vm999_vm4, %v4089_v56, %v4091_v57  ;;  %v12133_v63 = vrot.slane %v9434_v7, 1  ;;  %v4088_v16 = vrot.slane %v9540_v6, 1 }
 0x464   : > { %3683 = vrot.lane.b32.xlu0 %v9540_v6, %s7463_s30  ;;  %3283 = vrot.lane.b32.xlu1 %v9564_v53, %s7461_s26 }
 0x465   : > { %v9685_v12 = vrot.slane %v5336_v55, %v12115_v27  ;;  %v9703_v55 = vsel %vm999_vm4, %v4079_v40, %v4081_v34  ;;  %v12129_v34 = vcombine.high %v9451_v45, %v9515_v30  ;;  %v9743_v30 = vsel %vm999_vm4, %v4083_v18, %v4084_v52 }
 0x466   : > { %12132 = vst [vmem:[#allocation31_spill] sm:$0xff] %v9743_v30  ;;  %v9748_v0 = vsel %vm999_vm4, %v12133_v63, %v4069_v2  ;;  %v12135_v2 = vrot.slane %v9488_v59, 1  ;;  %v2955_v63 = vcombine.low %v9488_v59, %v9540_v6 }
 0x467   : > { %12127 = vst [vmem:[#allocation20_spill] sm:$0xff] %v9685_v12  ;;  %v9722_v20 = vrot.slane %v12129_v34, %v12115_v27  ;;  %v12130_v34 = vrot.slane %v9453_v28, 1  ;;  %12134 = vst [vmem:[#allocation33_spill] sm:$0xff] %v9748_v0  ;;  %v4126_v52 = vcombine.high %v9484_v29, %v9748_v0 }
 0x468   : > { %3657 = vrot.lane.b32.xlu0 %v9436_v48, %s7463_s30  ;;  %3287 = vrot.lane.b32.xlu1 %v9575_v13, %s7461_s26  ;;  %v9769_v18 = vsel %vm999_vm4, %v12135_v2, %v4079_v40 }
 0x469   : > { %v9740_v8 = vsel %vm999_vm4, %v12130_v34, %v4074_v5  ;;  %v4125_v5 = vcombine.low %v9484_v29, %v9748_v0  ;;  %12136 = vst [vmem:[#allocation32_spill] sm:$0xff] %v9769_v18  ;;  %v9788_v2 = vrot.slane %v4126_v52, %v12115_v27  ;;  %v9791_v34 = vsel %vm999_vm4, %v4088_v16, %v4089_v56 }
 0x46a   : > { %12131 = vst [vmem:[#allocation30_spill] sm:$0xff] %v9740_v8  ;;  %v4141_v57 = vcombine.low %v9740_v8, %v9743_v30  ;;  %v4142_v44 = vcombine.high %v9740_v8, %v9743_v30  ;;  %12137 = vst [vmem:[#allocation35_spill] sm:$0xff] %v9791_v34  ;;  %v4158_v29 = vcombine.high %v9769_v18, %v9791_v34 }
 0x46b   : > { %v9785_v40 = vrot.slane %v4125_v5, %v12115_v27  ;;  %v2947_v30 = vrot.slane %v2939_v50, %v12115_v27  ;;  %v2963_v8 = vrot.slane %v2955_v63, %v12115_v27  ;;  %v3059_v56 = vcombine.low %v9455_v15, %v9519_v47 }
 0x46c   : > { %3665 = vrot.lane.b32.xlu0 %v9490_v9, %s7463_s30  ;;  %3291 = vrot.lane.b32.xlu1 %v9582_v21, %s7461_s26  ;;  %v9779_v7 = vrot.slane %v4141_v57, %v12115_v27  ;;  %v9782_v0 = vrot.slane %v4142_v44, %v12115_v27  ;;  %v12138_v44 = vcombine.low %v9436_v48, %v9490_v9 }
 0x46d   : > { %v3075_v16 = vcombine.low %v9564_v53, %v9582_v21  ;;  %v3091_v5 = vcombine.low %v9575_v13, %v9635_v26  ;;  %v9831_v45 = vrot.slane %v4158_v29, %v12115_v27  ;;  %v2940_v50 = vcombine.high %v9453_v28, %v9517_v32 }
 0x46e   : > { %v9801_v57 = vrot.slane %v12138_v44, %v12115_v27  ;;  %v4157_v44 = vcombine.low %v9769_v18, %v9791_v34  ;;  %v2956_v63 = vcombine.high %v9488_v59, %v9540_v6  ;;  %v3004_v34 = vcombine.high %v2947_v30, %v2963_v8 }
 0x46f   : > { %v3067_v18 = vrot.slane %v3059_v56, %v12115_v27  ;;  %v3099_v12 = vrot.slane %v3091_v5, %v12115_v27  ;;  %v3060_v59 = vcombine.high %v9455_v15, %v9519_v47  ;;  %v3076_v32 = vcombine.high %v9564_v53, %v9582_v21 }
 0x470   : > { %3673 = vrot.lane.b32.xlu0 %v9564_v53, %s7463_s30  ;;  %3295 = vrot.lane.b32.xlu1 %v9635_v26, %s7461_s26  ;;  %v9828_v52 = vrot.slane %v4157_v44, %v12115_v27  ;;  %v3083_v44 = vrot.slane %v3075_v16, %v12115_v27  ;;  %v3018_v6 = vrot.slane %v3004_v34, %v12116_v37 }
 0x471   : > { %v3108_v56 = vcombine.high %v9801_v57, %v3067_v18  ;;  %v2954_v16 = vrot.slane %v2940_v50, %v12115_v27  ;;  %v2970_v24 = vrot.slane %v2956_v63, %v12115_v27 }
 0x472   : > { %v4205_v29 = vcombine.low %v9779_v7, %v9828_v52  ;;  %v4206_v28 = vcombine.high %v9779_v7, %v9828_v52  ;;  %v12139_v7 = vcombine.high %v9436_v48, %v9490_v9  ;;  %v3037_v34 = vcombine.low %v9612_v10, %v3018_v6 }
 0x473   : > { %v3122_v5 = vrot.slane %v3108_v56, %v12116_v37  ;;  %v3140_v50 = vcombine.high %v3083_v44, %v3099_v12  ;;  %v3019_v63 = vcombine.low %v2954_v16, %v2970_v24  ;;  %v3074_v48 = vrot.slane %v3060_v59, %v12115_v27 }
 0x474   : > { %3681 = vrot.lane.b32.xlu0 %v9582_v21, %s7463_s30  ;;  %3661 = vrot.lane.b32.xlu1 %v9455_v15, %s7463_s30  ;;  %v3058_v52 = vrot.slane %v12139_v7, %v12115_v27  ;;  %v3090_v9 = vrot.slane %v3076_v32, %v12115_v27  ;;  %v3092_v15 = vcombine.high %v9575_v13, %v9635_v26 }
 0x475   : > { %v3154_v53 = vrot.slane %v3140_v50, %v12116_v37  ;;  %v3020_v21 = vcombine.high %v2954_v16, %v2970_v24  ;;  %v3027_v56 = vrot.slane %v3019_v63, %v12116_v37 }
 0x476   : > { %v3106_v36 = vrot.slane %v3092_v15, %v12115_v27  ;;  %v3123_v59 = vcombine.low %v3058_v52, %v3074_v48  ;;  %v3124_v51 = vcombine.high %v3058_v52, %v3074_v48  ;;  %v3139_v15 = vcombine.low %v3083_v44, %v3099_v12 }
 0x477   : > { %v3173_v24 = vcombine.low %v3122_v5, %v3154_v53  ;;  %v3034_v32 = vrot.slane %v3020_v21, %v12116_v37  ;;  %v12143_v21 = vcombine.low %v9716_v25, %v9785_v40 }
 0x478   : > { %6019 = vrot.lane.b32.xlu0 %v9527_v23, %s7463_s30  ;;  %3669 = vrot.lane.b32.xlu1 %v9519_v47, %s7463_s30  ;;  %v12140_v47 = vcombine.low %v9458_v60, %v9461_v62  ;;  %v3003_v23 = vcombine.low %v2947_v30, %v2963_v8  ;;  %v3039_v62 = vcombine.low %v9618_v11, %v3027_v56 }
 0x479   : > { %v3131_v30 = vrot.slane %v3123_v59, %v12116_v37  ;;  %v3155_v8 = vcombine.low %v3090_v9, %v3106_v36  ;;  %v3138_v16 = vrot.slane %v3124_v51, %v12116_v37  ;;  %v9894_v52 = vpack.i.bf16 %v3173_v24, %v3037_v34 }
 0x47a   : > { %v9879_v7 = vrot.slane %v12140_v47, %v12116_v37  ;;  %v9889_v60 = vrot.slane %v3003_v23, %v12116_v37  ;;  %v3041_v50 = vcombine.low %v9633_v31, %v3034_v32  ;;  %v3156_v63 = vcombine.high %v3090_v9, %v3106_v36 }
 0x47b   : > { %v3163_v48 = vrot.slane %v3155_v8, %v12116_v37  ;;  %v3107_v23 = vcombine.low %v9801_v57, %v3067_v18  ;;  %v9905_v47 = vrot.slane %v12143_v21, %v12116_v37  ;;  %v9913_v36 = vrot.slane %v4205_v29, %v12116_v37 }
 0x47c   : > { %12141 = vst [vmem:[#allocation34_spill] sm:$0xff] %v9879_v7  ;;  %6023 = vrot.lane.b32.xlu0 %v9535_v49, %s7463_s30  ;;  %3677 = vrot.lane.b32.xlu1 %v9575_v13, %s7463_s30  ;;  %12142 = vst [vmem:[#allocation27_spill] sm:$0xff] %v9889_v60  ;;  %v3036_v13 = vcombine.high %v9879_v7, %v9889_v60  ;;  %v3170_v51 = vrot.slane %v3156_v63, %v12116_v37 }
 0x47d   : > { %12144 = vst [vmem:[#allocation28_spill] sm:$0xff] %v9905_v47  ;;  %12145 = vst [vmem:[#allocation26_spill] sm:$0xff] %v9913_v36  ;;  %v3038_v18 = vcombine.high %v9612_v10, %v3018_v6  ;;  %v3175_v12 = vcombine.low %v3131_v30, %v3163_v48  ;;  %v9917_v57 = vrot.slane %v3107_v23, %v12116_v37 }
 0x47e   : > { %v9920_v44 = vrot.slane %v3139_v15, %v12116_v37  ;;  %v3174_v34 = vcombine.high %v3122_v5, %v3154_v53  ;;  %v3177_v9 = vcombine.low %v3138_v16, %v3170_v51  ;;  %v9931_v10 = vrot.slane %v4206_v28, %v12116_v37 }
 0x47f   : > { %12146 = vst [vmem:[#allocation14_spill] sm:$0xff] %v9917_v57  ;;  %v9933_v6 = vpack.i.bf16 %v3175_v12, %v3039_v62  ;;  %v3040_v5 = vcombine.high %v9618_v11, %v3027_v56  ;;  %v3176_v28 = vcombine.high %v3131_v30, %v3163_v48  ;;  %v3042_v63 = vcombine.high %v9633_v31, %v3034_v32 }
 0x480   : > { %6027 = vrot.lane.b32.xlu0 %v9510_v43, %s7463_s30  ;;  %3685 = vrot.lane.b32.xlu1 %v9635_v26, %s7463_s30  ;;  %12147 = vst [vmem:[#allocation15_spill] sm:$0xff] %v9920_v44  ;;  %v12148_v26 = vcombine.high %v9716_v25, %v9785_v40  ;;  %12150 = vst [vmem:[#allocation37_spill] sm:$0xff] %v9931_v10  ;;  %v3172_v24 = vcombine.high %v9917_v57, %v9920_v44  ;;  %v12197_v44 = vld [vmem:[#allocation23_spill] sm:$0xff] }
 0x481   : > { %12151 = vst [vmem:[#allocation38_spill] sm:$0xff] %v9933_v6  ;;  %v9937_v8 = vpack.i.bf16 %v3174_v34, %v3038_v18  ;;  %v9944_v25 = vpack.i.bf16 %v3177_v9, %v3041_v50  ;;  %v3178_v11 = vcombine.high %v3138_v16, %v3170_v51  ;;  %v5335_v56 = vcombine.low %v9655_v4, %v9661_v14 }
 0x482   : > { %v9928_v29 = vrot.slane %v12148_v26, %v12116_v37  ;;  %v9948_v53 = vpack.i.bf16 %v3172_v24, %v3036_v13  ;;  %v9955_v23 = vpack.i.bf16 %v3176_v28, %v3040_v5  ;;  %v12156_v50 = vcombine.low %v9722_v20, %v9788_v2  ;;  %v12165_v26 = vld [vmem:[#allocation22_spill] sm:$0xff] }
 0x483   : > { %12152 = vst [vmem:[#allocation39_spill] sm:$0xff] %v9937_v8  ;;  %12153 = vst [vmem:[#allocation40_spill] sm:$0xff] %v9944_v25  ;;  %v12158_v30 = vcombine.low %v9782_v0, %v9831_v45  ;;  %v5455_v31 = vcombine.low %v9682_v33, %v9710_v54  ;;  %v12160_v32 = vcombine.high %v9588_v38, %v9691_v3 }
 0x484   : > { %12149 = vst [vmem:[#allocation36_spill] sm:$0xff] %v9928_v29  ;;  %6031 = vrot.lane.b32.xlu0 %v9538_v22, %s7463_s30  ;;  %6021 = vrot.lane.b32.xlu1 %v9567_v61, %s7463_s30  ;;  %12154 = vst [vmem:[#allocation41_spill] sm:$0xff] %v9948_v53  ;;  %v9961_v15 = vrot.slane %v12156_v50, %v12116_v37  ;;  %v12161_v48 = vcombine.low %v9703_v55, %v9735_v19 }
 0x485   : > { %12155 = vst [vmem:[#allocation42_spill] sm:$0xff] %v9955_v23  ;;  %v9967_v13 = vrot.slane %v12158_v30, %v12116_v37  ;;  %v9975_v16 = vrot.slane %v12160_v32, %v12115_v27  ;;  %v9983_v51 = vpack.i.bf16 %v3178_v11, %v3042_v63  ;;  %v12164_v18 = vcombine.high %v9703_v55, %v9735_v19 }
 0x486   : > { %12157 = vst [vmem:[#allocation43_spill] sm:$0xff] %v9961_v15  ;;  %v9981_v21 = vrot.slane %v12161_v48, %v12115_v27  ;;  %v5423_v24 = vcombine.low %v9567_v61, %v12165_v26  ;;  %v12166_v5 = vcombine.low %v9697_v42, %v9728_v58  ;;  %v12168_v63 = vcombine.low %v9572_v46, %v9604_v35 }
 0x487   : > { %12159 = vst [vmem:[#allocation44_spill] sm:$0xff] %v9967_v13  ;;  %12163 = vst [vmem:[#allocation46_spill] sm:$0xff] %v9983_v51  ;;  %v9993_v12 = vrot.slane %v12164_v18, %v12115_v27  ;;  %v12169_v50 = vcombine.low %v9588_v38, %v9691_v3  ;;  %v10020_v32 = vrot.slane %v5335_v56, %v12115_v27 }
 0x488   : > { %12162 = vst [vmem:[#allocation45_spill] sm:$0xff] %v9981_v21  ;;  %6035 = vrot.lane.b32.xlu0 %v9649_v39, %s7463_s30  ;;  %6025 = vrot.lane.b32.xlu1 %v9579_v41, %s7463_s30  ;;  %v10005_v28 = vrot.slane %v12166_v5, %v12115_v27  ;;  %v10011_v11 = vrot.slane %v12168_v63, %v12115_v27 }
 0x489   : > { %v10017_v30 = vrot.slane %v12169_v50, %v12115_v27  ;;  %12170 = vst [vmem:[#allocation47_spill] sm:$0xff] %v10020_v32  ;;  %v12171_v48 = vcombine.high %v9572_v46, %v9604_v35  ;;  %v12172_v5 = vcombine.low %v9700_v17, %v9688_v1  ;;  %v12174_v50 = vcombine.high %v9700_v17, %v9688_v1 }
 0x48a   : > { %12167 = vst [vmem:[#allocation22_spill] sm:$0xff] %v10005_v28  ;;  %v12175_v56 = vcombine.low %v9535_v49, %v9538_v22  ;;  %v10078_v23 = vrot.slane %v5423_v24, %v12115_v27 }
 0x48b   : > { %v10026_v18 = vrot.slane %v12171_v48, %v12115_v27  ;;  %v10032_v63 = vrot.slane %v12172_v5, %v12115_v27  ;;  %v10038_v9 = vrot.slane %v12174_v50, %v12115_v27  ;;  %v12177_v48 = vld [vmem:[#allocation25_spill] sm:$0xff]  ;;  %v12180_v5 = vld [vmem:[#allocation24_spill] sm:$0xff]  ;;  %v10059_v50 = vrot.slane %v5455_v31, %v12115_v27 }
 0x48c   : > { %v10044_v34 = vrot.slane %v12175_v56, %v12115_v27  ;;  %v12178_v62 = vcombine.low %v9649_v39, %v12177_v48  ;;  %v12181_v59 = vcombine.low %v9579_v41, %v12180_v5  ;;  %6039 = vrot.lane.b32.xlu0 %v9655_v4, %s7463_s30  ;;  %6029 = vrot.lane.b32.xlu1 %v12165_v26, %s7463_s30 }
 0x48d   : > { %12173 = vst [vmem:[#allocation48_spill] sm:$0xff] %v10032_v63  ;;  %12182 = vst [vmem:[#allocation24_spill] sm:$0xff] %v10059_v50  ;;  %v4326_v56 = vcombine.high %v10026_v18, %v9975_v16  ;;  %v4358_v15 = vcombine.high %v10038_v9, %v9993_v12  ;;  %v5519_v8 = vcombine.low %v10059_v50, %v10005_v28 }
 0x48e   : > { %12176 = vst [vmem:[#allocation49_spill] sm:$0xff] %v10044_v34  ;;  %v10050_v40 = vrot.slane %v12178_v62, %v12115_v27  ;;  %v10056_v13 = vrot.slane %v12181_v59, %v12115_v27  ;;  %v4341_v62 = vcombine.low %v10032_v63, %v9981_v21  ;;  %v12183_v59 = vld [vmem:[#allocation16_spill] sm:$0xff]  ;;  %v4309_v10 = vcombine.low %v10011_v11, %v10017_v30 }
 0x48f   : > { %v12184_v31 = vcombine.low %v12183_v59, %v9510_v43  ;;  %v10095_v24 = vrot.slane %v4326_v56, %v12116_v37  ;;  %v10107_v21 = vrot.slane %v5519_v8, %v12116_v37  ;;  %v12193_v8 = vcombine.high %v9782_v0, %v9831_v45 }
 0x490   : > { %12179 = vst [vmem:[#allocation25_spill] sm:$0xff] %v10050_v40  ;;  %v5383_v29 = vcombine.low %v10050_v40, %v10020_v32  ;;  %v5487_v25 = vcombine.low %v10078_v23, %v10056_v13  ;;  %6043 = vrot.lane.b32.xlu0 %v12177_v48, %s7463_s30  ;;  %6033 = vrot.lane.b32.xlu1 %v12180_v5, %s7463_s30 }
 0x491   : > { %v10075_v51 = vrot.slane %v12184_v31, %v12115_v27  ;;  %12186 = vst [vmem:[#allocation50_spill] sm:$0xff] %v10095_v24  ;;  %v10098_v31 = vrot.slane %v4358_v15, %v12116_v37  ;;  %v10101_v6 = vrot.slane %v4341_v62, %v12116_v37  ;;  %v10104_v63 = vrot.slane %v4309_v10, %v12116_v37  ;;  %v12196_v15 = vld [vmem:[#allocation17_spill] sm:$0xff] }
 0x492   : > { %12190 = vst [vmem:[#allocation54_spill] sm:$0xff] %v10107_v21  ;;  %v10114_v56 = vrot.slane %v5383_v29, %v12116_v37  ;;  %v12192_v10 = vcombine.high %v9722_v20, %v9788_v2  ;;  %v10128_v50 = vrot.slane %v12193_v8, %v12116_v37  ;;  %v10131_v28 = vrot.slane %v5487_v25, %v12116_v37  ;;  %v12200_v20 = vld [vmem:[#allocation21_spill] sm:$0xff]  ;;  %v12201_v2 = vld [vmem:[#allocation20_spill] sm:$0xff] }
 0x493   : > { %12185 = vst [vmem:[#allocation16_spill] sm:$0xff] %v10075_v51  ;;  %v5351_v53 = vcombine.low %v10075_v51, %v10044_v34  ;;  %12187 = vst [vmem:[#allocation51_spill] sm:$0xff] %v10098_v31  ;;  %v12198_v57 = vcombine.high %v12196_v15, %v12197_v44  ;;  %v12263_v15 = vld [vmem:[#allocation40_spill] sm:$0xff] }
 0x494   : > { %12188 = vst [vmem:[#allocation52_spill] sm:$0xff] %v10101_v6  ;;  %12189 = vst [vmem:[#allocation53_spill] sm:$0xff] %v10104_v63  ;;  %v10122_v62 = vrot.slane %v12192_v10, %v12116_v37  ;;  %v12202_v10 = vcombine.high %v12200_v20, %v12201_v2  ;;  %6037 = vrot.lane.b32.xlu1 %v9682_v33, %s7463_s30  ;;  %6047 = vrot.lane.b32.xlu0 %v9661_v14, %s7463_s30 }
 0x495   : > { %12191 = vst [vmem:[#allocation55_spill] sm:$0xff] %v10114_v56  ;;  %12194 = vst [vmem:[#allocation56_spill] sm:$0xff] %v10131_v28  ;;  %v10134_v29 = vrot.slane %v5351_v53, %v12116_v37  ;;  %v10140_v60 = vrot.slane %v12198_v57, %v12116_v37 }
 0x496   : > { %v10146_v7 = vrot.slane %v12202_v10, %v12116_v37 }
 0x497   : > { %12195 = vst [vmem:[#allocation57_spill] sm:$0xff] %v10134_v29  ;;  %12199 = vst [vmem:[#allocation58_spill] sm:$0xff] %v10140_v60 }
 0x498   : > { %12203 = vst [vmem:[#allocation59_spill] sm:$0xff] %v10146_v7  ;;  %6041 = vrot.lane.b32.xlu1 %v9697_v42, %s7463_s30  ;;  %5631 = vrot.lane.b32.xlu0 %v9567_v61, %s7461_s26 }
 0x49c   : > { %6045 = vrot.lane.b32.xlu1 %v9710_v54, %s7463_s30  ;;  %5639 = vrot.lane.b32.xlu0 %v12165_v26, %s7461_s26 }
 0x4a0   : > { %6049 = vrot.lane.b32.xlu1 %v9728_v58, %s7463_s30  ;;  %5647 = vrot.lane.b32.xlu0 %v9682_v33, %s7461_s26 }
 0x4a4   : > { %5635 = vrot.lane.b32.xlu1 %v9579_v41, %s7461_s26  ;;  %5655 = vrot.lane.b32.xlu0 %v9710_v54, %s7461_s26 }
 0x4a8   : > { %5643 = vrot.lane.b32.xlu1 %v12180_v5, %s7461_s26  ;;  %5629 = vrot.lane.b32.xlu0 %v12183_v59, %s7461_s26 }
 0x4aa   : > { %v10188_v10 = vpop.permute.xlu0 %3265  ;;  %v10206_v59 = vpop.permute.xlu1 %3655 }
 0x4ac   : > { %5651 = vrot.lane.b32.xlu1 %v9697_v42, %s7461_s26  ;;  %5637 = vrot.lane.b32.xlu0 %v9510_v43, %s7461_s26 }
 0x4ae   : > { %v10194_v45 = vpop.permute.xlu0 %3269 }
 0x4b0   : > { %5659 = vrot.lane.b32.xlu1 %v9728_v58, %s7461_s26  ;;  %5645 = vrot.lane.b32.xlu0 %v9649_v39, %s7461_s26 }
 0x4b2   : > { %v10200_v57 = vpop.permute.xlu0 %3273  ;;  %v10214_v43 = vpop.permute.xlu1 %3663 }
 0x4b3   : > { %v3313_v60 = vcombine.low %v10188_v10, %v10200_v57 }
 0x4b4   : > { %5633 = vrot.lane.b32.xlu1 %v9535_v49, %s7461_s26  ;;  %5653 = vrot.lane.b32.xlu0 %v12177_v48, %s7461_s26 }
 0x4b5   : > { %v10262_v6 = vrot.slane %v3313_v60, %v12115_v27 }
 0x4b6   : > { %v10208_v53 = vpop.permute.xlu0 %3277 }
 0x4b7   : > { %12211 = vst [vmem:[#allocation67_spill] sm:$0xff] %v10262_v6 }
 0x4b8   : > { %5641 = vrot.lane.b32.xlu1 %v9538_v22, %s7461_s26  ;;  %4453 = vrot.lane.b32.xlu0 %v9572_v46, %s7461_s26 }
 0x4ba   : > { %v10216_v39 = vpop.permute.xlu0 %3281  ;;  %v3672_v49 = vpop.permute.xlu1 %3671 }
 0x4bb   : > { %12204 = vst [vmem:[#allocation60_spill] sm:$0xff] %v10216_v39 }
 0x4bc   : > { %5649 = vrot.lane.b32.xlu1 %v9655_v4, %s7461_s26  ;;  %4461 = vrot.lane.b32.xlu0 %v9604_v35, %s7461_s26  ;;  %v3329_v4 = vcombine.low %v10194_v45, %v10208_v53 }
 0x4be   : > { %v10222_v48 = vpop.permute.xlu0 %3285  ;;  %v10254_v56 = vrot.slane %v3329_v4, %v12115_v27 }
 0x4c0   : > { %5657 = vrot.lane.b32.xlu1 %v9661_v14, %s7461_s26  ;;  %4469 = vrot.lane.b32.xlu0 %v9700_v17, %s7461_s26  ;;  %12208 = vst [vmem:[#allocation64_spill] sm:$0xff] %v10254_v56 }
 0x4c2   : > { %v3680_v22 = vpop.permute.xlu1 %3679  ;;  %v10228_v25 = vpop.permute.xlu0 %3289 }
 0x4c3   : > { %12205 = vst [vmem:[#allocation61_spill] sm:$0xff] %v10228_v25  ;;  %v3345_v8 = vcombine.low %v10216_v39, %v10228_v25  ;;  %v3735_v24 = vcombine.low %v3672_v49, %v3680_v22  ;;  %v3703_v39 = vcombine.low %v10206_v59, %v10214_v43 }
 0x4c4   : > { %4457 = vrot.lane.b32.xlu1 %v9588_v38, %s7461_s26  ;;  %4477 = vrot.lane.b32.xlu0 %v9688_v1, %s7461_s26 }
 0x4c5   : > { %v10257_v28 = vrot.slane %v3345_v8, %v12115_v27 }
 0x4c6   : > { %v10238_v0 = vpop.permute.xlu1 %3267  ;;  %v10240_v14 = vpop.permute.xlu0 %3293 }
 0x4c7   : > { %12206 = vst [vmem:[#allocation62_spill] sm:$0xff] %v10238_v0  ;;  %v3361_v7 = vcombine.low %v10222_v48, %v10240_v14  ;;  %12209 = vst [vmem:[#allocation65_spill] sm:$0xff] %v10257_v28 }
 0x4c8   : > { %4465 = vrot.lane.b32.xlu1 %v9691_v3, %s7461_s26  ;;  %4843 = vrot.lane.b32.xlu0 %v9572_v46, %s7463_s30  ;;  %v3704_v46 = vcombine.high %v10206_v59, %v10214_v43  ;;  %v12223_v43 = vld [vmem:[#allocation19_spill] sm:$0xff] }
 0x4c9   : > { %v10251_v29 = vrot.slane %v3361_v7, %v12115_v27  ;;  %v3377_v7 = vcombine.low %v10262_v6, %v10254_v56 }
 0x4ca   : > { %v10259_v21 = vpop.permute.xlu1 %3271  ;;  %v3660_v63 = vpop.permute.xlu0 %3659 }
 0x4cb   : > { %12207 = vst [vmem:[#allocation63_spill] sm:$0xff] %v10251_v29  ;;  %12210 = vst [vmem:[#allocation66_spill] sm:$0xff] %v10259_v21  ;;  %v3409_v36 = vcombine.low %v10257_v28, %v10251_v29  ;;  %v10290_v29 = vrot.slane %v3377_v7, %v12116_v37 }
 0x4cc   : > { %4473 = vrot.lane.b32.xlu1 %v9703_v55, %s7461_s26  ;;  %4851 = vrot.lane.b32.xlu0 %v9604_v35, %s7463_s30  ;;  %v10284_v35 = vrot.slane %v3704_v46, %v12115_v27  ;;  %v3736_v46 = vcombine.high %v3672_v49, %v3680_v22 }
 0x4cd   : > { %v10277_v47 = vrot.slane %v3409_v36, %v12116_v37  ;;  %12216 = vst [vmem:[#allocation72_spill] sm:$0xff] %v10290_v29 }
 0x4ce   : > { %v10274_v8 = vpop.permute.xlu1 %3275  ;;  %v3668_v4 = vpop.permute.xlu0 %3667  ;;  %12214 = vst [vmem:[#allocation70_spill] sm:$0xff] %v10284_v35  ;;  %v12269_v2 = vld [vmem:[#allocation65_spill] sm:$0xff] }
 0x4cf   : > { %12212 = vst [vmem:[#allocation68_spill] sm:$0xff] %v10274_v8  ;;  %v3720_v60 = vcombine.high %v3660_v63, %v3668_v4  ;;  %12213 = vst [vmem:[#allocation69_spill] sm:$0xff] %v10277_v47 }
 0x4d0   : > { %4859 = vrot.lane.b32.xlu0 %v9700_v17, %s7463_s30  ;;  %4481 = vrot.lane.b32.xlu1 %v9735_v19, %s7461_s26 }
 0x4d1   : > { %v10287_v28 = vrot.slane %v3720_v60, %v12115_v27  ;;  %v3719_v60 = vcombine.low %v3660_v63, %v3668_v4 }
 0x4d2   : > { %v10292_v6 = vpop.permute.xlu1 %3279  ;;  %v3676_v56 = vpop.permute.xlu0 %3675 }
 0x4d3   : > { %12215 = vst [vmem:[#allocation71_spill] sm:$0xff] %v10287_v28  ;;  %12217 = vst [vmem:[#allocation73_spill] sm:$0xff] %v10292_v6  ;;  %v3784_v36 = vcombine.high %v10284_v35, %v10287_v28  ;;  %v10307_v28 = vrot.slane %v3735_v24, %v12115_v27  ;;  %v10315_v49 = vrot.slane %v3719_v60, %v12115_v27  ;;  %v12226_v60 = vld [vmem:[#allocation30_spill] sm:$0xff] }
 0x4d4   : > { %4867 = vrot.lane.b32.xlu0 %v9688_v1, %s7463_s30  ;;  %4847 = vrot.lane.b32.xlu1 %v9588_v38, %s7463_s30  ;;  %v12219_v1 = vld [vmem:[#allocation29_spill] sm:$0xff]  ;;  %v10312_v38 = vrot.slane %v3736_v46, %v12115_v27  ;;  %v3465_v29 = vcombine.low %v10259_v21, %v10292_v6 }
 0x4d6   : > { %v10302_v7 = vpop.permute.xlu1 %3283  ;;  %v3684_v31 = vpop.permute.xlu0 %3683  ;;  %12220 = vst [vmem:[#allocation29_spill] sm:$0xff] %v10312_v38 }
 0x4d7   : > { %12218 = vst [vmem:[#allocation74_spill] sm:$0xff] %v10302_v7  ;;  %v3751_v25 = vcombine.low %v3676_v56, %v3684_v31  ;;  %v3752_v35 = vcombine.high %v3676_v56, %v3684_v31  ;;  %v10330_v56 = vrot.slane %v3703_v39, %v12115_v27 }
 0x4d8   : > { %4451 = vrot.lane.b32.xlu0 %v12219_v1, %s7461_s26  ;;  %4855 = vrot.lane.b32.xlu1 %v9691_v3, %s7463_s30 }
 0x4d9   : > { %v10318_v63 = vrot.slane %v3751_v25, %v12115_v27  ;;  %v10321_v22 = vrot.slane %v3752_v35, %v12115_v27  ;;  %v3767_v4 = vcombine.low %v10330_v56, %v10315_v49 }
 0x4da   : > { %v10325_v24 = vpop.permute.xlu1 %3287  ;;  %v10327_v31 = vpop.permute.xlu0 %3657 }
 0x4db   : > { %12221 = vst [vmem:[#allocation75_spill] sm:$0xff] %v10321_v22  ;;  %12222 = vst [vmem:[#allocation76_spill] sm:$0xff] %v10325_v24  ;;  %v3799_v59 = vcombine.low %v10307_v28, %v10318_v63  ;;  %v3816_v25 = vcombine.high %v10312_v38, %v10321_v22  ;;  %v10353_v17 = vrot.slane %v3767_v4, %v12116_v37 }
 0x4dc   : > { %4459 = vrot.lane.b32.xlu0 %v12223_v43, %s7461_s26  ;;  %4863 = vrot.lane.b32.xlu1 %v9703_v55, %s7463_s30  ;;  %v3798_v55 = vrot.slane %v3784_v36, %v12116_v37  ;;  %v12229_v36 = vld [vmem:[#allocation31_spill] sm:$0xff] }
 0x4dd   : > { %v10347_v39 = vrot.slane %v3799_v59, %v12116_v37  ;;  %v3830_v46 = vrot.slane %v3816_v25, %v12116_v37  ;;  %12227 = vst [vmem:[#allocation30_spill] sm:$0xff] %v10353_v17 }
 0x4de   : > { %v10342_v3 = vpop.permute.xlu1 %3291  ;;  %v10344_v35 = vpop.permute.xlu0 %3665  ;;  %v12278_v32 = vld [vmem:[#allocation74_spill] sm:$0xff] }
 0x4df   : > { %12224 = vst [vmem:[#allocation19_spill] sm:$0xff] %v10342_v3  ;;  %12225 = vst [vmem:[#allocation77_spill] sm:$0xff] %v10347_v39  ;;  %v3481_v59 = vcombine.low %v10302_v7, %v10342_v3  ;;  %v3837_v22 = vcombine.low %v3798_v55, %v3830_v46  ;;  %v3838_v21 = vcombine.high %v3798_v55, %v3830_v46  ;;  %v12230_v7 = vld [vmem:[#allocation18_spill] sm:$0xff] }
 0x4e0   : > { %4467 = vrot.lane.b32.xlu0 %v12226_v60, %s7461_s26  ;;  %4871 = vrot.lane.b32.xlu1 %v9735_v19, %s7463_s30  ;;  %v3449_v19 = vcombine.low %v10238_v0, %v10274_v8  ;;  %v10378_v3 = vrot.slane %v3465_v29, %v12115_v27  ;;  %v12232_v0 = vcombine.low %v10122_v62, %v10128_v50 }
 0x4e2   : > { %v10362_v47 = vpop.permute.xlu1 %3295  ;;  %v3674_v25 = vpop.permute.xlu0 %3673  ;;  %12231 = vst [vmem:[#allocation31_spill] sm:$0xff] %v10378_v3  ;;  %v10386_v8 = vpack.i.bf16 %v12232_v0, %v3837_v22  ;;  %v10394_v55 = vrot.slane %v3449_v19, %v12115_v27 }
 0x4e3   : > { %12228 = vst [vmem:[#allocation78_spill] sm:$0xff] %v10362_v47  ;;  %v3497_v38 = vcombine.low %v10325_v24, %v10362_v47  ;;  %v10381_v24 = vrot.slane %v3481_v59, %v12115_v27  ;;  %v12237_v59 = vld [vmem:[#allocation33_spill] sm:$0xff] }
 0x4e4   : > { %4475 = vrot.lane.b32.xlu0 %v12229_v36, %s7461_s26  ;;  %4455 = vrot.lane.b32.xlu1 %v12230_v7, %s7461_s26  ;;  %12233 = vst [vmem:[#allocation18_spill] sm:$0xff] %v10386_v8  ;;  %12236 = vst [vmem:[#allocation80_spill] sm:$0xff] %v10394_v55  ;;  %v3513_v0 = vcombine.low %v10394_v55, %v10378_v3 }
 0x4e5   : > { %v10373_v6 = vrot.slane %v3497_v38, %v12115_v27  ;;  %v12234_v38 = vcombine.high %v10122_v62, %v10128_v50  ;;  %v5424_v62 = vcombine.high %v9567_v61, %v12165_v26 }
 0x4e6   : > { %v3662_v4 = vpop.permute.xlu1 %3661  ;;  %v3682_v47 = vpop.permute.xlu0 %3681  ;;  %v10418_v19 = vrot.slane %v3513_v0, %v12116_v37 }
 0x4e7   : > { %v10391_v46 = vpack.i.bf16 %v12234_v38, %v3838_v21  ;;  %v3545_v29 = vcombine.low %v10381_v24, %v10373_v6  ;;  %v5440_v21 = vcombine.high %v9579_v41, %v12180_v5  ;;  %v10432_v26 = vrot.slane %v5424_v62, %v12115_v27  ;;  %v12251_v5 = vld [vmem:[#allocation48_spill] sm:$0xff] }
 0x4e8   : > { %4841 = vrot.lane.b32.xlu0 %v12219_v1, %s7463_s30  ;;  %4463 = vrot.lane.b32.xlu1 %v12237_v59, %s7461_s26  ;;  %v12240_v1 = vld [vmem:[#allocation32_spill] sm:$0xff]  ;;  %v3871_v0 = vcombine.low %v3674_v25, %v3682_v47  ;;  %v5472_v62 = vcombine.high %v9697_v42, %v9728_v58  ;;  %v4357_v42 = vcombine.low %v10038_v9, %v9993_v12 }
 0x4e9   : > { %12235 = vst [vmem:[#allocation79_spill] sm:$0xff] %v10391_v46  ;;  %v10409_v50 = vrot.slane %v3545_v29, %v12116_v37  ;;  %12241 = vst [vmem:[#allocation32_spill] sm:$0xff] %v10418_v19  ;;  %v10423_v41 = vrot.slane %v5440_v21, %v12115_v27  ;;  %v12244_v29 = vld [vmem:[#allocation35_spill] sm:$0xff]  ;;  %v3872_v21 = vcombine.high %v3674_v25, %v3682_v47 }
 0x4ea   : > { %v3670_v22 = vpop.permute.xlu1 %3669  ;;  %v10404_v8 = vpop.permute.xlu0 %6019  ;;  %12243 = vst [vmem:[#allocation83_spill] sm:$0xff] %v10432_v26  ;;  %v3839_v47 = vcombine.low %v10327_v31, %v10344_v35  ;;  %v3840_v25 = vcombine.high %v10327_v31, %v10344_v35  ;;  %v10468_v31 = vrot.slane %v3871_v0, %v12115_v27 }
 0x4eb   : > { %12238 = vst [vmem:[#allocation33_spill] sm:$0xff] %v10404_v8  ;;  %12239 = vst [vmem:[#allocation81_spill] sm:$0xff] %v10409_v50  ;;  %v3855_v55 = vcombine.low %v3662_v4, %v3670_v22  ;;  %v3856_v3 = vcombine.high %v3662_v4, %v3670_v22  ;;  %v10471_v35 = vrot.slane %v3872_v21, %v12115_v27  ;;  %v12289_v51 = vld [vmem:[#allocation80_spill] sm:$0xff] }
 0x4ec   : > { %4849 = vrot.lane.b32.xlu0 %v12223_v43, %s7463_s30  ;;  %4471 = vrot.lane.b32.xlu1 %v12240_v1, %s7461_s26  ;;  %12242 = vst [vmem:[#allocation82_spill] sm:$0xff] %v10423_v41  ;;  %v5456_v43 = vcombine.high %v9682_v33, %v9710_v54  ;;  %v3768_v54 = vcombine.high %v10330_v56, %v10315_v49  ;;  %v12256_v56 = vld [vmem:[#allocation51_spill] sm:$0xff] }
 0x4ed   : > { %v10477_v12 = vrot.slane %v3856_v3, %v12115_v27  ;;  %v10496_v3 = vrot.slane %v3840_v25, %v12115_v27  ;;  %v12260_v49 = vld [vmem:[#allocation67_spill] sm:$0xff] }
 0x4ee   : > { %v3678_v38 = vpop.permute.xlu1 %3677  ;;  %v10420_v46 = vpop.permute.xlu0 %6023  ;;  %v10455_v4 = vrot.slane %v5456_v43, %v12115_v27  ;;  %v10493_v43 = vrot.slane %v3839_v47, %v12115_v27  ;;  %v3782_v44 = vrot.slane %v3768_v54, %v12116_v37 }
 0x4ef   : > { %v3920_v47 = vcombine.high %v10496_v3, %v10477_v12 }
 0x4f0   : > { %4857 = vrot.lane.b32.xlu0 %v12226_v60, %s7463_s30  ;;  %4479 = vrot.lane.b32.xlu1 %v12244_v29, %s7461_s26  ;;  %12245 = vst [vmem:[#allocation35_spill] sm:$0xff] %v10455_v4  ;;  %12247 = vst [vmem:[#allocation85_spill] sm:$0xff] %v10493_v43  ;;  %s7473_s26 = smov [#allocation10]  }
 0x4f2   : > { %v3686_v60 = vpop.permute.xlu1 %3685  ;;  %v10438_v8 = vpop.permute.xlu0 %6027 }
 0x4f3   : > { %v3887_v61 = vcombine.low %v3678_v38, %v3686_v60  ;;  %v3888_v34 = vcombine.high %v3678_v38, %v3686_v60 }
 0x4f4   : > { %4865 = vrot.lane.b32.xlu0 %v12229_v36, %s7463_s30  ;;  %4845 = vrot.lane.b32.xlu1 %v12230_v7, %s7463_s30  ;;  %v10474_v36 = vrot.slane %v3855_v55, %v12115_v27  ;;  %v3330_v7 = vcombine.high %v10194_v45, %v10208_v53  ;;  %v4325_v55 = vcombine.low %v10026_v18, %v9975_v16 }
 0x4f5   : > { %v10460_v58 = vrot.slane %v3887_v61, %v12115_v27  ;;  %v10463_v22 = vrot.slane %v3888_v34, %v12115_v27  ;;  %v10484_v34 = vrot.slane %v5472_v62, %v12115_v27  ;;  %v4310_v61 = vcombine.high %v10011_v11, %v10017_v30 }
 0x4f6   : > { %v10479_v9 = vpop.permute.xlu1 %6021  ;;  %v10481_v38 = vpop.permute.xlu0 %6031  ;;  %v3314_v30 = vcombine.high %v10188_v10, %v10200_v57  ;;  %v10513_v18 = vrot.slane %v4357_v42, %v12116_v37  ;;  %v3903_v62 = vcombine.low %v10493_v43, %v10474_v36  ;;  %v12250_v42 = vld [vmem:[#allocation45_spill] sm:$0xff] }
 0x4f7   : > { %12246 = vst [vmem:[#allocation84_spill] sm:$0xff] %v10484_v34  ;;  %v3935_v0 = vcombine.low %v10468_v31, %v10460_v58  ;;  %v3952_v21 = vcombine.high %v10471_v35, %v10463_v22  ;;  %v4342_v16 = vcombine.high %v12251_v5, %v12250_v42  ;;  %v12254_v5 = vld [vmem:[#allocation61_spill] sm:$0xff] }
 0x4f8   : > { %6981 = vrot.lane.b32.xlu0 %v9894_v52, %s7465_s28  ;;  %4853 = vrot.lane.b32.xlu1 %v12237_v59, %s7463_s30  ;;  %v3800_v52 = vcombine.high %v10307_v28, %v10318_v63  ;;  %v3362_v59 = vcombine.high %v10222_v48, %v10240_v14  ;;  %v10534_v28 = vrot.slane %v4325_v55, %v12116_v37  ;;  %v12253_v48 = vld [vmem:[#allocation38_spill] sm:$0xff]  ;;  %v12255_v55 = vld [vmem:[#allocation60_spill] sm:$0xff] }
 0x4f9   : > { %v10537_v63 = vrot.slane %v3330_v7, %v12115_v27  ;;  %v10542_v11 = vrot.slane %v3935_v0, %v12116_v37  ;;  %v10545_v10 = vrot.slane %v3952_v21, %v12116_v37  ;;  %v10550_v14 = vrot.slane %v3314_v30, %v12115_v27  ;;  %v12257_v7 = vld [vmem:[#allocation50_spill] sm:$0xff] }
 0x4fa   : > { %v10523_v25 = vpop.permute.xlu1 %6025  ;;  %v10525_v57 = vpop.permute.xlu0 %6035  ;;  %v3346_v42 = vcombine.high %v12255_v55, %v12254_v5  ;;  %v3814_v21 = vrot.slane %v3800_v52, %v12116_v37  ;;  %v10562_v60 = vrot.slane %v3903_v62, %v12116_v37  ;;  %v10565_v30 = vrot.slane %v3920_v47, %v12116_v37  ;;  %v12259_v55 = vld [vmem:[#allocation64_spill] sm:$0xff] }
 0x4fb   : > { %12252 = vst [vmem:[#allocation45_spill] sm:$0xff] %v10542_v11  ;;  %v3378_v33 = vcombine.high %v12260_v49, %v12259_v55  ;;  %v3376_v0 = vrot.slane %v3362_v59, %v12115_v27  ;;  %v10577_v52 = vrot.slane %v4310_v61, %v12116_v37  ;;  %v10580_v62 = vrot.slane %v4342_v16, %v12116_v37  ;;  %v12264_v49 = vld [vmem:[#allocation78_spill] sm:$0xff]  ;;  %v12265_v55 = vld [vmem:[#allocation76_spill] sm:$0xff] }
 0x4fc   : > { %6991 = vrot.lane.b32.xlu0 %v12253_v48, %s7466_s6  ;;  %4861 = vrot.lane.b32.xlu1 %v12240_v1, %s7463_s30  ;;  %12258 = vst [vmem:[#allocation48_spill] sm:$0xff] %v10562_v60  ;;  %v3832_v1 = vcombine.high %v10353_v17, %v10347_v39  ;;  %v3393_v47 = vcombine.low %v10550_v14, %v10537_v63  ;;  %v12268_v39 = vld [vmem:[#allocation63_spill] sm:$0xff]  ;;  %v12296_v60 = vld [vmem:[#allocation72_spill] sm:$0xff] }
 0x4fd   : > { %12261 = vst [vmem:[#allocation38_spill] sm:$0xff] %v10577_v52  ;;  %12262 = vst [vmem:[#allocation61_spill] sm:$0xff] %v10580_v62  ;;  %v3974_v59 = vcombine.high %v10565_v30, %v10545_v10  ;;  %v3360_v61 = vrot.slane %v3346_v42, %v12115_v27  ;;  %v3498_v16 = vcombine.high %v12265_v55, %v12264_v49  ;;  %v12270_v49 = vld [vmem:[#allocation28_spill] sm:$0xff]  ;;  %v12271_v55 = vld [vmem:[#allocation26_spill] sm:$0xff] }
 0x4fe   : > { %v10567_v48 = vpop.permute.xlu1 %6029  ;;  %v10569_v5 = vpop.permute.xlu0 %6039  ;;  %v3410_v20 = vcombine.high %v12269_v2, %v12268_v39  ;;  %v12272_v4 = vcombine.high %v12270_v49, %v12271_v55  ;;  %v3833_v41 = vcombine.low %v3782_v44, %v3814_v21  ;;  %v12273_v54 = vcombine.high %v12257_v7, %v12256_v56  ;;  %v12276_v2 = vld [vmem:[#allocation66_spill] sm:$0xff]  ;;  %v12288_v62 = vld [vmem:[#allocation31_spill] sm:$0xff] }
 0x4ff   : > { %v10625_v52 = vrot.slane %v3378_v33, %v12116_v37  ;;  %v12280_v55 = vld [vmem:[#allocation62_spill] sm:$0xff]  ;;  %v3834_v33 = vcombine.high %v3782_v44, %v3814_v21  ;;  %v12287_v21 = vld [vmem:[#allocation29_spill] sm:$0xff]  ;;  %v3514_v45 = vcombine.high %v12289_v51, %v12288_v62  ;;  %v6203_v43 = vcombine.low %v10479_v9, %v10567_v48 }
 0x500   : > { %7001 = vrot.lane.b32.xlu0 %v12263_v15, %s7468_s11  ;;  %4869 = vrot.lane.b32.xlu1 %v12244_v29, %s7463_s30  ;;  %v12266_v15 = vcombine.high %v10078_v23, %v10056_v13  ;;  %v7010_v29 = vpack.i.bf16 %v12272_v4, %v3832_v1  ;;  %v10616_v26 = vpack.i.bf16 %v12273_v54, %v3974_v59  ;;  %v12279_v1 = vld [vmem:[#allocation68_spill] sm:$0xff]  ;;  %s7388_s30 = sshll.u32 %s7473_s26, 4  ;;  %s7389_s30 = int_to_ptr.vmem [resolvable:$false] %s7388_s30 }
 0x501   : > { %v3394_v23 = vcombine.high %v10550_v14, %v10537_v63  ;;  %v3425_v13 = vcombine.low %v3360_v61, %v3376_v0  ;;  %v10628_v4 = vrot.slane %v3393_v47, %v12116_v37  ;;  %v3450_v59 = vcombine.high %v12280_v55, %v12279_v1  ;;  %v12282_v55 = vld [vmem:[#allocation33_spill] sm:$0xff]  ;;  %p7391_p9 = scmp.lt.s32.totalorder %s11814_s4, %s7389_s30 }
 0x502   : > { %v10602_v17 = vrot.slane %v12266_v15, %v12116_v37  ;;  %v10606_v34 = vpop.permute.xlu1 %6033  ;;  %v10608_v42 = vpop.permute.xlu0 %6043  ;;  %12274 = vst [vmem:[#allocation64_spill] sm:$0xff] %v10616_v26  ;;  %v12275_v15 = vld [vmem:[#allocation73_spill] sm:$0xff]  ;;  %v6083_v54 = vcombine.low %v10420_v46, %v10481_v38  ;;  %v3426_v63 = vcombine.high %v3360_v61, %v3376_v0  ;;  %v3512_v14 = vrot.slane %v3498_v16, %v12115_v27  ;;  %v12283_v61 = vld [vmem:[#allocation36_spill] sm:$0xff] }
 0x503   : > { %v3466_v39 = vcombine.high %v12276_v2, %v12275_v15  ;;  %v10641_v47 = vrot.slane %v3410_v20, %v12116_v37  ;;  %v6067_v15 = vcombine.low %v12282_v55, %v10438_v8  ;;  %v6099_v2 = vcombine.low %v10525_v57, %v10608_v42  ;;  %v12284_v16 = vld [vmem:[#allocation37_spill] sm:$0xff]  ;;  %v12286_v20 = vld [vmem:[#allocation75_spill] sm:$0xff] }
 0x504   : > { %12267 = vst [vmem:[#allocation60_spill] sm:$0xff] %v10602_v17  ;;  %v12277_v17 = vld [vmem:[#allocation19_spill] sm:$0xff]  ;;  %7011 = vrot.lane.b32.xlu0 %v7010_v29, %s7467_s29  ;;  %v10655_v1 = vrot.slane %v3425_v13, %v12116_v37  ;;  %v3464_v49 = vrot.slane %v3450_v59, %v12115_v27  ;;  %v10665_v53 = vrot.slane %v6083_v54, %v12115_v27 }
 0x505   : > { %v3482_v40 = vcombine.high %v12278_v32, %v12277_v17  ;;  %v3546_v32 = vcombine.high %v10381_v24, %v10373_v6  ;;  %v12281_v17 = vld [vmem:[#allocation41_spill] sm:$0xff]  ;;  %v12285_v6 = vcombine.low %v12283_v61, %v12284_v16  ;;  %v3480_v44 = vrot.slane %v3466_v39, %v12115_v27  ;;  %v12290_v13 = vld [vmem:[#allocation71_spill] sm:$0xff]  ;;  %v12291_v39 = vld [vmem:[#allocation70_spill] sm:$0xff] }
 0x506   : > { %6976 = vrot.lane.b32.xlu1 %v12281_v17, %s7467_s29  ;;  %v10647_v29 = vpop.permute.xlu1 %6037  ;;  %v10649_v0 = vpop.permute.xlu0 %6047  ;;  %v3815_v17 = vcombine.low %v12287_v21, %v12286_v20  ;;  %v12292_v59 = vld [vmem:[#allocation39_spill] sm:$0xff]  ;;  %v12293_v51 = vcombine.high %v12283_v61, %v12284_v16  ;;  %v10681_v54 = vrot.slane %v6067_v15, %v12115_v27  ;;  %v10684_v21 = vrot.slane %v6099_v2, %v12115_v27 }
 0x507   : > { %v7015_v24 = vpack.i.bf16 %v12285_v6, %v3833_v41  ;;  %v3496_v26 = vrot.slane %v3482_v40, %v12115_v27  ;;  %v6115_v41 = vcombine.low %v10569_v5, %v10649_v0  ;;  %v3783_v6 = vcombine.low %v12291_v39, %v12290_v13 }
 0x508   : > { %v10673_v20 = vrot.slane %v3546_v32, %v12116_v37  ;;  %v7020_v62 = vpack.i.bf16 %v12293_v51, %v3834_v33  ;;  %v3578_v39 = vcombine.high %v10418_v19, %v10409_v50  ;;  %v3529_v33 = vcombine.low %v3464_v49, %v3480_v44  ;;  %v12295_v51 = vld [vmem:[#allocation69_spill] sm:$0xff] }
 0x509   : > { %7016 = vrot.lane.b32.xlu0 %v7015_v24, %s7465_s28  ;;  %v3561_v40 = vcombine.low %v3496_v26, %v3512_v14  ;;  %v10687_v24 = vrot.slane %v6115_v41, %v12115_v27  ;;  %v3823_v15 = vrot.slane %v3815_v17, %v12116_v37  ;;  %v3562_v61 = vcombine.high %v3496_v26, %v3512_v14 }
 0x50a   : > { %6986 = vrot.lane.b32.xlu1 %v12292_v59, %s7469_s17  ;;  %v10689_v13 = vpop.permute.xlu1 %6041  ;;  %v10691_v32 = vpop.permute.xlu0 %5631  ;;  %v10696_v59 = vrot.slane %v3426_v63, %v12116_v37  ;;  %v3528_v2 = vrot.slane %v3514_v45, %v12116_v37  ;;  %v6131_v16 = vcombine.low %v10681_v54, %v10665_v53  ;;  %v3442_v50 = vcombine.high %v12296_v60, %v12295_v51  ;;  %v12297_v45 = vld [vmem:[#allocation42_spill] sm:$0xff] }
 0x50b   : > { %12294 = vst [vmem:[#allocation67_spill] sm:$0xff] %v10691_v32  ;;  %v6163_v41 = vcombine.low %v10684_v21, %v10687_v24  ;;  %v10708_v63 = vrot.slane %v3394_v23, %v12116_v37  ;;  %v3791_v19 = vrot.slane %v3783_v6, %v12116_v37  ;;  %v3530_v17 = vcombine.high %v3464_v49, %v3480_v44  ;;  %v12301_v60 = vld [vmem:[#allocation46_spill] sm:$0xff] }
 0x50c   : > { %v3569_v26 = vrot.slane %v3561_v40, %v12116_v37  ;;  %v7035_v32 = vpack.i.bf16 %v3578_v39, %v3442_v50  ;;  %v3444_v23 = vcombine.high %v10625_v52, %v10641_v47  ;;  %v3580_v51 = vcombine.high %v3528_v2, %v10673_v20 }
 0x50d   : > { %7021 = vrot.lane.b32.xlu0 %v7020_v62, %s7469_s17  ;;  %v10715_v14 = vrot.slane %v6163_v41, %v12116_v37  ;;  %v3537_v49 = vrot.slane %v3529_v33, %v12116_v37  ;;  %v10726_v44 = vrot.slane %v3562_v61, %v12116_v37  ;;  %v3835_v6 = vcombine.low %v3791_v19, %v3823_v15 }
 0x50e   : > { %6996 = vrot.lane.b32.xlu1 %v12297_v45, %s7470_s9  ;;  %v10717_v11 = vpop.permute.xlu1 %6045  ;;  %v10719_v62 = vpop.permute.xlu0 %5639  ;;  %v3446_v40 = vcombine.high %v10628_v4, %v10655_v1  ;;  %v10731_v41 = vrot.slane %v6131_v16, %v12116_v37  ;;  %v3836_v50 = vcombine.high %v3791_v19, %v3823_v15  ;;  %v3443_v39 = vcombine.low %v10625_v52, %v10641_v47 }
 0x50f   : > { %12298 = vst [vmem:[#allocation40_spill] sm:$0xff] %v10715_v14  ;;  %12299 = vst [vmem:[#allocation78_spill] sm:$0xff] %v10719_v62  ;;  %v3448_v45 = vcombine.high %v10708_v63, %v10696_v59  ;;  %v10739_v33 = vrot.slane %v3530_v17, %v12116_v37  ;;  %v3951_v61 = vcombine.low %v10471_v35, %v10463_v22 }
 0x510   : > { %12300 = vst [vmem:[#allocation76_spill] sm:$0xff] %v10731_v41  ;;  %v3582_v16 = vcombine.high %v3537_v49, %v3569_v26  ;;  %v3579_v62 = vcombine.low %v3528_v2, %v10673_v20  ;;  %v6219_v19 = vcombine.low %v10523_v25, %v10606_v34  ;;  %v6235_v52 = vcombine.low %v10647_v29, %v10717_v11  ;;  %v12303_v20 = vld [vmem:[#allocation44_spill] sm:$0xff] }
 0x511   : > { %7036 = vrot.lane.b32.xlu0 %v7035_v32, %s7467_s29  ;;  %v7045_v15 = vpack.i.bf16 %v3580_v51, %v3444_v23  ;;  %v3919_v22 = vcombine.low %v10496_v3, %v10477_v12  ;;  %v3584_v7 = vcombine.high %v10739_v33, %v10726_v44  ;;  %v3445_v12 = vcombine.low %v10628_v4, %v10655_v1 }
 0x512   : > { %7006 = vrot.lane.b32.xlu1 %v12301_v60, %s7471_s19  ;;  %v6050_v47 = vpop.permute.xlu1 %6049  ;;  %v10750_v32 = vpop.permute.xlu0 %5647  ;;  %v12302_v60 = vld [vmem:[#allocation43_spill] sm:$0xff]  ;;  %v3447_v3 = vcombine.low %v10708_v63, %v10696_v59  ;;  %v7055_v17 = vpack.i.bf16 %v3582_v16, %v3446_v40  ;;  %v3581_v41 = vcombine.low %v3537_v49, %v3569_v26  ;;  %v7040_v1 = vpack.i.bf16 %v3579_v62, %v3443_v39  ;;  %v12318_v63 = vld [vmem:[#allocation52_spill] sm:$0xff] }
 0x513   : > { %v6251_v35 = vcombine.low %v10689_v13, %v6050_v47  ;;  %v12304_v2 = vcombine.low %v12302_v60, %v12303_v20  ;;  %v12305_v51 = vcombine.high %v12302_v60, %v12303_v20  ;;  %v6243_v60 = vrot.slane %v6235_v52, %v12115_v27 }
 0x514   : > { %v7065_v26 = vpack.i.bf16 %v3584_v7, %v3448_v45  ;;  %v6211_v49 = vrot.slane %v6203_v43, %v12115_v27  ;;  %v6236_v40 = vcombine.high %v10647_v29, %v10717_v11  ;;  %v6204_v62 = vcombine.high %v10479_v9, %v10567_v48 }
 0x515   : > { %v7025_v56 = vpack.i.bf16 %v12304_v2, %v3835_v6  ;;  %7046 = vrot.lane.b32.xlu0 %v7045_v15, %s7469_s17  ;;  %v7030_v23 = vpack.i.bf16 %v12305_v51, %v3836_v50  ;;  %v10773_v6 = vrot.slane %v3951_v61, %v12116_v37  ;;  %v6259_v2 = vrot.slane %v6251_v35, %v12115_v27 }
 0x516   : > { %v6227_v15 = vrot.slane %v6219_v19, %v12115_v27  ;;  %v6252_v50 = vcombine.high %v10689_v13, %v6050_v47  ;;  %v10780_v20 = vpop.permute.xlu1 %5635  ;;  %v10782_v4 = vpop.permute.xlu0 %5655  ;;  %v10785_v61 = vrot.slane %v3919_v22, %v12116_v37  ;;  %v6084_v35 = vcombine.high %v10420_v46, %v10481_v38 }
 0x517   : > { %7026 = vrot.lane.b32.xlu1 %v7025_v56, %s7466_s6  ;;  %v6220_v56 = vcombine.high %v10523_v25, %v10606_v34  ;;  %v6116_v13 = vcombine.high %v10569_v5, %v10649_v0  ;;  %v6299_v16 = vcombine.low %v6243_v60, %v6259_v2  ;;  %v7050_v46 = vpack.i.bf16 %v3581_v41, %v3445_v12 }
 0x518   : > { %v3972_v38 = vcombine.high %v10785_v61, %v10773_v6  ;;  %v3583_v34 = vcombine.low %v10739_v33, %v10726_v44  ;;  %v6267_v43 = vcombine.low %v6211_v49, %v6227_v15  ;;  %v6100_v25 = vcombine.high %v10525_v57, %v10608_v42 }
 0x519   : > { %7056 = vrot.lane.b32.xlu0 %v7055_v17, %s7470_s9  ;;  %v10807_v11 = vrot.slane %v6252_v50, %v12115_v27  ;;  %v6300_v7 = vcombine.high %v6243_v60, %v6259_v2  ;;  %v6068_v48 = vcombine.high %v12282_v55, %v10438_v8  ;;  %v10816_v29 = vrot.slane %v6084_v35, %v12115_v27  ;;  %v12310_v50 = vld [vmem:[#allocation50_spill] sm:$0xff] }
 0x51a   : > { %v10809_v5 = vpop.permute.xlu1 %5643  ;;  %v10811_v9 = vpop.permute.xlu0 %5629  ;;  %v10819_v0 = vrot.slane %v6220_v56, %v12115_v27  ;;  %v6268_v44 = vcombine.high %v6211_v49, %v6227_v15  ;;  %v10822_v57 = vrot.slane %v6116_v13, %v12115_v27  ;;  %v6164_v42 = vcombine.high %v10684_v21, %v10687_v24  ;;  %v12314_v49 = vld [vmem:[#allocation78_spill] sm:$0xff]  ;;  %v12315_v13 = vld [vmem:[#allocation67_spill] sm:$0xff] }
 0x51b   : > { %7031 = vrot.lane.b32.xlu1 %v7030_v23, %s7470_s9  ;;  %v10827_v41 = vrot.slane %v6236_v40, %v12115_v27  ;;  %v10830_v39 = vrot.slane %v6299_v16, %v12116_v37  ;;  %v6132_v8 = vcombine.high %v10681_v54, %v10665_v53  ;;  %v10836_v55 = vrot.slane %v6204_v62, %v12115_v27 }
 0x51c   : > { %v12306_v45 = vcombine.high %v10534_v28, %v10513_v18  ;;  %v3973_v24 = vcombine.low %v10565_v30, %v10545_v10  ;;  %v10845_v33 = vrot.slane %v6267_v43, %v12116_v37  ;;  %v10848_v19 = vrot.slane %v6100_v25, %v12115_v27 }
 0x51d   : > { %7066 = vrot.lane.b32.xlu0 %v7065_v26, %s7471_s19  ;;  %v10851_v53 = vrot.slane %v6300_v7, %v12116_v37  ;;  %v6315_v54 = vcombine.low %v10827_v41, %v10807_v11  ;;  %v3936_v17 = vcombine.high %v10468_v31, %v10460_v58  ;;  %v10862_v10 = vrot.slane %v6068_v48, %v12115_v27  ;;  %v12309_v31 = vld [vmem:[#allocation85_spill] sm:$0xff]  ;;  %v12317_v48 = vld [vmem:[#allocation48_spill] sm:$0xff] }
 0x51e   : > { %v7090_v21 = vpack.i.bf16 %v12306_v45, %v3972_v38  ;;  %v10855_v52 = vpop.permute.xlu1 %5651  ;;  %v10857_v47 = vpop.permute.xlu0 %5637  ;;  %v10865_v30 = vrot.slane %v6268_v44, %v12116_v37  ;;  %v6283_v22 = vcombine.low %v10836_v55, %v10819_v0  ;;  %v10870_v51 = vrot.slane %v6164_v42, %v12116_v37  ;;  %v12316_v7 = vld [vmem:[#allocation45_spill] sm:$0xff] }
 0x51f   : > { %7041 = vrot.lane.b32.xlu1 %v7040_v1, %s7465_s28  ;;  %v6179_v23 = vcombine.low %v10848_v19, %v10822_v57  ;;  %v5829_v12 = vcombine.low %v10780_v20, %v10809_v5  ;;  %v3904_v2 = vcombine.high %v12309_v31, %v10474_v36  ;;  %v6147_v15 = vcombine.low %v10862_v10, %v10816_v29  ;;  %v12311_v1 = vld [vmem:[#allocation51_spill] sm:$0xff] }
 0x520   : > { %12307 = vst [vmem:[#allocation63_spill] sm:$0xff] %v10865_v30  ;;  %12308 = vst [vmem:[#allocation65_spill] sm:$0xff] %v10870_v51  ;;  %v5845_v60 = vcombine.low %v10750_v32, %v10782_v4  ;;  %v12312_v35 = vcombine.low %v12310_v50, %v12311_v1  ;;  %v10890_v26 = vrot.slane %v6132_v8, %v12116_v37 }
 0x521   : > { %7091 = vrot.lane.b32.xlu0 %v7090_v21, %s7470_s9  ;;  %v5813_v40 = vcombine.low %v12315_v13, %v12314_v49  ;;  %v10895_v36 = vrot.slane %v6315_v54, %v12116_v37  ;;  %v10904_v38 = vrot.slane %v3936_v17, %v12116_v37  ;;  %v7060_v25 = vpack.i.bf16 %v3583_v34, %v3447_v3  ;;  %v12319_v3 = vld [vmem:[#allocation53_spill] sm:$0xff] }
 0x522   : > { %v7095_v56 = vpack.i.bf16 %v12312_v35, %v3973_v24  ;;  %12313 = vst [vmem:[#allocation73_spill] sm:$0xff] %v10890_v26  ;;  %v10897_v16 = vpop.permute.xlu1 %5659  ;;  %v10899_v62 = vpop.permute.xlu0 %5645  ;;  %v3968_v44 = vcombine.high %v12317_v48, %v12316_v7  ;;  %v6291_v42 = vrot.slane %v6283_v22, %v12116_v37  ;;  %v6187_v8 = vrot.slane %v6179_v23, %v12116_v37  ;;  %v12320_v35 = vld [vmem:[#allocation24_spill] sm:$0xff] }
 0x523   : > { %7051 = vrot.lane.b32.xlu1 %v7050_v46, %s7466_s6  ;;  %v6333_v46 = vcombine.low %v10865_v30, %v10851_v53  ;;  %v5861_v43 = vcombine.low %v10855_v52, %v10897_v16  ;;  %v5837_v45 = vrot.slane %v5829_v12, %v12115_v27  ;;  %v6197_v21 = vcombine.low %v10890_v26, %v10870_v51  ;;  %v12323_v7 = vld [vmem:[#allocation16_spill] sm:$0xff] }
 0x524   : > { %v3918_v24 = vrot.slane %v3904_v2, %v12116_v37  ;;  %v5853_v54 = vrot.slane %v5845_v60, %v12115_v27  ;;  %v4374_v34 = vcombine.high %v12319_v3, %v12318_v63  ;;  %v6155_v17 = vrot.slane %v6147_v15, %v12116_v37 }
 0x525   : > { %7096 = vrot.lane.b32.xlu0 %v7095_v56, %s7468_s11  ;;  %v5869_v59 = vrot.slane %v5861_v43, %v12115_v27  ;;  %v5821_v22 = vrot.slane %v5813_v40, %v12115_v27  ;;  %v7105_v31 = vpack.i.bf16 %v6333_v46, %v6197_v21  ;;  %v6335_v50 = vcombine.low %v6291_v42, %v10895_v36  ;;  %v12321_v56 = vld [vmem:[#allocation22_spill] sm:$0xff]  ;;  %v12324_v46 = vld [vmem:[#allocation49_spill] sm:$0xff] }
 0x526   : > { %v5634_v23 = vpop.permute.xlu1 %5633  ;;  %v10927_v12 = vpop.permute.xlu0 %5653  ;;  %v7070_v1 = vpack.i.bf16 %v4374_v34, %v3968_v44  ;;  %v3969_v60 = vcombine.low %v3918_v24, %v10904_v38  ;;  %v12322_v43 = vcombine.high %v12320_v35, %v12321_v56  ;;  %v6199_v40 = vcombine.low %v6155_v17, %v6187_v8  ;;  %v12326_v34 = vld [vmem:[#allocation61_spill] sm:$0xff]  ;;  %v12327_v35 = vld [vmem:[#allocation38_spill] sm:$0xff] }
 0x527   : > { %7061 = vrot.lane.b32.xlu1 %v7060_v25, %s7468_s11  ;;  %v5910_v2 = vcombine.high %v5853_v54, %v5869_v59  ;;  %v5878_v58 = vcombine.high %v5821_v22, %v5837_v45  ;;  %v5909_v15 = vcombine.low %v5853_v54, %v5869_v59  ;;  %v12325_v21 = vcombine.high %v12323_v7, %v12324_v46  ;;  %v12328_v59 = vld [vmem:[#allocation25_spill] sm:$0xff] }
 0x528   : > { %v10935_v25 = vrot.slane %v12322_v43, %v12116_v37  ;;  %v5678_v44 = vcombine.high %v10811_v9, %v10857_v47  ;;  %v4375_v56 = vcombine.low %v12327_v35, %v12326_v34  ;;  %v4376_v54 = vcombine.high %v12327_v35, %v12326_v34 }
 0x529   : > { %7106 = vrot.lane.b32.xlu0 %v7105_v31, %s7465_s28  ;;  %v10942_v48 = vrot.slane %v12325_v21, %v12116_v37  ;;  %v12329_v31 = vld [vmem:[#allocation47_spill] sm:$0xff]  ;;  %v5877_v7 = vcombine.low %v5821_v22, %v5837_v45  ;;  %v10958_v46 = vrot.slane %v5910_v2, %v12116_v37  ;;  %v6336_v26 = vcombine.high %v6291_v42, %v10895_v36 }
 0x52a   : > { %v12330_v43 = vcombine.high %v12328_v59, %v12329_v31  ;;  %v5642_v21 = vpop.permute.xlu1 %5641  ;;  %v10960_v3 = vpop.permute.xlu0 %4453  ;;  %v7075_v30 = vpack.i.bf16 %v4375_v56, %v3969_v60  ;;  %v3970_v34 = vcombine.high %v3918_v24, %v10904_v38  ;;  %v3971_v35 = vcombine.low %v10785_v61, %v10773_v6  ;;  %v12332_v6 = vld [vmem:[#allocation60_spill] sm:$0xff] }
 0x52b   : > { %7071 = vrot.lane.b32.xlu1 %v7070_v1, %s7467_s29  ;;  %v7115_v1 = vpack.i.bf16 %v6335_v50, %v6199_v40  ;;  %v5694_v51 = vcombine.high %v5634_v23, %v5642_v21  ;;  %v10967_v59 = vrot.slane %v5878_v58, %v12116_v37  ;;  %v10970_v45 = vrot.slane %v5909_v15, %v12116_v37 }
 0x52c   : > { %v10955_v63 = vrot.slane %v12330_v43, %v12116_v37  ;;  %v5693_v22 = vcombine.low %v5634_v23, %v5642_v21  ;;  %v6200_v2 = vcombine.high %v6155_v17, %v6187_v8  ;;  %v10974_v50 = vrot.slane %v5678_v44, %v12115_v27 }
 0x52d   : > { %12331 = vst [vmem:[#allocation66_spill] sm:$0xff] %v10970_v45  ;;  %7116 = vrot.lane.b32.xlu0 %v7115_v1, %s7466_s6  ;;  %v10977_v36 = vrot.slane %v5694_v51, %v12115_v27  ;;  %v5553_v61 = vcombine.low %v12332_v6, %v10935_v25  ;;  %v10985_v38 = vrot.slane %v5877_v7, %v12116_v37 }
 0x52e   : > { %v5417_v58 = vcombine.low %v10942_v48, %v10955_v63  ;;  %v5677_v42 = vcombine.low %v10811_v9, %v10857_v47  ;;  %v5650_v8 = vpop.permute.xlu1 %5649  ;;  %v10989_v24 = vpop.permute.xlu0 %4461  ;;  %v7125_v17 = vpack.i.bf16 %v6336_v26, %v6200_v2  ;;  %v5943_v51 = vcombine.low %v10967_v59, %v10958_v46  ;;  %v12336_v2 = vld [vmem:[#allocation63_spill] sm:$0xff] }
 0x52f   : > { %7076 = vrot.lane.b32.xlu1 %v7075_v30, %s7465_s28  ;;  %12333 = vst [vmem:[#allocation19_spill] sm:$0xff] %v10985_v38  ;;  %v6148_v30 = vcombine.high %v10862_v10, %v10816_v29  ;;  %v5758_v23 = vcombine.high %v10974_v50, %v10977_v36  ;;  %v7080_v60 = vpack.i.bf16 %v4376_v54, %v3970_v34 }
 0x530   : > { %v12334_v15 = vcombine.low %v10534_v28, %v10513_v18  ;;  %v5862_v9 = vcombine.high %v10855_v52, %v10897_v16  ;;  %v5709_v47 = vcombine.low %v10899_v62, %v10927_v12  ;;  %v5701_v26 = vrot.slane %v5693_v22, %v12115_v27 }
 0x531   : > { %7126 = vrot.lane.b32.xlu0 %v7125_v17, %s7470_s9  ;;  %v6284_v56 = vcombine.high %v10836_v55, %v10819_v0  ;;  %v6180_v18 = vcombine.high %v10848_v19, %v10822_v57  ;;  %v5814_v28 = vcombine.high %v12315_v13, %v12314_v49  ;;  %v5710_v52 = vcombine.high %v10899_v62, %v10927_v12  ;;  %v12335_v49 = vld [vmem:[#allocation76_spill] sm:$0xff] }
 0x532   : > { %v7085_v40 = vpack.i.bf16 %v12334_v15, %v3971_v35  ;;  %v5846_v16 = vcombine.high %v10750_v32, %v10782_v4  ;;  %v5830_v54 = vcombine.high %v10780_v20, %v10809_v5  ;;  %v5685_v31 = vrot.slane %v5677_v42, %v12115_v27  ;;  %v5658_v0 = vpop.permute.xlu1 %5657  ;;  %v11022_v55 = vpop.permute.xlu0 %4469 }
 0x533   : > { %7081 = vrot.lane.b32.xlu1 %v7080_v60, %s7469_s17  ;;  %v7135_v57 = vpack.i.bf16 %v5943_v51, %v5553_v61  ;;  %v5725_v19 = vcombine.low %v5650_v8, %v5658_v0  ;;  %v5726_v43 = vcombine.high %v5650_v8, %v5658_v0  ;;  %v6196_v13 = vcombine.high %v12335_v49, %v10715_v14 }
 0x534   : > { %v6332_v62 = vcombine.high %v10845_v33, %v10830_v39  ;;  %v6316_v32 = vcombine.high %v10827_v41, %v10807_v11  ;;  %v11031_v4 = vrot.slane %v5862_v9, %v12115_v27  ;;  %v5717_v20 = vrot.slane %v5709_v47, %v12115_v27  ;;  %v12338_v9 = vld [vmem:[#allocation65_spill] sm:$0xff] }
 0x535   : > { %v5741_v5 = vcombine.low %v5685_v31, %v5701_v26  ;;  %7136 = vrot.lane.b32.xlu0 %v7135_v57, %s7465_s28  ;;  %v5724_v12 = vrot.slane %v5710_v52, %v12115_v27  ;;  %v5742_v7 = vcombine.high %v5685_v31, %v5701_v26  ;;  %v5733_v21 = vrot.slane %v5725_v19, %v12115_v27  ;;  %v12339_v47 = vld [vmem:[#allocation73_spill] sm:$0xff] }
 0x536   : > { %v5740_v1 = vrot.slane %v5726_v43, %v12115_v27  ;;  %v11040_v34 = vrot.slane %v5814_v28, %v12115_v27  ;;  %v11043_v11 = vrot.slane %v5846_v16, %v12115_v27  ;;  %v11046_v41 = vrot.slane %v5830_v54, %v12115_v27  ;;  %v11048_v35 = vpop.permute.xlu1 %4457  ;;  %v11050_v22 = vpop.permute.xlu0 %4477 }
 0x537   : > { %7086 = vrot.lane.b32.xlu1 %v7085_v40, %s7466_s6  ;;  %v6334_v61 = vcombine.high %v12336_v2, %v10851_v53  ;;  %v5773_v42 = vcombine.low %v5717_v20, %v5733_v21  ;;  %v5774_v8 = vcombine.high %v5717_v20, %v5733_v21  ;;  %v7100_v51 = vpack.i.bf16 %v6332_v62, %v6196_v13  ;;  %v12350_v62 = vld [vmem:[#allocation57_spill] sm:$0xff] }
 0x538   : > { %v5790_v17 = vcombine.high %v5724_v12, %v5740_v1  ;;  %v11055_v60 = vrot.slane %v6316_v32, %v12116_v37  ;;  %v5925_v15 = vcombine.low %v11043_v11, %v11031_v4  ;;  %v11060_v40 = vrot.slane %v5741_v5, %v12116_v37  ;;  %v12341_v5 = vld [vmem:[#allocation54_spill] sm:$0xff] }
 0x539   : > { %v6198_v26 = vcombine.high %v12339_v47, %v12338_v9  ;;  %v11065_v28 = vrot.slane %v5742_v7, %v12116_v37  ;;  %v11068_v53 = vrot.slane %v5773_v42, %v12116_v37  ;;  %v11071_v52 = vrot.slane %v5774_v8, %v12116_v37  ;;  %v12342_v7 = vld [vmem:[#allocation56_spill] sm:$0xff]  ;;  %v12346_v9 = vld [vmem:[#allocation35_spill] sm:$0xff] }
 0x53a   : > { %12337 = vst [vmem:[#allocation74_spill] sm:$0xff] %v11060_v40  ;;  %v5804_v16 = vrot.slane %v5790_v17, %v12116_v37  ;;  %v11076_v54 = vrot.slane %v6284_v56, %v12116_v37  ;;  %v6194_v31 = vrot.slane %v6180_v18, %v12116_v37  ;;  %v5893_v0 = vcombine.low %v11040_v34, %v11046_v41  ;;  %v11081_v57 = vpop.permute.xlu1 %4465  ;;  %v11083_v19 = vpop.permute.xlu0 %4843  ;;  %v12347_v47 = vld [vmem:[#allocation84_spill] sm:$0xff] }
 0x53b   : > { %12340 = vst [vmem:[#allocation68_spill] sm:$0xff] %v11068_v53  ;;  %7101 = vrot.lane.b32.xlu1 %v7100_v51, %s7467_s29  ;;  %v7110_v43 = vpack.i.bf16 %v6334_v61, %v6198_v26  ;;  %v5772_v13 = vrot.slane %v5758_v23, %v12116_v37  ;;  %v5807_v32 = vcombine.low %v11065_v28, %v11071_v52 }
 0x53c   : > { %v5942_v56 = vcombine.high %v10985_v38, %v10970_v45  ;;  %v6162_v18 = vrot.slane %v6148_v30, %v12116_v37  ;;  %v11097_v20 = vrot.slane %v5925_v15, %v12116_v37  ;;  %v5552_v23 = vcombine.high %v12342_v7, %v12341_v5  ;;  %v12352_v5 = vld [vmem:[#allocation59_spill] sm:$0xff] }
 0x53d   : > { %v6338_v21 = vcombine.high %v11076_v54, %v11055_v60  ;;  %v5789_v2 = vcombine.low %v5724_v12, %v5740_v1  ;;  %v4651_v61 = vcombine.low %v11048_v35, %v11081_v57  ;;  %v7145_v29 = vpack.i.bf16 %v5807_v32, %v5417_v58  ;;  %v12343_v12 = vld [vmem:[#allocation83_spill] sm:$0xff]  ;;  %v12344_v1 = vld [vmem:[#allocation82_spill] sm:$0xff] }
 0x53e   : > { %v5811_v10 = vcombine.low %v5772_v13, %v5804_v16  ;;  %v11110_v30 = vrot.slane %v5893_v0, %v12116_v37  ;;  %v11112_v42 = vpop.permute.xlu1 %4473  ;;  %v11114_v8 = vpop.permute.xlu0 %4851  ;;  %v6202_v17 = vcombine.high %v6162_v18, %v6194_v31  ;;  %v12345_v51 = vcombine.low %v12343_v12, %v12344_v1 }
 0x53f   : > { %7111 = vrot.lane.b32.xlu1 %v7110_v43, %s7469_s17  ;;  %v12348_v26 = vcombine.low %v12346_v9, %v12347_v47  ;;  %v5757_v0 = vcombine.low %v10974_v50, %v10977_v36  ;;  %v4635_v43 = vcombine.low %v10960_v3, %v10989_v24  ;;  %7146 = vrot.lane.b32.xlu0 %v7145_v29, %s7465_s28 }
 0x540   : > { %v11120_v15 = vrot.slane %v12345_v51, %v12116_v37  ;;  %v7120_v32 = vpack.i.bf16 %v5942_v56, %v5552_v23  ;;  %v5806_v44 = vcombine.high %v11060_v40, %v11068_v53  ;;  %v12349_v51 = vld [vmem:[#allocation55_spill] sm:$0xff]  ;;  %v5945_v38 = vcombine.low %v11110_v30, %v11097_v20 }
 0x541   : > { %v11126_v58 = vrot.slane %v12348_v26, %v12116_v37  ;;  %v5416_v45 = vcombine.high %v12350_v62, %v12349_v51  ;;  %v12351_v26 = vld [vmem:[#allocation58_spill] sm:$0xff]  ;;  %v5812_v50 = vcombine.high %v5772_v13, %v5804_v16  ;;  %v11145_v36 = vrot.slane %v5789_v2, %v12116_v37  ;;  %v12354_v13 = vld [vmem:[#allocation21_spill] sm:$0xff]  ;;  %v12355_v2 = vld [vmem:[#allocation20_spill] sm:$0xff] }
 0x542   : > { %v12353_v7 = vcombine.low %v12351_v26, %v12352_v5  ;;  %v4667_v56 = vcombine.low %v11022_v55, %v11050_v22  ;;  %v11150_v23 = vrot.slane %v4651_v61, %v12115_v27  ;;  %v7155_v29 = vpack.i.bf16 %v6338_v21, %v6202_v17  ;;  %v11153_v53 = vpop.permute.xlu1 %4481  ;;  %v11155_v40 = vpop.permute.xlu0 %4859  ;;  %v12359_v62 = vld [vmem:[#allocation23_spill] sm:$0xff] }
 0x543   : > { %7121 = vrot.lane.b32.xlu1 %v7120_v32, %s7467_s29  ;;  %v6337_v16 = vcombine.low %v11076_v54, %v11055_v60  ;;  %v12357_v61 = vcombine.high %v12351_v26, %v12352_v5  ;;  %v11173_v17 = vrot.slane %v5757_v0, %v12116_v37  ;;  %v11176_v32 = vrot.slane %v4635_v43, %v12115_v27 }
 0x544   : > { %v11142_v14 = vpack.i.bf16 %v5811_v10, %v12353_v7  ;;  %v5555_v7 = vcombine.low %v11120_v15, %v11126_v58  ;;  %v12356_v10 = vcombine.low %v12354_v13, %v12355_v2  ;;  %v4683_v60 = vcombine.low %v11112_v42, %v11153_v53  ;;  %7156 = vrot.lane.b32.xlu0 %v7155_v29, %s7471_s19 }
 0x545   : > { %v11170_v21 = vpack.i.bf16 %v5812_v50, %v12357_v61  ;;  %v7130_v54 = vpack.i.bf16 %v5806_v44, %v5416_v45  ;;  %v6201_v2 = vcombine.low %v6162_v18, %v6194_v31  ;;  %v11188_v0 = vrot.slane %v4667_v56, %v12115_v27 }
 0x546   : > { %v11165_v51 = vrot.slane %v12356_v10, %v12116_v37  ;;  %v7165_v13 = vpack.i.bf16 %v5945_v38, %v5555_v7  ;;  %v12358_v10 = vld [vmem:[#allocation17_spill] sm:$0xff]  ;;  %v4699_v43 = vcombine.low %v11176_v32, %v11150_v23  ;;  %v11193_v50 = vrot.slane %v4683_v60, %v12115_v27  ;;  %v11198_v38 = vpop.permute.xlu1 %4847  ;;  %v11200_v44 = vpop.permute.xlu0 %4867 }
 0x547   : > { %v12360_v5 = vcombine.low %v12358_v10, %v12359_v62  ;;  %7131 = vrot.lane.b32.xlu1 %v7130_v54, %s7467_s29  ;;  %v5809_v45 = vcombine.low %v11173_v17, %v11145_v36  ;;  %v7140_v62 = vpack.i.bf16 %v6337_v16, %v6201_v2  ;;  %v5944_v56 = vcombine.high %v10967_v59, %v10958_v46 }
 0x548   : > { %v4731_v31 = vcombine.low %v11188_v0, %v11193_v50  ;;  %7166 = vrot.lane.b32.xlu0 %v7165_v13, %s7466_s6  ;;  %v11210_v29 = vrot.slane %v4699_v43, %v12116_v37  ;;  %v5554_v60 = vcombine.high %v12332_v6, %v10935_v25  ;;  %v5808_v59 = vcombine.high %v11065_v28, %v11071_v52 }
 0x549   : > { %v11185_v26 = vrot.slane %v12360_v5, %v12116_v37  ;;  %v5418_v2 = vcombine.high %v10942_v48, %v10955_v63  ;;  %v5025_v43 = vcombine.low %v11083_v19, %v11114_v8  ;;  %v5057_v28 = vcombine.low %v11155_v40, %v11200_v44 }
 0x54a   : > { %v11213_v7 = vrot.slane %v4731_v31, %v12116_v37  ;;  %v11218_v54 = vpop.permute.xlu0 %4451  ;;  %v11222_v13 = vpop.permute.xlu1 %4855  ;;  %v7150_v46 = vpack.i.bf16 %v5944_v56, %v5554_v60 }
 0x54b   : > { %v5419_v18 = vcombine.low %v11185_v26, %v11165_v51  ;;  %7141 = vrot.lane.b32.xlu1 %v7140_v62, %s7468_s11  ;;  %v5041_v25 = vcombine.low %v11198_v38, %v11222_v13  ;;  %v7160_v5 = vpack.i.bf16 %v5808_v59, %v5418_v2  ;;  %v5033_v63 = vrot.slane %v5025_v43, %v12115_v27 }
 0x54c   : > { %v5065_v62 = vrot.slane %v5057_v28, %v12115_v27  ;;  %v5536_v43 = vcombine.high %v12346_v9, %v12347_v47  ;;  %v5926_v28 = vcombine.high %v11043_v11, %v11031_v4  ;;  %v5504_v9 = vcombine.high %v12343_v12, %v12344_v1 }
 0x54d   : > { %v7175_v61 = vpack.i.bf16 %v5809_v45, %v5419_v18  ;;  %v5049_v52 = vrot.slane %v5041_v25, %v12115_v27  ;;  %v5894_v4 = vcombine.high %v11040_v34, %v11046_v41  ;;  %v5946_v11 = vcombine.high %v11110_v30, %v11097_v20 }
 0x54e   : > { %v11232_v6 = vpop.permute.xlu0 %4459  ;;  %v11234_v10 = vpop.permute.xlu1 %4863  ;;  %v4700_v47 = vcombine.high %v11176_v32, %v11150_v23  ;;  %v5556_v34 = vcombine.high %v11120_v15, %v11126_v58  ;;  %v11294_v41 = vrot.slane %v5536_v43, %v12116_v37  ;;  %v11297_v20 = vrot.slane %v5926_v28, %v12116_v37 }
 0x54f   : > { %7176 = vrot.lane.b32.xlu0 %v7175_v61, %s7466_s6  ;;  %7151 = vrot.lane.b32.xlu1 %v7150_v46, %s7469_s17  ;;  %v5089_v18 = vcombine.low %v5033_v63, %v5049_v52  ;;  %v5090_v49 = vcombine.high %v5033_v63, %v5049_v52  ;;  %v4499_v1 = vcombine.low %v11218_v54, %v11232_v6 }
 0x550   : > { %v11309_v23 = vrot.slane %v5894_v4, %v12116_v37  ;;  %v7180_v58 = vpack.i.bf16 %v5946_v11, %v5556_v34  ;;  %v11313_v32 = vrot.slane %v5504_v9, %v12116_v37 }
 0x551   : > { %v11253_v59 = vrot.slane %v5089_v18, %v12116_v37  ;;  %v4764_v18 = vcombine.high %v11210_v29, %v11213_v7  ;;  %v11303_v12 = vrot.slane %v5090_v49, %v12116_v37  ;;  %v11336_v4 = vrot.slane %v4499_v1, %v12115_v27 }
 0x552   : > { %v11242_v45 = vpop.permute.xlu0 %4467  ;;  %v4872_v48 = vpop.permute.xlu1 %4871  ;;  %v5557_v9 = vcombine.low %v11313_v32, %v11294_v41 }
 0x553   : > { %7161 = vrot.lane.b32.xlu1 %v7160_v5, %s7469_s17  ;;  %v5073_v31 = vcombine.low %v11234_v10, %v4872_v48  ;;  %v5074_v15 = vcombine.high %v11234_v10, %v4872_v48  ;;  %v4684_v10 = vcombine.high %v11112_v42, %v11153_v53  ;;  %v5058_v48 = vcombine.high %v11155_v40, %v11200_v44 }
 0x554   : > { %v5947_v40 = vcombine.low %v11309_v23, %v11297_v20  ;;  %v4668_v42 = vcombine.high %v11022_v55, %v11050_v22  ;;  %v5026_v44 = vcombine.high %v11083_v19, %v11114_v8 }
 0x555   : > { %v5081_v56 = vrot.slane %v5073_v31, %v12115_v27  ;;  %v4732_v31 = vcombine.high %v11188_v0, %v11193_v50  ;;  %v4698_v22 = vrot.slane %v4684_v10, %v12115_v27 }
 0x556   : > { %v11248_v61 = vpop.permute.xlu0 %4475  ;;  %v11250_v60 = vpop.permute.xlu1 %4455 }
 0x557   : > { %v5121_v46 = vcombine.low %v5065_v62, %v5081_v56  ;;  %v5122_v2 = vcombine.high %v5065_v62, %v5081_v56  ;;  %v11300_v30 = vrot.slane %v4732_v31, %v12116_v37  ;;  %v4531_v49 = vcombine.low %v11242_v45, %v11248_v61  ;;  %v12368_v62 = vld [vmem:[#allocation34_spill] sm:$0xff] }
 0x559   : > { %v11256_v25 = vrot.slane %v5121_v46, %v12116_v37  ;;  %v11283_v0 = vrot.slane %v5122_v2, %v12116_v37  ;;  %v4714_v2 = vrot.slane %v4700_v47, %v12116_v37  ;;  %v11352_v47 = vrot.slane %v4531_v49, %v12115_v27 }
 0x55a   : > { %v11258_v5 = vpop.permute.xlu0 %4841  ;;  %v11266_v16 = vpop.permute.xlu1 %4463 }
 0x55b   : > { %12361 = vst [vmem:[#allocation62_spill] sm:$0xff] %v11256_v25  ;;  %v5154_v56 = vcombine.high %v11253_v59, %v11256_v25  ;;  %v4515_v50 = vcombine.low %v11250_v60, %v11266_v16  ;;  %v5155_v31 = vcombine.low %v11303_v12, %v11283_v0  ;;  %v4765_v53 = vcombine.low %v4714_v2, %v11300_v30  ;;  %v12369_v25 = vld [vmem:[#allocation27_spill] sm:$0xff] }
 0x55d   : > { %v7170_v63 = vpack.i.bf16 %v5154_v56, %v4764_v18  ;;  %v11319_v43 = vrot.slane %v4515_v50, %v12115_v27  ;;  %v5042_v18 = vcombine.high %v11198_v38, %v11222_v13  ;;  %v4652_v38 = vcombine.high %v11048_v35, %v11081_v57 }
 0x55e   : > { %v11287_v52 = vpop.permute.xlu0 %4849  ;;  %v11289_v46 = vpop.permute.xlu1 %4471  ;;  %v5088_v13 = vrot.slane %v5074_v15, %v12115_v27  ;;  %v7190_v55 = vpack.i.bf16 %v5155_v31, %v4765_v53  ;;  %v4636_v35 = vcombine.high %v10960_v3, %v10989_v24  ;;  %v5072_v57 = vrot.slane %v5058_v48, %v12115_v27 }
 0x55f   : > { %7171 = vrot.lane.b32.xlu1 %v7170_v63, %s7467_s29  ;;  %v4563_v50 = vcombine.low %v11336_v4, %v11319_v43  ;;  %v5056_v19 = vrot.slane %v5042_v18, %v12115_v27  ;;  %v7200_v15 = vpack.i.bf16 %v5947_v40, %v5557_v9  ;;  %v4666_v49 = vrot.slane %v4652_v38, %v12115_v27 }
 0x560   : > { %v5040_v3 = vrot.slane %v5026_v44, %v12115_v27  ;;  %v5137_v24 = vcombine.low %v5072_v57, %v5088_v13  ;;  %v5138_v31 = vcombine.high %v5072_v57, %v5088_v13  ;;  %v4650_v9 = vrot.slane %v4636_v35, %v12115_v27 }
 0x561   : > { %v11375_v10 = vrot.slane %v4563_v50, %v12116_v37  ;;  %v5948_v38 = vcombine.high %v11309_v23, %v11297_v20 }
 0x562   : > { %v11321_v28 = vpop.permute.xlu0 %4857  ;;  %v11331_v56 = vpop.permute.xlu1 %4479  ;;  %v5105_v40 = vcombine.low %v5040_v3, %v5056_v19  ;;  %v5106_v13 = vcombine.high %v5040_v3, %v5056_v19  ;;  %v4715_v57 = vcombine.low %v4650_v9, %v4666_v49  ;;  %v4716_v35 = vcombine.high %v4650_v9, %v4666_v49 }
 0x563   : > { %v4547_v11 = vcombine.low %v11289_v46, %v11331_v56  ;;  %7181 = vrot.lane.b32.xlu1 %v7180_v58, %s7470_s9  ;;  %v4682_v58 = vrot.slane %v4668_v42, %v12115_v27  ;;  %v4889_v49 = vcombine.low %v11258_v5, %v11287_v52  ;;  %v5810_v3 = vcombine.high %v11173_v17, %v11145_v36 }
 0x565   : > { %v11357_v63 = vrot.slane %v4547_v11, %v12115_v27  ;;  %v5156_v11 = vcombine.high %v11303_v12, %v11283_v0  ;;  %v4747_v53 = vcombine.low %v4682_v58, %v4698_v22  ;;  %v4748_v44 = vcombine.high %v4682_v58, %v4698_v22 }
 0x566   : > { %v11359_v34 = vpop.permute.xlu0 %4865  ;;  %v11366_v8 = vpop.permute.xlu1 %4845  ;;  %v5145_v0 = vrot.slane %v5137_v24, %v12116_v37  ;;  %v5558_v12 = vcombine.high %v11313_v32, %v11294_v41  ;;  %v5420_v41 = vcombine.high %v11185_v26, %v11165_v51  ;;  %v11413_v58 = vrot.slane %v5106_v13, %v12116_v37 }
 0x567   : > { %v4595_v1 = vcombine.low %v11352_v47, %v11357_v63  ;;  %7191 = vrot.lane.b32.xlu1 %v7190_v55, %s7465_s28  ;;  %v4766_v55 = vcombine.high %v4714_v2, %v11300_v30  ;;  %v4755_v19 = vrot.slane %v4747_v53, %v12116_v37  ;;  %v5113_v30 = vrot.slane %v5105_v40, %v12116_v37 }
 0x568   : > { %v11410_v32 = vrot.slane %v4748_v44, %v12116_v37  ;;  %v4723_v24 = vrot.slane %v4715_v57, %v12116_v37  ;;  %v4921_v9 = vcombine.low %v11321_v28, %v11359_v34 }
 0x569   : > { %v11378_v48 = vrot.slane %v4595_v1, %v12116_v37  ;;  %v11397_v1 = vrot.slane %v5138_v31, %v12116_v37  ;;  %v7210_v22 = vpack.i.bf16 %v5156_v11, %v4766_v55  ;;  %v4564_v31 = vcombine.high %v11336_v4, %v11319_v43 }
 0x56a   : > { %v11380_v18 = vpop.permute.xlu0 %6981  ;;  %v11385_v42 = vpop.permute.xlu1 %4853  ;;  %v5157_v51 = vcombine.low %v5113_v30, %v5145_v0  ;;  %v5158_v26 = vcombine.high %v5113_v30, %v5145_v0  ;;  %v11424_v11 = vrot.slane %v4716_v35, %v12116_v37  ;;  %v4768_v43 = vcombine.high %v4723_v24, %v4755_v19 }
 0x56b   : > { %7201 = vrot.lane.b32.xlu1 %v7200_v15, %s7468_s11  ;;  %v4905_v20 = vcombine.low %v11366_v8, %v11385_v42  ;;  %v7220_v15 = vpack.i.bf16 %v5948_v38, %v5558_v12  ;;  %v5159_v36 = vcombine.low %v11413_v58, %v11397_v1  ;;  %v4767_v38 = vcombine.low %v4723_v24, %v4755_v19 }
 0x56c   : > { %v11438_v4 = vrot.slane %v4889_v49, %v12115_v27  ;;  %v4769_v13 = vcombine.low %v11424_v11, %v11410_v32  ;;  %v11445_v55 = vpack.i.bf16 %v5810_v3, %v5420_v41  ;;  %v11448_v57 = vrot.slane %v4564_v31, %v12116_v37 }
 0x56d   : > { %v11429_v53 = vrot.slane %v4905_v20, %v12115_v27  ;;  %v7230_v0 = vpack.i.bf16 %v5157_v51, %v4767_v38  ;;  %v7245_v12 = vpack.i.bf16 %v5158_v26, %v4768_v43  ;;  %v4770_v35 = vcombine.high %v11424_v11, %v11410_v32  ;;  %v12362_v38 = vld [vmem:[#allocation28_spill] sm:$0xff]  ;;  %v12363_v43 = vld [vmem:[#allocation26_spill] sm:$0xff] }
 0x56e   : > { %v11401_v23 = vpop.permute.xlu0 %6991  ;;  %v11405_v2 = vpop.permute.xlu1 %4861  ;;  %v4929_v20 = vrot.slane %v4921_v9, %v12115_v27  ;;  %v4596_v41 = vcombine.high %v11352_v47, %v11357_v63  ;;  %v5160_v31 = vcombine.high %v11413_v58, %v11397_v1  ;;  %v6984_v32 = vunpack.i.h.bf16 %v11380_v18 }
 0x56f   : > { %7211 = vrot.lane.b32.xlu1 %v7210_v22, %s7469_s17  ;;  %v4953_v22 = vcombine.low %v11438_v4, %v11429_v53  ;;  %v6983_v51 = vunpack.i.l.bf16 %v11380_v18  ;;  %v6994_v26 = vunpack.i.h.bf16 %v11401_v23  ;;  %v12364_v47 = vcombine.low %v12362_v38, %v12363_v43  ;;  %v12371_v43 = vld [vmem:[#allocation14_spill] sm:$0xff] }
 0x570   : > { %v6993_v18 = vunpack.i.l.bf16 %v11401_v23  ;;  %v12370_v38 = vcombine.low %v12368_v62, %v12369_v25 }
 0x571   : > { %v11473_v58 = vrot.slane %v4953_v22, %v12116_v37 }
 0x572   : > { %v11431_v40 = vpop.permute.xlu0 %7001  ;;  %v11435_v17 = vpop.permute.xlu1 %4869 }
 0x573   : > { %v4937_v44 = vcombine.low %v11405_v2, %v11435_v17  ;;  %7221 = vrot.lane.b32.xlu1 %v7220_v15, %s7471_s19  ;;  %v7255_v15 = vpack.i.bf16 %v5159_v36, %v4769_v13  ;;  %v12366_v13 = vld [vmem:[#allocation77_spill] sm:$0xff] }
 0x575   : > { %v4945_v19 = vrot.slane %v4937_v44, %v12115_v27  ;;  %v12365_v44 = vld [vmem:[#allocation30_spill] sm:$0xff] }
 0x576   : > { %v7012_v30 = vpop.permute.xlu0 %7011 }
 0x577   : > { %v7014_v3 = vunpack.i.h.bf16 %v7012_v30  ;;  %v7013_v24 = vunpack.i.l.bf16 %v7012_v30  ;;  %v4985_v11 = vcombine.low %v4929_v20, %v4945_v19  ;;  %7231 = vrot.lane.b32.xlu1 %v7230_v0, %s7466_s6  ;;  %v12367_v30 = vcombine.low %v12365_v44, %v12366_v13 }
 0x578   : > { %v6977_v49 = vpop.permute.xlu1 %6976  ;;  %v4986_v50 = vcombine.high %v4929_v20, %v4945_v19 }
 0x579   : > { %v6979_v9 = vunpack.i.h.bf16 %v6977_v49  ;;  %v6978_v36 = vunpack.i.l.bf16 %v6977_v49  ;;  %v4437_v63 = vsel %vm506_vm5, %v12364_v47, %v7014_v3  ;;  %v4031_v1 = vsel %vm506_vm5, %v12367_v30, %v7013_v24  ;;  %v12372_v47 = vld [vmem:[#allocation15_spill] sm:$0xff] }
 0x57a   : > { %v11477_v0 = vrot.slane %v4985_v11, %v12116_v37  ;;  %v12373_v44 = vcombine.low %v12371_v43, %v12372_v47 }
 0x57b   : > { %v7017_v49 = vpop.permute.xlu0 %7016  ;;  %v3235_v3 = vsel %vm506_vm5, %v12370_v38, %v6978_v36  ;;  %7246 = vrot.lane.b32.xlu1 %v7245_v12, %s7470_s9  ;;  %v4628_v12 = vcombine.high %v11375_v10, %v11378_v48 }
 0x57c   : > { %v3242_v24 = vsel %vm506_vm5, %v12373_v44, %v6979_v9  ;;  %v6987_v13 = vpop.permute.xlu1 %6986  ;;  %v7019_v22 = vunpack.i.h.bf16 %v7017_v49  ;;  %v7018_v30 = vunpack.i.l.bf16 %v7017_v49  ;;  %v5017_v23 = vcombine.low %v11473_v58, %v11477_v0 }
 0x57d   : > { %v6989_v20 = vunpack.i.h.bf16 %v6987_v13  ;;  %v6988_v19 = vunpack.i.l.bf16 %v6987_v13  ;;  %v3236_v11 = vsel %vm508_vm6, %v3235_v3, %v6983_v51  ;;  %v3243_v25 = vsel %vm508_vm6, %v3242_v24, %v6984_v32 }
 0x57e   : > { %v4032_v62 = vsel %vm508_vm6, %v4031_v1, %v7018_v30  ;;  %v4438_v36 = vsel %vm508_vm6, %v4437_v63, %v7019_v22  ;;  %v5018_v9 = vcombine.high %v11473_v58, %v11477_v0  ;;  %v4954_v49 = vcombine.high %v11438_v4, %v11429_v53 }
 0x57f   : > { %v3237_v38 = vsel %vm510_vm7, %v3236_v11, %v6988_v19  ;;  %v3244_v43 = vsel %vm510_vm7, %v3243_v25, %v6989_v20  ;;  %v7022_v47 = vpop.permute.xlu0 %7021  ;;  %v11505_v44 = vrot.slane %v4986_v50, %v12116_v37  ;;  %7256 = vrot.lane.b32.xlu1 %v7255_v15, %s7468_s11  ;;  %v4548_v13 = vcombine.high %v11289_v46, %v11331_v56 }
 0x580   : > { %v6997_v51 = vpop.permute.xlu1 %6996  ;;  %v3238_v32 = vsel %vm512_vm8, %v3237_v38, %v6993_v18  ;;  %v3245_v1 = vsel %vm512_vm8, %v3244_v43, %v6994_v26  ;;  %v7024_v63 = vunpack.i.h.bf16 %v7022_v47  ;;  %v7023_v3 = vunpack.i.l.bf16 %v7022_v47  ;;  %v12375_v38 = vld [vmem:[#allocation81_spill] sm:$0xff]  ;;  %v12377_v47 = vld [vmem:[#allocation72_spill] sm:$0xff] }
 0x581   : > { %v6999_v24 = vunpack.i.h.bf16 %v6997_v51  ;;  %v6998_v53 = vunpack.i.l.bf16 %v6997_v51  ;;  %v7185_v4 = vpack.i.bf16 %v5018_v9, %v4628_v12  ;;  %v7265_v18 = vpack.i.bf16 %v5160_v31, %v4770_v35  ;;  %v12378_v12 = vld [vmem:[#allocation69_spill] sm:$0xff] }
 0x582   : > { %v4033_v22 = vsel %vm510_vm7, %v4032_v62, %v7023_v3  ;;  %v4439_v30 = vsel %vm510_vm7, %v4438_v36, %v7024_v63  ;;  %v11513_v26 = vrot.slane %v4596_v41, %v12116_v37  ;;  %v11516_v20 = vrot.slane %v4954_v49, %v12116_v37  ;;  %v12374_v49 = vld [vmem:[#allocation32_spill] sm:$0xff] }
 0x583   : > { %v3239_v50 = vsel %vm514_vm9, %v3238_v32, %v6998_v53  ;;  %v3246_v19 = vsel %vm514_vm9, %v3245_v1, %v6999_v24  ;;  %7186 = vrot.lane.b32.xlu0 %v7185_v4, %s7467_s29  ;;  %v7037_v15 = vpop.permute.xlu0 %7036  ;;  %v7004_v46 = vunpack.i.h.bf16 %v11431_v40  ;;  %v7003_v56 = vunpack.i.l.bf16 %v11431_v40  ;;  %7266 = vrot.lane.b32.xlu1 %v7265_v18, %s7471_s19 }
 0x584   : > { %v7007_v11 = vpop.permute.xlu1 %7006  ;;  %v7039_v25 = vunpack.i.h.bf16 %v7037_v15  ;;  %v7038_v35 = vunpack.i.l.bf16 %v7037_v15  ;;  %v4938_v41 = vcombine.high %v11405_v2, %v11435_v17  ;;  %v5019_v36 = vcombine.low %v11516_v20, %v11505_v44 }
 0x585   : > { %v7009_v31 = vunpack.i.h.bf16 %v7007_v11  ;;  %v7008_v62 = vunpack.i.l.bf16 %v7007_v11  ;;  %v4922_v9 = vcombine.high %v11321_v28, %v11359_v34  ;;  %v12376_v43 = vcombine.low %v12374_v49, %v12375_v38 }
 0x586   : > { %v12379_v51 = vcombine.low %v12377_v47, %v12378_v12  ;;  %v3247_v17 = vsel %vm516_vm10, %v3246_v19, %v7004_v46  ;;  %v4906_v32 = vcombine.high %v11366_v8, %v11385_v42  ;;  %v4629_v28 = vcombine.low %v11448_v57, %v11513_v26  ;;  %v12380_v19 = vld [vmem:[#allocation18_spill] sm:$0xff] }
 0x587   : > { %v3648_v40 = vsel %vm506_vm5, %v12376_v43, %v7039_v25  ;;  %7196 = vrot.lane.b32.xlu0 %v11445_v55, %s7470_s9  ;;  %v7047_v1 = vpop.permute.xlu0 %7046  ;;  %v11546_v34 = vsel %vm518_vm11, %v3247_v17, %v7009_v31  ;;  %v3240_v63 = vsel %vm516_vm10, %v3239_v50, %v7003_v56  ;;  %v4532_v3 = vcombine.high %v11242_v45, %v11248_v61 }
 0x588   : > { %v3641_v2 = vsel %vm506_vm5, %v12379_v51, %v7038_v35  ;;  %v4516_v24 = vcombine.high %v11250_v60, %v11266_v16  ;;  %v4890_v8 = vcombine.high %v11258_v5, %v11287_v52  ;;  %v11556_v55 = vsel %vm518_vm11, %v3240_v63, %v7008_v62  ;;  %7271 = vrot.lane.b32.xlu1 %v12380_v19, %s7468_s11  ;;  %v12381_v35 = vld [vmem:[#allocation79_spill] sm:$0xff] }
 0x589   : > { %v7027_v42 = vpop.permute.xlu1 %7026  ;;  %v4952_v53 = vrot.slane %v4938_v41, %v12115_v27  ;;  %v7205_v50 = vpack.i.bf16 %v5019_v36, %v4629_v28  ;;  %v4500_v45 = vcombine.high %v11218_v54, %v11232_v6  ;;  %v11564_v16 = vrot.slane %v4548_v13, %v12115_v27 }
 0x58a   : > { %v7029_v4 = vunpack.i.h.bf16 %v7027_v42  ;;  %v7028_v18 = vunpack.i.l.bf16 %v7027_v42  ;;  %v4936_v61 = vrot.slane %v4922_v9, %v12115_v27  ;;  %v11568_v60 = vrot.slane %v4906_v32, %v12115_v27 }
 0x58b   : > { %7206 = vrot.lane.b32.xlu0 %v7205_v50, %s7465_s28  ;;  %v7057_v15 = vpop.permute.xlu0 %7056  ;;  %v11574_v46 = vrot.slane %v4532_v3, %v12115_v27  ;;  %v4530_v54 = vrot.slane %v4516_v24, %v12115_v27  ;;  %v4904_v6 = vrot.slane %v4890_v8, %v12115_v27  ;;  %v7049_v12 = vunpack.i.h.bf16 %v7047_v1  ;;  %s7390_s28 = scalar_lea.vmem %s7389_s30, 512 }
 0x58c   : > { %v4034_v5 = vsel %vm512_vm8, %v4033_v22, %v7028_v18  ;;  %v4440_v52 = vsel %vm512_vm8, %v4439_v30, %v7029_v4  ;;  %v5001_v56 = vcombine.low %v4936_v61, %v4952_v53  ;;  %7286 = vrot.lane.b32.xlu1 %v12381_v35, %s7471_s19  ;;  %v5020_v22 = vcombine.high %v11516_v20, %v11505_v44  ;;  %p7392_p10 = scmp.lt.s32.totalorder %s7390_s28, %s7384_s23 }
 0x58d   : > { %v7032_v13 = vpop.permute.xlu1 %7031  ;;  %v4514_v30 = vrot.slane %v4500_v45, %v12115_v27  ;;  %v4611_v41 = vcombine.low %v11574_v46, %v11564_v16  ;;  %v4969_v31 = vcombine.low %v4904_v6, %v11568_v60  ;;  %v4630_v44 = vcombine.high %v11448_v57, %v11513_v26 }
 0x58e   : > { %v7034_v11 = vunpack.i.h.bf16 %v7032_v13  ;;  %v7033_v25 = vunpack.i.l.bf16 %v7032_v13  ;;  %v5009_v49 = vrot.slane %v5001_v56, %v12116_v37  ;;  %v7048_v51 = vunpack.i.l.bf16 %v7047_v1  ;;  %p7393_p1 = por %p7392_p10, %p7391_p9 }
 0x58f   : > { %7216 = vrot.lane.b32.xlu0 %v11142_v14, %s7468_s11  ;;  %v7067_v9 = vpop.permute.xlu0 %7066  ;;  %v4579_v20 = vcombine.low %v4514_v30, %v4530_v54  ;;  %v7225_v47 = vpack.i.bf16 %v5020_v22, %v4630_v44  ;;  %v4619_v17 = vrot.slane %v4611_v41, %v12116_v37  ;;  %v4977_v32 = vrot.slane %v4969_v31, %v12116_v37 }
 0x590   : > { %v11587_v62 = vsel %vm514_vm9, %v4034_v5, %v7033_v25  ;;  %v11590_v36 = vsel %vm514_vm9, %v4440_v52, %v7034_v11  ;;  %v5002_v26 = vcombine.high %v4936_v61, %v4952_v53  ;;  %v4580_v18 = vcombine.high %v4514_v30, %v4530_v54  ;;  %p7394_p12 = pnand %p7393_p1, %p7387_p5 }
 0x591   : > { %v7042_v27 = vpop.permute.xlu1 %7041  ;;  %v4587_v1 = vrot.slane %v4579_v20, %v12116_v37  ;;  %v5021_v4 = vcombine.low %v4977_v32, %v5009_v49  ;;  %v7059_v19 = vunpack.i.h.bf16 %v7057_v15  ;;  %v4612_v50 = vcombine.high %v11574_v46, %v11564_v16 }
 0x592   : > { %v7044_v38 = vunpack.i.h.bf16 %v7042_v27  ;;  %v7043_v43 = vunpack.i.l.bf16 %v7042_v27  ;;  %v5016_v5 = vrot.slane %v5002_v26, %v12116_v37  ;;  %v7069_v11 = vunpack.i.h.bf16 %v7067_v9 }
 0x593   : > { %7226 = vrot.lane.b32.xlu0 %v7225_v47, %s7469_s17  ;;  %v11602_v57 = vpop.permute.xlu0 %7091  ;;  %v4631_v61 = vcombine.low %v4587_v1, %v4619_v17  ;;  %v7068_v25 = vunpack.i.l.bf16 %v7067_v9  ;;  %v4632_v35 = vcombine.high %v4587_v1, %v4619_v17  ;;  %v4626_v22 = vrot.slane %v4612_v50, %v12116_v37  ;;  %v12382_v47 = vld [vmem:[#allocation53_spill] sm:$0xff] }
 0x594   : > { %v3642_v28 = vsel %vm508_vm6, %v3641_v2, %v7043_v43  ;;  %v3649_v14 = vsel %vm508_vm6, %v3648_v40, %v7044_v38  ;;  %v4970_v2 = vcombine.high %v4904_v6, %v11568_v60  ;;  %v7058_v40 = vunpack.i.l.bf16 %v7057_v15 }
 0x595   : > { %v7052_v63 = vpop.permute.xlu1 %7051  ;;  %v3643_v3 = vsel %vm510_vm7, %v3642_v28, %v7048_v51  ;;  %v3650_v24 = vsel %vm510_vm7, %v3649_v14, %v7049_v12  ;;  %v5022_v6 = vcombine.high %v4977_v32, %v5009_v49  ;;  %v7240_v16 = vpack.i.bf16 %v5021_v4, %v4631_v61  ;;  %v12383_v12 = vld [vmem:[#allocation52_spill] sm:$0xff]  ;;  %v12386_v28 = vld [vmem:[#allocation45_spill] sm:$0xff] }
 0x596   : > { %v7054_v8 = vunpack.i.h.bf16 %v7052_v63  ;;  %v7053_v42 = vunpack.i.l.bf16 %v7052_v63  ;;  %v4984_v46 = vrot.slane %v4970_v2, %v12116_v37  ;;  %v12384_v51 = vcombine.low %v12382_v47, %v12383_v12  ;;  %v12385_v32 = vld [vmem:[#allocation48_spill] sm:$0xff] }
 0x597   : > { %7236 = vrot.lane.b32.xlu0 %v11170_v21, %s7471_s19  ;;  %v7097_v56 = vpop.permute.xlu0 %7096  ;;  %v4594_v21 = vrot.slane %v4580_v18, %v12116_v37  ;;  %v7250_v44 = vpack.i.bf16 %v5022_v6, %v4632_v35  ;;  %v12387_v14 = vcombine.low %v12385_v32, %v12386_v28  ;;  %v12390_v12 = vld [vmem:[#allocation76_spill] sm:$0xff] }
 0x598   : > { %v3644_v53 = vsel %vm512_vm8, %v3643_v3, %v7053_v42  ;;  %v3651_v45 = vsel %vm512_vm8, %v3650_v24, %v7054_v8  ;;  %v5023_v20 = vcombine.low %v4984_v46, %v5016_v5  ;;  %v5024_v4 = vcombine.high %v4984_v46, %v5016_v5 }
 0x599   : > { %v7062_v52 = vpop.permute.xlu1 %7061  ;;  %v3645_v54 = vsel %vm514_vm9, %v3644_v53, %v7058_v40  ;;  %v3652_v60 = vsel %vm514_vm9, %v3651_v45, %v7059_v19  ;;  %v4633_v3 = vcombine.low %v4594_v21, %v4626_v22  ;;  %v4634_v19 = vcombine.high %v4594_v21, %v4626_v22  ;;  %v12388_v21 = vld [vmem:[#allocation64_spill] sm:$0xff] }
 0x59a   : > { %v7064_v15 = vunpack.i.h.bf16 %v7062_v52  ;;  %v7063_v13 = vunpack.i.l.bf16 %v7062_v52  ;;  %v7098_v46 = vunpack.i.l.bf16 %v7097_v56 }
 0x59b   : > { %7241 = vrot.lane.b32.xlu0 %v7240_v16, %s7466_s6  ;;  %v7107_v63 = vpop.permute.xlu0 %7106  ;;  %v7260_v42 = vpack.i.bf16 %v5023_v20, %v4633_v3  ;;  %v7275_v61 = vpack.i.bf16 %v5024_v4, %v4634_v19  ;;  %v7099_v16 = vunpack.i.h.bf16 %v7097_v56 }
 0x59c   : > { %v3646_v30 = vsel %vm516_vm10, %v3645_v54, %v7063_v13  ;;  %v3653_v41 = vsel %vm516_vm10, %v3652_v60, %v7064_v15  ;;  %v7094_v15 = vunpack.i.h.bf16 %v11602_v57  ;;  %v7093_v13 = vunpack.i.l.bf16 %v11602_v57 }
 0x59d   : > { %v7072_v31 = vpop.permute.xlu1 %7071  ;;  %v11624_v27 = vsel %vm518_vm11, %v3653_v41, %v7069_v11  ;;  %v11627_v49 = vsel %vm518_vm11, %v3646_v30, %v7068_v25  ;;  %v7109_v3 = vunpack.i.h.bf16 %v7107_v63 }
 0x59e   : > { %v7074_v9 = vunpack.i.h.bf16 %v7072_v31  ;;  %v7073_v38 = vunpack.i.l.bf16 %v7072_v31  ;;  %v6410_v37 = vpack.c.bf16 %v11624_v27, %v11546_v34  ;;  %v6409_v43 = vpack.c.bf16 %v11627_v49, %v11556_v55 }
 0x59f   : > { %7251 = vrot.lane.b32.xlu0 %v7250_v44, %s7470_s9  ;;  %v7117_v50 = vpop.permute.xlu0 %7116 }
 0x5a0   : > { %v4444_v17 = vsel %vm506_vm5, %v12384_v51, %v7074_v9  ;;  %v4038_v26 = vsel %vm506_vm5, %v12387_v14, %v7073_v38  ;;  %v12389_v38 = vcombine.low %v10845_v33, %v10830_v39  ;;  %v12391_v51 = vld [vmem:[#allocation40_spill] sm:$0xff] }
 0x5a1   : > { %v7077_v24 = vpop.permute.xlu1 %7076 }
 0x5a2   : > { %v7079_v1 = vunpack.i.h.bf16 %v7077_v24  ;;  %v7078_v8 = vunpack.i.l.bf16 %v7077_v24  ;;  %v7108_v24 = vunpack.i.l.bf16 %v7107_v63  ;;  %v12393_v63 = vld [vmem:[#allocation57_spill] sm:$0xff] }
 0x5a3   : > { %7261 = vrot.lane.b32.xlu0 %v7260_v42, %s7468_s11  ;;  %v7127_v11 = vpop.permute.xlu0 %7126 }
 0x5a4   : > { %v4039_v18 = vsel %vm508_vm6, %v4038_v26, %v7078_v8  ;;  %v4445_v2 = vsel %vm508_vm6, %v4444_v17, %v7079_v1  ;;  %v12392_v17 = vcombine.low %v12390_v12, %v12391_v51 }
 0x5a5   : > { %v7082_v40 = vpop.permute.xlu1 %7081 }
 0x5a6   : > { %v7084_v53 = vunpack.i.h.bf16 %v7082_v40  ;;  %v7083_v45 = vunpack.i.l.bf16 %v7082_v40 }
 0x5a7   : > { %7276 = vrot.lane.b32.xlu0 %v7275_v61, %s7471_s19  ;;  %v11662_v9 = vpop.permute.xlu0 %7136 }
 0x5a8   : > { %v4040_v52 = vsel %vm510_vm7, %v4039_v18, %v7083_v45  ;;  %v4446_v54 = vsel %vm510_vm7, %v4445_v2, %v7084_v53  ;;  %v7119_v18 = vunpack.i.h.bf16 %v7117_v50  ;;  %v7118_v2 = vunpack.i.l.bf16 %v7117_v50 }
 0x5a9   : > { %v7087_v60 = vpop.permute.xlu1 %7086  ;;  %v7129_v50 = vunpack.i.h.bf16 %v7127_v11 }
 0x5aa   : > { %v7089_v5 = vunpack.i.h.bf16 %v7087_v60  ;;  %v7088_v6 = vunpack.i.l.bf16 %v7087_v60 }
 0x5ab   : > { %7281 = vrot.lane.b32.xlu0 %v12388_v21, %s7471_s19 }
 0x5ac   : > { %v4041_v25 = vsel %vm512_vm8, %v4040_v52, %v7088_v6  ;;  %v4447_v35 = vsel %vm512_vm8, %v4446_v54, %v7089_v5  ;;  %v12394_v54 = vld [vmem:[#allocation55_spill] sm:$0xff]  ;;  %v12396_v6 = vld [vmem:[#allocation74_spill] sm:$0xff] }
 0x5ad   : > { %v4042_v22 = vsel %vm514_vm9, %v4041_v25, %v7093_v13  ;;  %v4448_v30 = vsel %vm514_vm9, %v4447_v35, %v7094_v15  ;;  %v7102_v41 = vpop.permute.xlu1 %7101  ;;  %v12395_v60 = vcombine.low %v12393_v63, %v12394_v54  ;;  %v12397_v15 = vld [vmem:[#allocation68_spill] sm:$0xff]  ;;  %v7128_v25 = vunpack.i.l.bf16 %v7127_v11 }
 0x5ae   : > { %v11657_v31 = vsel %vm516_vm10, %v4042_v22, %v7098_v46  ;;  %v11660_v57 = vsel %vm516_vm10, %v4448_v30, %v7099_v16  ;;  %v7104_v56 = vunpack.i.h.bf16 %v7102_v41  ;;  %v7103_v44 = vunpack.i.l.bf16 %v7102_v41 }
 0x5af   : > { %v12398_v13 = vcombine.low %v12396_v6, %v12397_v15  ;;  %v7139_v54 = vunpack.i.h.bf16 %v11662_v9 }
 0x5b0   : > { %v6402_v47 = vsel %vm506_vm5, %v12389_v38, %v7104_v56  ;;  %v6395_v32 = vsel %vm506_vm5, %v12392_v17, %v7103_v44 }
 0x5b1   : > { %v7112_v20 = vpop.permute.xlu1 %7111  ;;  %v7147_v1 = vpop.permute.xlu0 %7146  ;;  %v6396_v8 = vsel %vm508_vm6, %v6395_v32, %v7108_v24  ;;  %v6403_v42 = vsel %vm508_vm6, %v6402_v47, %v7109_v3 }
 0x5b2   : > { %v7114_v28 = vunpack.i.h.bf16 %v7112_v20  ;;  %v7113_v14 = vunpack.i.l.bf16 %v7112_v20  ;;  %v7149_v53 = vunpack.i.h.bf16 %v7147_v1  ;;  %v7148_v45 = vunpack.i.l.bf16 %v7147_v1 }
 0x5b4   : > { %v6397_v4 = vsel %vm510_vm7, %v6396_v8, %v7113_v14  ;;  %v6404_v39 = vsel %vm510_vm7, %v6403_v42, %v7114_v28 }
 0x5b5   : > { %v7122_v26 = vpop.permute.xlu1 %7121  ;;  %v6398_v61 = vsel %vm512_vm8, %v6397_v4, %v7118_v2  ;;  %v6405_v46 = vsel %vm512_vm8, %v6404_v39, %v7119_v18  ;;  %v12400_v18 = vld [vmem:[#allocation54_spill] sm:$0xff] }
 0x5b6   : > { %v7157_v52 = vpop.permute.xlu0 %7156  ;;  %v6406_v20 = vsel %vm514_vm9, %v6405_v46, %v7129_v50  ;;  %v6399_v38 = vsel %vm514_vm9, %v6398_v61, %v7128_v25  ;;  %v7124_v42 = vunpack.i.h.bf16 %v7122_v26  ;;  %v7123_v4 = vunpack.i.l.bf16 %v7122_v26 }
 0x5b7   : > { %v7159_v56 = vunpack.i.h.bf16 %v7157_v52  ;;  %v7158_v44 = vunpack.i.l.bf16 %v7157_v52 }
 0x5b9   : > { %v7132_v33 = vpop.permute.xlu1 %7131 }
 0x5ba   : > { %v7134_v19 = vunpack.i.h.bf16 %v7132_v33  ;;  %v7133_v40 = vunpack.i.l.bf16 %v7132_v33  ;;  %v12399_v33 = vld [vmem:[#allocation56_spill] sm:$0xff] }
 0x5bb   : > { %v12401_v2 = vcombine.low %v12399_v33, %v12400_v18 }
 0x5bc   : > { %v5615_v5 = vsel %vm506_vm5, %v12395_v60, %v7133_v40  ;;  %v6005_v16 = vsel %vm506_vm5, %v12398_v13, %v7134_v19  ;;  %v12402_v40 = vld [vmem:[#allocation19_spill] sm:$0xff]  ;;  %v7138_v60 = vunpack.i.l.bf16 %v11662_v9 }
 0x5bd   : > { %v7142_v35 = vpop.permute.xlu1 %7141  ;;  %v11687_v21 = vsel %vm508_vm6, %v5615_v5, %v7148_v45  ;;  %v11690_v22 = vsel %vm508_vm6, %v6005_v16, %v7149_v53  ;;  %v5622_v19 = vsel %vm506_vm5, %v12401_v2, %v7123_v4  ;;  %v12403_v53 = vld [vmem:[#allocation66_spill] sm:$0xff]  ;;  %v7167_v5 = vpop.permute.xlu0 %7166 }
 0x5be   : > { %v7144_v30 = vunpack.i.h.bf16 %v7142_v35  ;;  %v7143_v41 = vunpack.i.l.bf16 %v7142_v35  ;;  %v12404_v45 = vcombine.low %v12402_v40, %v12403_v53  ;;  %v5623_v26 = vsel %vm508_vm6, %v5622_v19, %v7138_v60 }
 0x5bf   : > { %v7169_v25 = vunpack.i.h.bf16 %v7167_v5  ;;  %v7168_v35 = vunpack.i.l.bf16 %v7167_v5 }
 0x5c0   : > { %v6407_v47 = vsel %vm516_vm10, %v6406_v20, %v7144_v30  ;;  %v6400_v12 = vsel %vm516_vm10, %v6399_v38, %v7143_v41  ;;  %v6012_v61 = vsel %vm506_vm5, %v12404_v45, %v7124_v42 }
 0x5c1   : > { %v6408_v11 = vsel %vm518_vm11, %v6407_v47, %v7159_v56  ;;  %v6401_v51 = vsel %vm518_vm11, %v6400_v12, %v7158_v44  ;;  %v7152_v14 = vpop.permute.xlu1 %7151  ;;  %v6013_v6 = vsel %vm508_vm6, %v6012_v61, %v7139_v54  ;;  %v12405_v61 = vcombine.low %v11210_v29, %v11213_v7 }
 0x5c2   : > { %v6418_v17 = vpack.c.bf16 %v6408_v11, %v6408_v11  ;;  %v6417_v32 = vpack.c.bf16 %v6401_v51, %v6401_v51  ;;  %v7154_v52 = vunpack.i.h.bf16 %v7152_v14  ;;  %v7153_v63 = vunpack.i.l.bf16 %v7152_v14 }
 0x5c4   : > { %6598 = vmatprep.subr.msk.bf16.mxu1 %vm2413_vm13, %v6418_v17  ;;  %v6425_v28 = vsel %vm2413_vm13, %v6417_v32, 0  ;;  %v5624_v13 = vsel %vm510_vm7, %v5623_v26, %v7153_v63  ;;  %v6014_v16 = vsel %vm510_vm7, %v6013_v6, %v7154_v52  ;;  %v12406_v63 = vld [vmem:[#allocation62_spill] sm:$0xff] }
 0x5c5   : > { %6437 = vmatpush1.bf16.msra.mxu1 %v6425_v28  ;;  %v11700_v3 = vpop.permute.xlu1 %7161  ;;  %v5625_v56 = vsel %vm512_vm8, %v5624_v13, %v7168_v35  ;;  %v6015_v9 = vsel %vm512_vm8, %v6014_v16, %v7169_v25  ;;  %v12407_v54 = vcombine.low %v11253_v59, %v12406_v63 }
 0x5d1   : > { %v7172_v24 = vpop.permute.xlu1 %7171 }
 0x5d2   : > { %v7174_v42 = vunpack.i.h.bf16 %v7172_v24  ;;  %v7173_v4 = vunpack.i.l.bf16 %v7172_v24 }
 0x5d4   : > { %v4834_v52 = vsel %vm506_vm5, %v12405_v61, %v7173_v4  ;;  %v5224_v60 = vsel %vm506_vm5, %v12407_v54, %v7174_v42  ;;  %v7164_v4 = vunpack.i.h.bf16 %v11700_v3 }
 0x5d5   : > { %v7182_v1 = vpop.permute.xlu1 %7181 }
 0x5d6   : > { %v7184_v46 = vunpack.i.h.bf16 %v7182_v1  ;;  %v7183_v50 = vunpack.i.l.bf16 %v7182_v1 }
 0x5d8   : > { %v5626_v20 = vsel %vm514_vm9, %v5625_v56, %v7183_v50  ;;  %v6016_v38 = vsel %vm514_vm9, %v6015_v9, %v7184_v46 }
 0x5d9   : > { %v7192_v8 = vpop.permute.xlu1 %7191 }
 0x5da   : > { %v7194_v33 = vunpack.i.h.bf16 %v7192_v8  ;;  %v7193_v18 = vunpack.i.l.bf16 %v7192_v8 }
 0x5dc   : > { %v4835_v26 = vsel %vm508_vm6, %v4834_v52, %v7193_v18  ;;  %v5225_v8 = vsel %vm508_vm6, %v5224_v60, %v7194_v33  ;;  %v7163_v33 = vunpack.i.l.bf16 %v11700_v3 }
 0x5dd   : > { %v7202_v39 = vpop.permute.xlu1 %7201 }
 0x5de   : > { %v7204_v30 = vunpack.i.h.bf16 %v7202_v39  ;;  %v7203_v41 = vunpack.i.l.bf16 %v7202_v39  ;;  %v7177_v39 = vpop.permute.xlu0 %7176 }
 0x5df   : > { %v7179_v61 = vunpack.i.h.bf16 %v7177_v39  ;;  %v7178_v3 = vunpack.i.l.bf16 %v7177_v39 }
 0x5e0   : > { %v5627_v11 = vsel %vm516_vm10, %v5626_v20, %v7203_v41  ;;  %v6017_v51 = vsel %vm516_vm10, %v6016_v38, %v7204_v30 }
 0x5e1   : > { %v7212_v15 = vpop.permute.xlu1 %7211 }
 0x5e2   : > { %v7214_v2 = vunpack.i.h.bf16 %v7212_v15  ;;  %v7213_v19 = vunpack.i.l.bf16 %v7212_v15 }
 0x5e4   : > { %v4836_v16 = vsel %vm510_vm7, %v4835_v26, %v7213_v19  ;;  %v5226_v29 = vsel %vm510_vm7, %v5225_v8, %v7214_v2 }
 0x5e5   : > { %v7222_v44 = vpop.permute.xlu1 %7221 }
 0x5e6   : > { %v7224_v47 = vunpack.i.h.bf16 %v7222_v44  ;;  %v7223_v12 = vunpack.i.l.bf16 %v7222_v44 }
 0x5e8   : > { %v5628_v17 = vsel %vm518_vm11, %v5627_v11, %v7223_v12  ;;  %v6018_v32 = vsel %vm518_vm11, %v6017_v51, %v7224_v47 }
 0x5e9   : > { %v7232_v28 = vpop.permute.xlu1 %7231  ;;  %v6416_v14 = vpack.c.bf16 %v6018_v32, %v5628_v17 }
 0x5ea   : > { %v7234_v40 = vunpack.i.h.bf16 %v7232_v28  ;;  %v7233_v53 = vunpack.i.l.bf16 %v7232_v28 }
 0x5eb   : > { %6438 = vmatprep.subr.bf16.mxu1 %v6416_v14 }
 0x5ec   : > { %v4837_v7 = vsel %vm512_vm8, %v4836_v16, %v7233_v53  ;;  %v5227_v59 = vsel %vm512_vm8, %v5226_v29, %v7234_v40 }
 0x5ed   : > { %v7247_v1 = vpop.permute.xlu1 %7246 }
 0x5ee   : > { %v7249_v5 = vunpack.i.h.bf16 %v7247_v1  ;;  %v7248_v24 = vunpack.i.l.bf16 %v7247_v1 }
 0x5f0   : > { %v4838_v50 = vsel %vm514_vm9, %v4837_v7, %v7248_v24  ;;  %v5228_v25 = vsel %vm514_vm9, %v5227_v59, %v7249_v5 }
 0x5f1   : > { %v7257_v45 = vpop.permute.xlu1 %7256 }
 0x5f2   : > { %v7259_v6 = vunpack.i.h.bf16 %v7257_v45  ;;  %v7258_v15 = vunpack.i.l.bf16 %v7257_v45 }
 0x5f4   : > { %v4839_v41 = vsel %vm516_vm10, %v4838_v50, %v7258_v15  ;;  %v5229_v56 = vsel %vm516_vm10, %v5228_v25, %v7259_v6 }
 0x5f5   : > { %v11734_v13 = vpop.permute.xlu0 %7186  ;;  %v7267_v46 = vpop.permute.xlu1 %7266 }
 0x5f6   : > { %v7269_v35 = vunpack.i.h.bf16 %v7267_v46  ;;  %v7268_v30 = vunpack.i.l.bf16 %v7267_v46  ;;  %v7189_v59 = vunpack.i.h.bf16 %v11734_v13  ;;  %v7188_v46 = vunpack.i.l.bf16 %v11734_v13 }
 0x5f8   : > { %v4840_v44 = vsel %vm518_vm11, %v4839_v41, %v7268_v30  ;;  %v5230_v20 = vsel %vm518_vm11, %v5229_v56, %v7269_v35 }
 0x5f9   : > { %v7197_v9 = vpop.permute.xlu0 %7196  ;;  %v6414_v47 = vpack.c.bf16 %v5230_v20, %v4840_v44  ;;  %v5217_v44 = vsel %vm506_vm5, %v5017_v23, %v7189_v59  ;;  %v12408_v20 = vcombine.low %v11375_v10, %v11378_v48 }
 0x5fa   : > { %v7272_v38 = vpop.permute.xlu1 %7271  ;;  %v7199_v53 = vunpack.i.h.bf16 %v7197_v9  ;;  %v7198_v45 = vunpack.i.l.bf16 %v7197_v9 }
 0x5fb   : > { %v7274_v12 = vunpack.i.h.bf16 %v7272_v38  ;;  %v7273_v11 = vunpack.i.l.bf16 %v7272_v38  ;;  %v4827_v38 = vsel %vm506_vm5, %v12408_v20, %v7188_v46 }
 0x5fd   : > { %v7207_v51 = vpop.permute.xlu0 %7206  ;;  %v4036_v14 = vsel %vm516_vm10, %v11587_v62, %v7273_v11  ;;  %v4442_v1 = vsel %vm516_vm10, %v11590_v36, %v7274_v12  ;;  %v5617_v62 = vsel %vm510_vm7, %v11687_v21, %v7163_v33  ;;  %v6007_v36 = vsel %vm510_vm7, %v11690_v22, %v7164_v4 }
 0x5fe   : > { %v7287_v17 = vpop.permute.xlu1 %7286  ;;  %v5618_v54 = vsel %vm512_vm8, %v5617_v62, %v7178_v3  ;;  %v6008_v60 = vsel %vm512_vm8, %v6007_v36, %v7179_v61  ;;  %v7209_v50 = vunpack.i.h.bf16 %v7207_v51  ;;  %v7208_v25 = vunpack.i.l.bf16 %v7207_v51 }
 0x5ff   : > { %v7289_v32 = vunpack.i.h.bf16 %v7287_v17  ;;  %v7288_v28 = vunpack.i.l.bf16 %v7287_v17  ;;  %v5619_v24 = vsel %vm514_vm9, %v5618_v54, %v7198_v45  ;;  %v6009_v26 = vsel %vm514_vm9, %v6008_v60, %v7199_v53 }
 0x600   : > { %v4828_v13 = vsel %vm508_vm6, %v4827_v38, %v7208_v25  ;;  %v5218_v11 = vsel %vm508_vm6, %v5217_v44, %v7209_v50 }
 0x601   : > { %v7217_v42 = vpop.permute.xlu0 %7216  ;;  %v11753_v18 = vsel %vm518_vm11, %v4036_v14, %v7288_v28  ;;  %v11756_v2 = vsel %vm518_vm11, %v4442_v1, %v7289_v32 }
 0x602   : > { %v6411_v19 = vpack.c.bf16 %v11756_v2, %v11753_v18  ;;  %v7219_v52 = vunpack.i.h.bf16 %v7217_v42  ;;  %v7218_v63 = vunpack.i.l.bf16 %v7217_v42 }
 0x604   : > { %v5620_v6 = vsel %vm516_vm10, %v5619_v24, %v7218_v63  ;;  %v6010_v22 = vsel %vm516_vm10, %v6009_v26, %v7219_v52  ;;  %v6419_v63 = vld [vmem:[#allocation9] sm:$0xf] }
 0x605   : > { %v7227_v40 = vpop.permute.xlu0 %7226 }
 0x606   : > { %v7229_v35 = vunpack.i.h.bf16 %v7227_v40  ;;  %v7228_v30 = vunpack.i.l.bf16 %v7227_v40 }
 0x608   : > { %v4829_v32 = vsel %vm510_vm7, %v4828_v13, %v7228_v30  ;;  %v5219_v28 = vsel %vm510_vm7, %v5218_v11, %v7229_v35 }
 0x609   : > { %v7237_v5 = vpop.permute.xlu0 %7236 }
 0x60a   : > { %v7239_v8 = vunpack.i.h.bf16 %v7237_v5  ;;  %v7238_v21 = vunpack.i.l.bf16 %v7237_v5 }
 0x60c   : > { %v5621_v15 = vsel %vm518_vm11, %v5620_v6, %v7238_v21  ;;  %v6011_v39 = vsel %vm518_vm11, %v6010_v22, %v7239_v8 }
 0x60d   : > { %v7242_v16 = vpop.permute.xlu0 %7241  ;;  %v6415_v29 = vpack.c.bf16 %v6011_v39, %v5621_v15 }
 0x60e   : > { %v7244_v41 = vunpack.i.h.bf16 %v7242_v16  ;;  %v7243_v56 = vunpack.i.l.bf16 %v7242_v16 }
 0x60f   : > { %6439 = vmatpush1.bf16.msra.mxu1 %v6415_v29 }
 0x610   : > { %6440 = vmatprep.subr.bf16.mxu1 %v6414_v47  ;;  %v4830_v58 = vsel %vm512_vm8, %v4829_v32, %v7243_v56  ;;  %v5220_v0 = vsel %vm512_vm8, %v5219_v28, %v7244_v41 }
 0x611   : > { %v7252_v7 = vpop.permute.xlu0 %7251 }
 0x612   : > { %v7254_v47 = vunpack.i.h.bf16 %v7252_v7  ;;  %v7253_v12 = vunpack.i.l.bf16 %v7252_v7 }
 0x614   : > { %v4831_v10 = vsel %vm514_vm9, %v4830_v58, %v7253_v12  ;;  %v5221_v48 = vsel %vm514_vm9, %v5220_v0, %v7254_v47 }
 0x615   : > { %v7262_v9 = vpop.permute.xlu0 %7261 }
 0x616   : > { %v7264_v51 = vunpack.i.h.bf16 %v7262_v9  ;;  %v7263_v17 = vunpack.i.l.bf16 %v7262_v9 }
 0x618   : > { %v4832_v42 = vsel %vm516_vm10, %v4831_v10, %v7263_v17  ;;  %v5222_v4 = vsel %vm516_vm10, %v5221_v48, %v7264_v51 }
 0x619   : > { %v7277_v23 = vpop.permute.xlu0 %7276 }
 0x61a   : > { %v7279_v14 = vunpack.i.h.bf16 %v7277_v23  ;;  %v7278_v1 = vunpack.i.l.bf16 %v7277_v23 }
 0x61c   : > { %v4833_v33 = vsel %vm518_vm11, %v4832_v42, %v7278_v1  ;;  %v5223_v40 = vsel %vm518_vm11, %v5222_v4, %v7279_v14 }
 0x61d   : > { %v7282_v62 = vpop.permute.xlu0 %7281  ;;  %v6413_v36 = vpack.c.bf16 %v5223_v40, %v4833_v33 }
 0x61e   : > { %v7284_v53 = vunpack.i.h.bf16 %v7282_v62  ;;  %v7283_v45 = vunpack.i.l.bf16 %v7282_v62 }
 0x61f   : > { %6441 = vmatpush1.bf16.msra.mxu1 %v6413_v36 }
 0x620   : > { %v4044_v61 = vsel %vm518_vm11, %v11657_v31, %v7283_v45  ;;  %v4450_v3 = vsel %vm518_vm11, %v11660_v57, %v7284_v53 }
 0x621   : > { %v6412_v52 = vpack.c.bf16 %v4450_v3, %v4044_v61 }
 0x623   : > { %6442 = vmatprep.subr.bf16.mxu1 %v6412_v52 }
 0x624   : > { %6443 = vmatpush1.bf16.msra.mxu1 %v6411_v19 }
 0x625   : > { %6444 = vmatprep.subr.bf16.mxu1 %v6410_v37 }
 0x628   : > { %6445 = vmatpush1.bf16.msra.mxu1 %v6409_v43 }
 0x62b   : > { %6599 = vmatmul.mubr.msk.bf16.vlgmr.msra.gmra.mxu1 %vm6420_vm1, %v6419_v63 }
 0x6eb   : > { %v6464_v31 = vpop.f32.mrf.mxu1 }
 0x6ec   : > { %vm6471_vm2 = vcmp.gt.f32.partialorder %v6464_v31, 0.0  ;;  %v6473_v57 = vmul.f32 0.01, %v6464_v31 }
 0x6ed   : > { %v6466_v18 = vpop.f32.mrf.mxu1 }
 0x6ee   : > { %v6475_v2 = vsel %vm6471_vm2, %v6464_v31, %v6473_v57  ;;  %vm6472_vm3 = vcmp.gt.f32.partialorder %v6466_v18, 0.0  ;;  %v6474_v34 = vmul.f32 0.01, %v6466_v18 }
 0x6ef   : > { %6477 = vst [vmem:[%s213_s27] sm:$0xff] %v6475_v2  ;;  %v6468_v27 = vpop.f32.mrf.mxu1 }
 0x6f0   : > { %v6476_v55 = vsel %vm6472_vm3, %v6466_v18, %v6474_v34 }
 0x6f1   : > { %6478 = vst [vmem:[%s213_s27 + $0x8] sm:$0xff] %v6476_v55  ;;  %v6469_v49 = vpop.f32.mrf.mxu1 }
 0x6f2   : > { %7397 = shalt.err (!%p7394_p12)
}
 0x6f3   : > { %s7398_s6 = scalar_lea.hbm %s11812_s10, 256  ;;  %s7402_s11 = scalar_lea.hbm %s11858_s3, 512 }
 0x6f4   : > { %p7399_p6 = scmp.ne.s32.totalorder %s11812_s10, %s7398_s6  ;;  %p7403_p13 = scmp.lt.s32.totalorder %s11812_s10, %s11858_s3 }
 0x6f5   : > { %p7404_p3 = scmp.lt.s32.totalorder %s7402_s11, %s7398_s6 }
 0x6f6   : > { %p7400_p7 = pnand %p7399_p6, %p12409_p0 }
 0x6f7   : > { %p7405_p8 = por %p7404_p3, %p7403_p13 }
 0x6f8   : > { %p7401_p11 = pneg %p7400_p7 }
 0x6fa   : > { %p7406_p2 = pnand %p7405_p8, %p7401_p11 }
 0x6fc   : > { %7409 = shalt.err (!%p7406_p2)
}
 0x6fd   : > { %6617 = dma.vmem_to_hbm [thread:$0]  (%p12409_p0), %s11814_s4, 256, %s11812_s10, %s6480_s16  }
 0x6fe PF: > { %s6506_s19 = sand.u32 1, %s7440_s12   ;;  %p12410_p4 = scmp.ne.s32.totalorder %s12033_s25, 0 }
 0x6ff   : > { %p12411_p5 = scmp.ge.s32.totalorder %s7452_s15, 2  ;;  %s6507_s20 = scalar_lea.sflag [#allocation6], %s6506_s19 }
 0x701   : > { %p6631_p9 = pnand %p12411_p5, %p12410_p4 }
 0x703   : > { %p6632_p10 = pneg %p6631_p9 }
 0x705   : > { %7435 = dma.done.wait (%p6632_p10), %s6507_s20, 256  }
 0x706   : > { %7437 = vsyncadd (%p6632_p10), %s6507_s20, 4294967040  ;;  %p17_p1 = scmp.ge.s32.totalorder %s7519_s18, 4   ;;  %s12412_s12 = smov %s7444_s13 }
 0x707   : > { %s12413_s13 = smov %s7448_s14  ;;  %s12414_s14 = smov %s7531_s21 }
 0x708   : > { %s12415_s15 = smov %s7519_s18  ;;  %19 = sbr.rel (!%p17_p1) target bundleno = 6 (0x6), region = 85 }
 0x70d   :  { %6512 = vsyncpa [#allocation5], 1 }
 0x70e   :  { %6514 = vsyncpa [#allocation5 + $0x1], 1 }
 0x70f   :  { %6515 = vsyncpa [#allocation8], 1 }
 0x710   :  { %6516 = vsyncpa [#allocation6], 1 }
 0x711   :  { %6518 = vsyncpa [#allocation6 + $0x1], 1 }

</bundles_post_ra>
